<compile_context>
chip_gen: v7x
topology: tpu7x:2x2x1
jax: 0.10.0
libtpu: 0.0.40
codegen_flags: <defaults>
</compile_context>

<pallas_src>
import functools

import jax
import jax.numpy as jnp
from jax.experimental import pallas as pl
from jax.experimental.pallas import tpu as pltpu

# ---------------- model hyper-parameters (small synthetic config) -------------
DIM = 3            # input point dimension
C_DIM = 16         # latent code dimension
HIDDEN = 32        # hidden size of decoder
N_BLOCKS = 5       # number of ResnetBlockFC blocks
PADDING = 0.1      # ONet unit-cube padding

DIM_PAD = 8                                    # point channels padded 3 -> 8 (sublane aligned)
NPROJ = (1 + N_BLOCKS) * HIDDEN                # 192 fused projection bias rows


def _ceil_to(x, m):
    return ((x + m - 1) // m) * m


# ---------------- coordinate normalization (matches ConvONet utils) -----------
def normalize_coordinate(p, padding=PADDING, plane='xz'):
    if plane == 'xz':
        xy = jnp.stack([p[..., 0], p[..., 2]], axis=-1)
    elif plane == 'xy':
        xy = jnp.stack([p[..., 0], p[..., 1]], axis=-1)
    else:  # 'yz'
        xy = jnp.stack([p[..., 1], p[..., 2]], axis=-1)
    xy = xy / (1 + padding + 10e-4) + 0.5
    xy = jnp.where(xy >= 1, 1 - 10e-4, xy)
    xy = jnp.where(xy < 0, 0.0, xy)
    return xy


def normalize_3d_coordinate(p, padding=PADDING):
    p_nor = p / (1 + padding + 10e-4) + 0.5
    p_nor = jnp.where(p_nor >= 1, 1 - 10e-4, p_nor)
    p_nor = jnp.where(p_nor < 0, 0.0, p_nor)
    return p_nor


# ---------------- grid_sample equivalents (border padding, align_corners) -----
def _bilinear_sample_2d(feat, uv):
    """feat: (B, C, H, W) NCHW; uv: (B, T, 2) in [0,1]. Returns (B, C, T)."""
    B, C, H, W = feat.shape
    x = uv[..., 0] * (W - 1)
    y = uv[..., 1] * (H - 1)
    x0f, y0f = jnp.floor(x), jnp.floor(y)
    wx, wy = x - x0f, y - y0f
    x0 = jnp.clip(x0f, 0, W - 1).astype(jnp.int32)
    x1 = jnp.clip(x0f + 1, 0, W - 1).astype(jnp.int32)
    y0 = jnp.clip(y0f, 0, H - 1).astype(jnp.int32)
    y1 = jnp.clip(y0f + 1, 0, H - 1).astype(jnp.int32)
    flat = feat.reshape(B, C, H * W)

    def g(yi, xi):
        idx = yi * W + xi
        idx = jnp.broadcast_to(idx[:, None, :], (B, C, idx.shape[-1]))
        return jnp.take_along_axis(flat, idx, axis=2)

    w00 = ((1 - wy) * (1 - wx))[:, None, :]
    w01 = ((1 - wy) * wx)[:, None, :]
    w10 = (wy * (1 - wx))[:, None, :]
    w11 = (wy * wx)[:, None, :]
    return g(y0, x0) * w00 + g(y0, x1) * w01 + g(y1, x0) * w10 + g(y1, x1) * w11


def _trilinear_sample_3d(feat, uvw):
    """feat: (B, C, D, H, W); uvw: (B, T, 3) in [0,1]. Returns (B, C, T)."""
    B, C, D, H, W = feat.shape
    x = uvw[..., 0] * (W - 1)
    y = uvw[..., 1] * (H - 1)
    z = uvw[..., 2] * (D - 1)
    x0f, y0f, z0f = jnp.floor(x), jnp.floor(y), jnp.floor(z)
    wx, wy, wz = x - x0f, y - y0f, z - z0f
    x0 = jnp.clip(x0f, 0, W - 1).astype(jnp.int32)
    x1 = jnp.clip(x0f + 1, 0, W - 1).astype(jnp.int32)
    y0 = jnp.clip(y0f, 0, H - 1).astype(jnp.int32)
    y1 = jnp.clip(y0f + 1, 0, H - 1).astype(jnp.int32)
    z0 = jnp.clip(z0f, 0, D - 1).astype(jnp.int32)
    z1 = jnp.clip(z0f + 1, 0, D - 1).astype(jnp.int32)
    flat = feat.reshape(B, C, D * H * W)

    def g(zi, yi, xi):
        idx = (zi * H + yi) * W + xi
        idx = jnp.broadcast_to(idx[:, None, :], (B, C, idx.shape[-1]))
        return jnp.take_along_axis(flat, idx, axis=2)

    out = jnp.zeros((B, C, uvw.shape[1]), jnp.float32)
    for zi, wz_ in ((z0, 1 - wz), (z1, wz)):
        for yi, wy_ in ((y0, 1 - wy), (y1, wy)):
            for xi, wx_ in ((x0, 1 - wx), (x1, wx)):
                out = out + g(zi, yi, xi) * (wz_ * wy_ * wx_)[:, None, :]
    return out


def sample_plane_feature(p, c, plane, padding=PADDING):
    xy = normalize_coordinate(p, padding=padding, plane=plane)
    return _bilinear_sample_2d(c, xy)          # (B, C, T)


def sample_grid_feature(p, c, padding=PADDING):
    p_nor = normalize_3d_coordinate(p, padding=padding)
    return _trilinear_sample_3d(c, p_nor)      # (B, C, T)


# ---------------- Pallas kernel: decoder MLP hot path (points on lanes) -------
def decoder_mlp_kernel(pt_ref, c_ref, wp_ref, wc_ref, bproj_ref,
                       w0_ref, b0_ref, w1_ref, b1_ref, wout_ref, bout_ref,
                       out_ref):
    relu = lambda x: jnp.maximum(x, 0.0)
    cdt = wc_ref.dtype                         # MXU operand dtype (f32 or bf16)

    pt = pt_ref[...]                           # (DIM_PAD, tn)  f32, lane-dense
    c = c_ref[...]                             # (C_DIM,  tn)  compute dtype

    # fc_p(p): (32, 8) @ (8, tn) — kept f32 for coordinate precision (tiny).
    net = jnp.dot(wp_ref[...], pt,
                  preferred_element_type=jnp.float32) + bproj_ref[:HIDDEN, :]
    # All 5 fc_c projections fused into one (160, 16) @ (16, tn) MXU matmul.
    proj_c = jnp.dot(wc_ref[...], c,
                     preferred_element_type=jnp.float32) + bproj_ref[HIDDEN:, :]

    for i in range(N_BLOCKS):                  # static unroll
        # net = net + fc_c[i](c)   (slice of the fused projection, f32 resident)
        net = net + proj_c[i * HIDDEN:(i + 1) * HIDDEN, :]
        # ResnetBlockFC: x + fc_1(relu(fc_0(relu(x))))
        h = jnp.dot(w0_ref[i], relu(net).astype(cdt),
                    preferred_element_type=jnp.float32) + b0_ref[i]
        dx = jnp.dot(w1_ref[i], relu(h).astype(cdt),
                     preferred_element_type=jnp.float32) + b1_ref[i]
        net = net + dx

    # fc_out as VPU multiply + XLU sublane reduction (no 1-row MXU matmul):
    # out[t] = sum_h wout[h] * relu(net)[h, t] + bout   -> lane-dense (1, tn).
    out_ref[...] = (jnp.sum(relu(net) * wout_ref[...], axis=0, keepdims=True)
                    + bout_ref[...]).astype(out_ref.dtype)


def _mlp_pallas(pt, c, kp, tn):
    """pt: (B, DIM_PAD, T_pad) f32; c: (B, C_DIM, T_pad) compute dtype."""
    B, dpad, T_pad = pt.shape
    assert dpad == DIM_PAD and T_pad % tn == 0 and tn % 128 == 0
    grid = (B, T_pad // tn)

    def full(shape):
        # Block-invariant (index -> all zeros): stays resident in VMEM.
        return pl.BlockSpec(shape, lambda b, i, s=shape: (0,) * len(s))

    return pl.pallas_call(
        decoder_mlp_kernel,
        out_shape=jax.ShapeDtypeStruct((B, 1, T_pad), jnp.float32),
        grid=grid,
        in_specs=[
            # query slabs: batch squeezed, channels on sublanes, points on lanes
            pl.BlockSpec((None, DIM_PAD, tn), lambda b, i: (b, 0, i)),
            pl.BlockSpec((None, C_DIM, tn), lambda b, i: (b, 0, i)),
            full((HIDDEN, DIM_PAD)),              # fc_p.weight (f32, padded cols)
            full((N_BLOCKS * HIDDEN, C_DIM)),     # fused fc_c[0..4].weight
            full((NPROJ, 1)),                     # fused [fc_p ; fc_c] biases
            full((N_BLOCKS, HIDDEN, HIDDEN)),     # blocks[i].fc_0.weight
            full((N_BLOCKS, HIDDEN, 1)),
            full((N_BLOCKS, HIDDEN, HIDDEN)),     # blocks[i].fc_1.weight
            full((N_BLOCKS, HIDDEN, 1)),
            full((HIDDEN, 1)),                    # fc_out.weight as a column (VPU)
            full((1, 1)),
        ],
        out_specs=pl.BlockSpec((None, 1, tn), lambda b, i: (b, 0, i)),
        compiler_params=pltpu.CompilerParams(
            dimension_semantics=("parallel", "parallel")),
    )(pt, c, kp['wp'], kp['wc'], kp['bproj'], kp['w0'], kp['b0'],
      kp['w1'], kp['b1'], kp['wout'], kp['bout'])


# ---------------- parameter packing for the kernel layout ---------------------
def pack_params(params, compute_dtype=jnp.bfloat16):
    """Native PyTorch-style (out, in) weights -> W@x kernel layout."""
    H, NB = HIDDEN, N_BLOCKS
    wp = jnp.concatenate(
        [params['Wp'], jnp.zeros((H, DIM_PAD - DIM), jnp.float32)], axis=1)
    wc = params['Wc'].reshape(NB * H, C_DIM)
    bproj = jnp.concatenate([params['bp'], params['bc'].reshape(-1)])[:, None]
    return dict(
        wp=wp.astype(jnp.float32),                 # keep coords / fc_p in f32
        wc=wc.astype(compute_dtype),
        bproj=bproj.astype(jnp.float32),
        w0=params['W0'].astype(compute_dtype),
        b0=params['b0'][..., None].astype(jnp.float32),
        w1=params['W1'].astype(compute_dtype),
        b1=params['b1'][..., None].astype(jnp.float32),
        wout=params['Wout'].T.astype(jnp.float32),  # (HIDDEN, 1) column for VPU
        bout=params['bout'][:, None].astype(jnp.float32),
    )


# ---------------- full forward (sampling glue + Pallas MLP) --------------------
def local_decoder_forward(p, c_plane, params, padding=PADDING,
                          tn=1024, compute_dtype=jnp.bfloat16):
    B, T, _ = p.shape
    # Feature sampling produces (B, C_DIM, T) — exactly the kernel's
    # channels-on-sublanes layout, so no big (0,2,1) transpose is needed.
    c = jnp.zeros((B, C_DIM, T), jnp.float32)
    if 'grid' in c_plane:
        c = c + sample_grid_feature(p, c_plane['grid'], padding)
    if 'xz' in c_plane:
        c = c + sample_plane_feature(p, c_plane['xz'], 'xz', padding)
    if 'xy' in c_plane:
        c = c + sample_plane_feature(p, c_plane['xy'], 'xy', padding)
    if 'yz' in c_plane:
        c = c + sample_plane_feature(p, c_plane['yz'], 'yz', padding)

    # Point slab: (B, 3, T) f32, padded to 8 channels (no 13 zero-channel concat).
    pt = jnp.transpose(p, (0, 2, 1)).astype(jnp.float32)
    pt = jnp.pad(pt, ((0, 0), (0, DIM_PAD - DIM), (0, 0)))

    # Lane-tile selection: big tiles amortize per-grid-step overhead, but keep
    # >= 2 grid steps when possible so v7x megacore uses both TensorCores.
    T128 = _ceil_to(T, 128)
    tn_eff = min(tn, T128)
    if B * ((T128 + tn_eff - 1) // tn_eff) < 2 and tn_eff >= 256:
        tn_eff = _ceil_to(tn_eff // 2, 128)
    T_pad = _ceil_to(T, tn_eff)
    if T_pad != T:
        pt = jnp.pad(pt, ((0, 0), (0, 0), (0, T_pad - T)))
        c = jnp.pad(c, ((0, 0), (0, 0), (0, T_pad - T)))

    kp = pack_params(params, compute_dtype)
    out = _mlp_pallas(pt, c.astype(compute_dtype), kp, tn_eff)   # (B, 1, T_pad)
    return out[:, 0, :T]                                         # (B, T)


# ---------------- pure-JAX reference (un-fused, native weights) ----------------
def reference_forward(p, c_plane, params, padding=PADDING):
    relu = lambda x: jnp.maximum(x, 0.0)
    B, T, _ = p.shape
    c = jnp.zeros((B, C_DIM, T), jnp.float32)
    if 'grid' in c_plane:
        c = c + sample_grid_feature(p, c_plane['grid'], padding)
    if 'xz' in c_plane:
        c = c + sample_plane_feature(p, c_plane['xz'], 'xz', padding)
    if 'xy' in c_plane:
        c = c + sample_plane_feature(p, c_plane['xy'], 'xy', padding)
    if 'yz' in c_plane:
        c = c + sample_plane_feature(p, c_plane['yz'], 'yz', padding)
    c = jnp.transpose(c, (0, 2, 1))                                # (B, T, C_DIM)

    net = p @ params['Wp'].T + params['bp']
    for i in range(N_BLOCKS):
        net = net + c @ params['Wc'][i].T + params['bc'][i]
        h = relu(net) @ params['W0'][i].T + params['b0'][i]
        dx = relu(h) @ params['W1'][i].T + params['b1'][i]
        net = net + dx
    out = relu(net) @ params['Wout'].T + params['bout']
    return out[..., 0]


# ---------------- deterministic parameter init (PyTorch (out, in) layout) ------
def init_params(key):
    ks = jax.random.split(key, 10)
    w = lambda k, shape, fan_in: (jax.random.normal(k, shape, jnp.float32)
                                  / jnp.sqrt(float(fan_in)))
    b = lambda k, shape: 0.01 * jax.random.normal(k, shape, jnp.float32)
    # NOTE: real ResnetBlockFC zero-inits fc_1.weight; random init keeps the
    # numerical test non-trivial (shapes match the module's __init__).
    return dict(
        Wp=w(ks[0], (HIDDEN, DIM), DIM),                  bp=b(ks[1], (HIDDEN,)),
        Wc=w(ks[2], (N_BLOCKS, HIDDEN, C_DIM), C_DIM),    bc=b(ks[3], (N_BLOCKS, HIDDEN)),
        W0=w(ks[4], (N_BLOCKS, HIDDEN, HIDDEN), HIDDEN),  b0=b(ks[5], (N_BLOCKS, HIDDEN)),
        W1=w(ks[6], (N_BLOCKS, HIDDEN, HIDDEN), HIDDEN),  b1=b(ks[7], (N_BLOCKS, HIDDEN)),
        Wout=w(ks[8], (1, HIDDEN), HIDDEN),               bout=b(ks[9], (1,)),
    )


if __name__ == "__main__":
    key = jax.random.PRNGKey(0)
    k_p, k_xz, k_xy, k_yz, k_grid, k_params = jax.random.split(key, 6)

    B, T = 2, 1500       # batch, query points (exercises multi lane-tile + pad)
    R, G = 8, 4          # plane resolution, grid resolution

    p = jax.random.uniform(k_p, (B, T, DIM), jnp.float32, minval=-0.5, maxval=0.5)
    c_plane = {
        'xz': jax.random.normal(k_xz, (B, C_DIM, R, R), jnp.float32),
        'xy': jax.random.normal(k_xy, (B, C_DIM, R, R), jnp.float32),
        'yz': jax.random.normal(k_yz, (B, C_DIM, R, R), jnp.float32),
        'grid': jax.random.normal(k_grid, (B, C_DIM, G, G, G), jnp.float32),
    }
    params = init_params(k_params)

    ref = reference_forward(p, c_plane, params)

    fwd_f32 = jax.jit(functools.partial(local_decoder_forward,
                                        compute_dtype=jnp.float32))
    fwd_bf16 = jax.jit(functools.partial(local_decoder_forward,
                                         compute_dtype=jnp.bfloat16))

    # f32 compute path (matches reference up to matmul reassociation)
    out = jax.block_until_ready(fwd_f32(p, c_plane, params))
    assert out.shape == (B, T), out.shape
    assert jnp.allclose(out, ref, atol=1e-2, rtol=1e-2), (
        "f32 max abs diff = %g" % float(jnp.max(jnp.abs(out - ref))))

    # bf16 compute path (default: bf16 operands, f32 accumulation on the MXU)
    out_bf = jax.block_until_ready(fwd_bf16(p, c_plane, params))
    assert out_bf.shape == (B, T), out_bf.shape
    assert jnp.allclose(out_bf, ref, atol=2e-1, rtol=2e-1), (
        "bf16 max abs diff = %g" % float(jnp.max(jnp.abs(out_bf - ref))))

    print("KERNEL_OK")
</pallas_src>

<mosaic_0001>
module attributes {stable_mosaic.version = 11 : i64} {
  func.func @decoder_mlp_kernel(%arg0: i32, %arg1: i32, %arg2: memref<1x8x1024xf32, #tpu.memory_space<vmem>>, %arg3: memref<1x16x1024xf32, #tpu.memory_space<vmem>>, %arg4: memref<32x8xf32, #tpu.memory_space<vmem>>, %arg5: memref<160x16xf32, #tpu.memory_space<vmem>>, %arg6: memref<192x1xf32, #tpu.memory_space<vmem>>, %arg7: memref<5x32x32xf32, #tpu.memory_space<vmem>>, %arg8: memref<5x32x1xf32, #tpu.memory_space<vmem>>, %arg9: memref<5x32x32xf32, #tpu.memory_space<vmem>>, %arg10: memref<5x32x1xf32, #tpu.memory_space<vmem>>, %arg11: memref<32x1xf32, #tpu.memory_space<vmem>>, %arg12: memref<1x1xf32, #tpu.memory_space<vmem>>, %arg13: memref<1x1x1024xf32, #tpu.memory_space<vmem>>) attributes {dimension_semantics = [#tpu.dimension_semantics<parallel>, #tpu.dimension_semantics<parallel>], iteration_bounds = array<i64: 2, 2>, scalar_prefetch = 0 : i64, scratch_operands = 0 : i64, tpu.core_type = #tpu.core_type<tc>, window_params = [{transform_indices = @transform_0, window_bounds = array<i64: 1, 8, 1024>}, {transform_indices = @transform_1, window_bounds = array<i64: 1, 16, 1024>}, {pipeline_mode = #tpu.pipeline_mode<synchronous>, transform_indices = @transform_2, window_bounds = array<i64: 32, 8>}, {pipeline_mode = #tpu.pipeline_mode<synchronous>, transform_indices = @transform_3, window_bounds = array<i64: 160, 16>}, {pipeline_mode = #tpu.pipeline_mode<synchronous>, transform_indices = @transform_4, window_bounds = array<i64: 192, 1>}, {pipeline_mode = #tpu.pipeline_mode<synchronous>, transform_indices = @transform_5, window_bounds = array<i64: 5, 32, 32>}, {pipeline_mode = #tpu.pipeline_mode<synchronous>, transform_indices = @transform_6, window_bounds = array<i64: 5, 32, 1>}, {pipeline_mode = #tpu.pipeline_mode<synchronous>, transform_indices = @transform_7, window_bounds = array<i64: 5, 32, 32>}, {pipeline_mode = #tpu.pipeline_mode<synchronous>, transform_indices = @transform_8, window_bounds = array<i64: 5, 32, 1>}, {pipeline_mode = #tpu.pipeline_mode<synchronous>, transform_indices = @transform_9, window_bounds = array<i64: 32, 1>}, {pipeline_mode = #tpu.pipeline_mode<synchronous>, transform_indices = @transform_10, window_bounds = array<i64: 1, 1>}, {transform_indices = @transform_11, window_bounds = array<i64: 1, 1, 1024>}]} {
    %c0 = arith.constant 0 : index
    %c0_0 = arith.constant 0 : index
    %c0_1 = arith.constant 0 : index
    %0 = vector.load %arg2[%c0, %c0_0, %c0_1] : memref<1x8x1024xf32, #tpu.memory_space<vmem>>, vector<1x8x1024xf32>
    %1 = vector.shape_cast %0 : vector<1x8x1024xf32> to vector<8x1024xf32>
    %c0_2 = arith.constant 0 : index
    %c0_3 = arith.constant 0 : index
    %c0_4 = arith.constant 0 : index
    %2 = vector.load %arg3[%c0_2, %c0_3, %c0_4] : memref<1x16x1024xf32, #tpu.memory_space<vmem>>, vector<1x16x1024xf32>
    %3 = vector.shape_cast %2 : vector<1x16x1024xf32> to vector<16x1024xf32>
    %c0_5 = arith.constant 0 : index
    %c0_6 = arith.constant 0 : index
    %4 = vector.load %arg4[%c0_5, %c0_6] : memref<32x8xf32, #tpu.memory_space<vmem>>, vector<32x8xf32>
    %cst = arith.constant dense<0.000000e+00> : vector<32x1024xf32>
    %5 = tpu.matmul %4, %1, %cst {dimension_numbers = #tpu.dot_dimension_numbers<[1], [0], [0], [1], [0, 0, 1, 1], [], []>} : vector<32x8xf32>, vector<8x1024xf32>, vector<32x1024xf32> -> vector<32x1024xf32>
    %c0_7 = arith.constant 0 : index
    %c0_8 = arith.constant 0 : index
    %6 = vector.load %arg6[%c0_7, %c0_8] : memref<192x1xf32, #tpu.memory_space<vmem>>, vector<32x1xf32>
    %7 = vector.broadcast %6 : vector<32x1xf32> to vector<32x1024xf32>
    %8 = arith.addf %5, %7 : vector<32x1024xf32>
    %c0_9 = arith.constant 0 : index
    %c0_10 = arith.constant 0 : index
    %9 = vector.load %arg5[%c0_9, %c0_10] : memref<160x16xf32, #tpu.memory_space<vmem>>, vector<160x16xf32>
    %cst_11 = arith.constant dense<0.000000e+00> : vector<160x1024xf32>
    %10 = tpu.matmul %9, %3, %cst_11 {dimension_numbers = #tpu.dot_dimension_numbers<[1], [0], [0], [1], [0, 0, 1, 1], [], []>} : vector<160x16xf32>, vector<16x1024xf32>, vector<160x1024xf32> -> vector<160x1024xf32>
    %c32 = arith.constant 32 : index
    %c0_12 = arith.constant 0 : index
    %11 = vector.load %arg6[%c32, %c0_12] : memref<192x1xf32, #tpu.memory_space<vmem>>, vector<160x1xf32>
    %12 = vector.broadcast %11 : vector<160x1xf32> to vector<160x1024xf32>
    %13 = arith.addf %10, %12 : vector<160x1024xf32>
    %14 = vector.extract_strided_slice %13 {offsets = [0, 0], sizes = [32, 1024], strides = [1, 1]} : vector<160x1024xf32> to vector<32x1024xf32>
    %15 = arith.addf %8, %14 : vector<32x1024xf32>
    %c0_13 = arith.constant 0 : index
    %c0_14 = arith.constant 0 : index
    %c0_15 = arith.constant 0 : index
    %16 = vector.load %arg7[%c0_13, %c0_14, %c0_15] : memref<5x32x32xf32, #tpu.memory_space<vmem>>, vector<1x32x32xf32>
    %17 = vector.shape_cast %16 : vector<1x32x32xf32> to vector<32x32xf32>
    %cst_16 = arith.constant 0.000000e+00 : f32
    %18 = vector.broadcast %cst_16 : f32 to vector<32x1024xf32>
    %19 = arith.maximumf %15, %18 : vector<32x1024xf32>
    %cst_17 = arith.constant dense<0.000000e+00> : vector<32x1024xf32>
    %20 = tpu.matmul %17, %19, %cst_17 {dimension_numbers = #tpu.dot_dimension_numbers<[1], [0], [0], [1], [0, 0, 1, 1], [], []>} : vector<32x32xf32>, vector<32x1024xf32>, vector<32x1024xf32> -> vector<32x1024xf32>
    %c0_18 = arith.constant 0 : index
    %c0_19 = arith.constant 0 : index
    %c0_20 = arith.constant 0 : index
    %21 = vector.load %arg8[%c0_18, %c0_19, %c0_20] : memref<5x32x1xf32, #tpu.memory_space<vmem>>, vector<1x32x1xf32>
    %22 = vector.shape_cast %21 : vector<1x32x1xf32> to vector<32x1xf32>
    %23 = vector.broadcast %22 : vector<32x1xf32> to vector<32x1024xf32>
    %24 = arith.addf %20, %23 : vector<32x1024xf32>
    %c0_21 = arith.constant 0 : index
    %c0_22 = arith.constant 0 : index
    %c0_23 = arith.constant 0 : index
    %25 = vector.load %arg9[%c0_21, %c0_22, %c0_23] : memref<5x32x32xf32, #tpu.memory_space<vmem>>, vector<1x32x32xf32>
    %26 = vector.shape_cast %25 : vector<1x32x32xf32> to vector<32x32xf32>
    %cst_24 = arith.constant 0.000000e+00 : f32
    %27 = vector.broadcast %cst_24 : f32 to vector<32x1024xf32>
    %28 = arith.maximumf %24, %27 : vector<32x1024xf32>
    %cst_25 = arith.constant dense<0.000000e+00> : vector<32x1024xf32>
    %29 = tpu.matmul %26, %28, %cst_25 {dimension_numbers = #tpu.dot_dimension_numbers<[1], [0], [0], [1], [0, 0, 1, 1], [], []>} : vector<32x32xf32>, vector<32x1024xf32>, vector<32x1024xf32> -> vector<32x1024xf32>
    %c0_26 = arith.constant 0 : index
    %c0_27 = arith.constant 0 : index
    %c0_28 = arith.constant 0 : index
    %30 = vector.load %arg10[%c0_26, %c0_27, %c0_28] : memref<5x32x1xf32, #tpu.memory_space<vmem>>, vector<1x32x1xf32>
    %31 = vector.shape_cast %30 : vector<1x32x1xf32> to vector<32x1xf32>
    %32 = vector.broadcast %31 : vector<32x1xf32> to vector<32x1024xf32>
    %33 = arith.addf %29, %32 : vector<32x1024xf32>
    %34 = arith.addf %15, %33 : vector<32x1024xf32>
    %35 = vector.extract_strided_slice %13 {offsets = [32, 0], sizes = [32, 1024], strides = [1, 1]} : vector<160x1024xf32> to vector<32x1024xf32>
    %36 = arith.addf %34, %35 : vector<32x1024xf32>
    %c1 = arith.constant 1 : index
    %c0_29 = arith.constant 0 : index
    %c0_30 = arith.constant 0 : index
    %37 = vector.load %arg7[%c1, %c0_29, %c0_30] : memref<5x32x32xf32, #tpu.memory_space<vmem>>, vector<1x32x32xf32>
    %38 = vector.shape_cast %37 : vector<1x32x32xf32> to vector<32x32xf32>
    %cst_31 = arith.constant 0.000000e+00 : f32
    %39 = vector.broadcast %cst_31 : f32 to vector<32x1024xf32>
    %40 = arith.maximumf %36, %39 : vector<32x1024xf32>
    %cst_32 = arith.constant dense<0.000000e+00> : vector<32x1024xf32>
    %41 = tpu.matmul %38, %40, %cst_32 {dimension_numbers = #tpu.dot_dimension_numbers<[1], [0], [0], [1], [0, 0, 1, 1], [], []>} : vector<32x32xf32>, vector<32x1024xf32>, vector<32x1024xf32> -> vector<32x1024xf32>
    %c1_33 = arith.constant 1 : index
    %c0_34 = arith.constant 0 : index
    %c0_35 = arith.constant 0 : index
    %42 = vector.load %arg8[%c1_33, %c0_34, %c0_35] : memref<5x32x1xf32, #tpu.memory_space<vmem>>, vector<1x32x1xf32>
    %43 = vector.shape_cast %42 : vector<1x32x1xf32> to vector<32x1xf32>
    %44 = vector.broadcast %43 : vector<32x1xf32> to vector<32x1024xf32>
    %45 = arith.addf %41, %44 : vector<32x1024xf32>
    %c1_36 = arith.constant 1 : index
    %c0_37 = arith.constant 0 : index
    %c0_38 = arith.constant 0 : index
    %46 = vector.load %arg9[%c1_36, %c0_37, %c0_38] : memref<5x32x32xf32, #tpu.memory_space<vmem>>, vector<1x32x32xf32>
    %47 = vector.shape_cast %46 : vector<1x32x32xf32> to vector<32x32xf32>
    %cst_39 = arith.constant 0.000000e+00 : f32
    %48 = vector.broadcast %cst_39 : f32 to vector<32x1024xf32>
    %49 = arith.maximumf %45, %48 : vector<32x1024xf32>
    %cst_40 = arith.constant dense<0.000000e+00> : vector<32x1024xf32>
    %50 = tpu.matmul %47, %49, %cst_40 {dimension_numbers = #tpu.dot_dimension_numbers<[1], [0], [0], [1], [0, 0, 1, 1], [], []>} : vector<32x32xf32>, vector<32x1024xf32>, vector<32x1024xf32> -> vector<32x1024xf32>
    %c1_41 = arith.constant 1 : index
    %c0_42 = arith.constant 0 : index
    %c0_43 = arith.constant 0 : index
    %51 = vector.load %arg10[%c1_41, %c0_42, %c0_43] : memref<5x32x1xf32, #tpu.memory_space<vmem>>, vector<1x32x1xf32>
    %52 = vector.shape_cast %51 : vector<1x32x1xf32> to vector<32x1xf32>
    %53 = vector.broadcast %52 : vector<32x1xf32> to vector<32x1024xf32>
    %54 = arith.addf %50, %53 : vector<32x1024xf32>
    %55 = arith.addf %36, %54 : vector<32x1024xf32>
    %56 = vector.extract_strided_slice %13 {offsets = [64, 0], sizes = [32, 1024], strides = [1, 1]} : vector<160x1024xf32> to vector<32x1024xf32>
    %57 = arith.addf %55, %56 : vector<32x1024xf32>
    %c2 = arith.constant 2 : index
    %c0_44 = arith.constant 0 : index
    %c0_45 = arith.constant 0 : index
    %58 = vector.load %arg7[%c2, %c0_44, %c0_45] : memref<5x32x32xf32, #tpu.memory_space<vmem>>, vector<1x32x32xf32>
    %59 = vector.shape_cast %58 : vector<1x32x32xf32> to vector<32x32xf32>
    %cst_46 = arith.constant 0.000000e+00 : f32
    %60 = vector.broadcast %cst_46 : f32 to vector<32x1024xf32>
    %61 = arith.maximumf %57, %60 : vector<32x1024xf32>
    %cst_47 = arith.constant dense<0.000000e+00> : vector<32x1024xf32>
    %62 = tpu.matmul %59, %61, %cst_47 {dimension_numbers = #tpu.dot_dimension_numbers<[1], [0], [0], [1], [0, 0, 1, 1], [], []>} : vector<32x32xf32>, vector<32x1024xf32>, vector<32x1024xf32> -> vector<32x1024xf32>
    %c2_48 = arith.constant 2 : index
    %c0_49 = arith.constant 0 : index
    %c0_50 = arith.constant 0 : index
    %63 = vector.load %arg8[%c2_48, %c0_49, %c0_50] : memref<5x32x1xf32, #tpu.memory_space<vmem>>, vector<1x32x1xf32>
    %64 = vector.shape_cast %63 : vector<1x32x1xf32> to vector<32x1xf32>
    %65 = vector.broadcast %64 : vector<32x1xf32> to vector<32x1024xf32>
    %66 = arith.addf %62, %65 : vector<32x1024xf32>
    %c2_51 = arith.constant 2 : index
    %c0_52 = arith.constant 0 : index
    %c0_53 = arith.constant 0 : index
    %67 = vector.load %arg9[%c2_51, %c0_52, %c0_53] : memref<5x32x32xf32, #tpu.memory_space<vmem>>, vector<1x32x32xf32>
    %68 = vector.shape_cast %67 : vector<1x32x32xf32> to vector<32x32xf32>
    %cst_54 = arith.constant 0.000000e+00 : f32
    %69 = vector.broadcast %cst_54 : f32 to vector<32x1024xf32>
    %70 = arith.maximumf %66, %69 : vector<32x1024xf32>
    %cst_55 = arith.constant dense<0.000000e+00> : vector<32x1024xf32>
    %71 = tpu.matmul %68, %70, %cst_55 {dimension_numbers = #tpu.dot_dimension_numbers<[1], [0], [0], [1], [0, 0, 1, 1], [], []>} : vector<32x32xf32>, vector<32x1024xf32>, vector<32x1024xf32> -> vector<32x1024xf32>
    %c2_56 = arith.constant 2 : index
    %c0_57 = arith.constant 0 : index
    %c0_58 = arith.constant 0 : index
    %72 = vector.load %arg10[%c2_56, %c0_57, %c0_58] : memref<5x32x1xf32, #tpu.memory_space<vmem>>, vector<1x32x1xf32>
    %73 = vector.shape_cast %72 : vector<1x32x1xf32> to vector<32x1xf32>
    %74 = vector.broadcast %73 : vector<32x1xf32> to vector<32x1024xf32>
    %75 = arith.addf %71, %74 : vector<32x1024xf32>
    %76 = arith.addf %57, %75 : vector<32x1024xf32>
    %77 = vector.extract_strided_slice %13 {offsets = [96, 0], sizes = [32, 1024], strides = [1, 1]} : vector<160x1024xf32> to vector<32x1024xf32>
    %78 = arith.addf %76, %77 : vector<32x1024xf32>
    %c3 = arith.constant 3 : index
    %c0_59 = arith.constant 0 : index
    %c0_60 = arith.constant 0 : index
    %79 = vector.load %arg7[%c3, %c0_59, %c0_60] : memref<5x32x32xf32, #tpu.memory_space<vmem>>, vector<1x32x32xf32>
    %80 = vector.shape_cast %79 : vector<1x32x32xf32> to vector<32x32xf32>
    %cst_61 = arith.constant 0.000000e+00 : f32
    %81 = vector.broadcast %cst_61 : f32 to vector<32x1024xf32>
    %82 = arith.maximumf %78, %81 : vector<32x1024xf32>
    %cst_62 = arith.constant dense<0.000000e+00> : vector<32x1024xf32>
    %83 = tpu.matmul %80, %82, %cst_62 {dimension_numbers = #tpu.dot_dimension_numbers<[1], [0], [0], [1], [0, 0, 1, 1], [], []>} : vector<32x32xf32>, vector<32x1024xf32>, vector<32x1024xf32> -> vector<32x1024xf32>
    %c3_63 = arith.constant 3 : index
    %c0_64 = arith.constant 0 : index
    %c0_65 = arith.constant 0 : index
    %84 = vector.load %arg8[%c3_63, %c0_64, %c0_65] : memref<5x32x1xf32, #tpu.memory_space<vmem>>, vector<1x32x1xf32>
    %85 = vector.shape_cast %84 : vector<1x32x1xf32> to vector<32x1xf32>
    %86 = vector.broadcast %85 : vector<32x1xf32> to vector<32x1024xf32>
    %87 = arith.addf %83, %86 : vector<32x1024xf32>
    %c3_66 = arith.constant 3 : index
    %c0_67 = arith.constant 0 : index
    %c0_68 = arith.constant 0 : index
    %88 = vector.load %arg9[%c3_66, %c0_67, %c0_68] : memref<5x32x32xf32, #tpu.memory_space<vmem>>, vector<1x32x32xf32>
    %89 = vector.shape_cast %88 : vector<1x32x32xf32> to vector<32x32xf32>
    %cst_69 = arith.constant 0.000000e+00 : f32
    %90 = vector.broadcast %cst_69 : f32 to vector<32x1024xf32>
    %91 = arith.maximumf %87, %90 : vector<32x1024xf32>
    %cst_70 = arith.constant dense<0.000000e+00> : vector<32x1024xf32>
    %92 = tpu.matmul %89, %91, %cst_70 {dimension_numbers = #tpu.dot_dimension_numbers<[1], [0], [0], [1], [0, 0, 1, 1], [], []>} : vector<32x32xf32>, vector<32x1024xf32>, vector<32x1024xf32> -> vector<32x1024xf32>
    %c3_71 = arith.constant 3 : index
    %c0_72 = arith.constant 0 : index
    %c0_73 = arith.constant 0 : index
    %93 = vector.load %arg10[%c3_71, %c0_72, %c0_73] : memref<5x32x1xf32, #tpu.memory_space<vmem>>, vector<1x32x1xf32>
    %94 = vector.shape_cast %93 : vector<1x32x1xf32> to vector<32x1xf32>
    %95 = vector.broadcast %94 : vector<32x1xf32> to vector<32x1024xf32>
    %96 = arith.addf %92, %95 : vector<32x1024xf32>
    %97 = arith.addf %78, %96 : vector<32x1024xf32>
    %98 = vector.extract_strided_slice %13 {offsets = [128, 0], sizes = [32, 1024], strides = [1, 1]} : vector<160x1024xf32> to vector<32x1024xf32>
    %99 = arith.addf %97, %98 : vector<32x1024xf32>
    %c4 = arith.constant 4 : index
    %c0_74 = arith.constant 0 : index
    %c0_75 = arith.constant 0 : index
    %100 = vector.load %arg7[%c4, %c0_74, %c0_75] : memref<5x32x32xf32, #tpu.memory_space<vmem>>, vector<1x32x32xf32>
    %101 = vector.shape_cast %100 : vector<1x32x32xf32> to vector<32x32xf32>
    %cst_76 = arith.constant 0.000000e+00 : f32
    %102 = vector.broadcast %cst_76 : f32 to vector<32x1024xf32>
    %103 = arith.maximumf %99, %102 : vector<32x1024xf32>
    %cst_77 = arith.constant dense<0.000000e+00> : vector<32x1024xf32>
    %104 = tpu.matmul %101, %103, %cst_77 {dimension_numbers = #tpu.dot_dimension_numbers<[1], [0], [0], [1], [0, 0, 1, 1], [], []>} : vector<32x32xf32>, vector<32x1024xf32>, vector<32x1024xf32> -> vector<32x1024xf32>
    %c4_78 = arith.constant 4 : index
    %c0_79 = arith.constant 0 : index
    %c0_80 = arith.constant 0 : index
    %105 = vector.load %arg8[%c4_78, %c0_79, %c0_80] : memref<5x32x1xf32, #tpu.memory_space<vmem>>, vector<1x32x1xf32>
    %106 = vector.shape_cast %105 : vector<1x32x1xf32> to vector<32x1xf32>
    %107 = vector.broadcast %106 : vector<32x1xf32> to vector<32x1024xf32>
    %108 = arith.addf %104, %107 : vector<32x1024xf32>
    %c4_81 = arith.constant 4 : index
    %c0_82 = arith.constant 0 : index
    %c0_83 = arith.constant 0 : index
    %109 = vector.load %arg9[%c4_81, %c0_82, %c0_83] : memref<5x32x32xf32, #tpu.memory_space<vmem>>, vector<1x32x32xf32>
    %110 = vector.shape_cast %109 : vector<1x32x32xf32> to vector<32x32xf32>
    %cst_84 = arith.constant 0.000000e+00 : f32
    %111 = vector.broadcast %cst_84 : f32 to vector<32x1024xf32>
    %112 = arith.maximumf %108, %111 : vector<32x1024xf32>
    %cst_85 = arith.constant dense<0.000000e+00> : vector<32x1024xf32>
    %113 = tpu.matmul %110, %112, %cst_85 {dimension_numbers = #tpu.dot_dimension_numbers<[1], [0], [0], [1], [0, 0, 1, 1], [], []>} : vector<32x32xf32>, vector<32x1024xf32>, vector<32x1024xf32> -> vector<32x1024xf32>
    %c4_86 = arith.constant 4 : index
    %c0_87 = arith.constant 0 : index
    %c0_88 = arith.constant 0 : index
    %114 = vector.load %arg10[%c4_86, %c0_87, %c0_88] : memref<5x32x1xf32, #tpu.memory_space<vmem>>, vector<1x32x1xf32>
    %115 = vector.shape_cast %114 : vector<1x32x1xf32> to vector<32x1xf32>
    %116 = vector.broadcast %115 : vector<32x1xf32> to vector<32x1024xf32>
    %117 = arith.addf %113, %116 : vector<32x1024xf32>
    %118 = arith.addf %99, %117 : vector<32x1024xf32>
    %cst_89 = arith.constant 0.000000e+00 : f32
    %119 = vector.broadcast %cst_89 : f32 to vector<32x1024xf32>
    %120 = arith.maximumf %118, %119 : vector<32x1024xf32>
    %c0_90 = arith.constant 0 : index
    %c0_91 = arith.constant 0 : index
    %121 = vector.load %arg11[%c0_90, %c0_91] : memref<32x1xf32, #tpu.memory_space<vmem>>, vector<32x1xf32>
    %122 = vector.broadcast %121 : vector<32x1xf32> to vector<32x1024xf32>
    %123 = arith.mulf %120, %122 : vector<32x1024xf32>
    %cst_92 = arith.constant dense<0.000000e+00> : vector<1024xf32>
    %124 = vector.multi_reduction <add>, %123, %cst_92 [0] : vector<32x1024xf32> to vector<1024xf32>
    %125 = vector.shape_cast %124 : vector<1024xf32> to vector<1x1024xf32>
    %c0_93 = arith.constant 0 : index
    %c0_94 = arith.constant 0 : index
    %126 = vector.load %arg12[%c0_93, %c0_94] : memref<1x1xf32, #tpu.memory_space<vmem>>, vector<1x1xf32>
    %127 = vector.broadcast %126 : vector<1x1xf32> to vector<1x1024xf32>
    %128 = arith.addf %125, %127 : vector<1x1024xf32>
    %c0_95 = arith.constant 0 : index
    %c0_96 = arith.constant 0 : index
    %c0_97 = arith.constant 0 : index
    %129 = vector.load %arg13[%c0_95, %c0_96, %c0_97] : memref<1x1x1024xf32, #tpu.memory_space<vmem>>, vector<1x1x1024xf32>
    %130 = vector.shape_cast %129 : vector<1x1x1024xf32> to vector<1x1024xf32>
    %131 = vector.shape_cast %128 : vector<1x1024xf32> to vector<1x1x1024xf32>
    tpu.vector_store %arg13[%c0_95, %c0_96, %c0_97], %131 {strides = array<i32>} : memref<1x1x1024xf32, #tpu.memory_space<vmem>>, vector<1x1x1024xf32>,
    return
  }
  func.func @transform_0(%arg0: i32, %arg1: i32) -> (i32, i32, i32) {
    %c0_i32 = arith.constant 0 : i32
    %c0_i32_0 = arith.constant 0 : i32
    return %arg0, %c0_i32, %arg1 : i32, i32, i32
  }
  func.func @transform_1(%arg0: i32, %arg1: i32) -> (i32, i32, i32) {
    %c0_i32 = arith.constant 0 : i32
    %c0_i32_0 = arith.constant 0 : i32
    return %arg0, %c0_i32, %arg1 : i32, i32, i32
  }
  func.func @transform_2(%arg0: i32, %arg1: i32) -> (i32, i32) {
    %c0_i32 = arith.constant 0 : i32
    %c0_i32_0 = arith.constant 0 : i32
    %c0_i32_1 = arith.constant 0 : i32
    return %c0_i32, %c0_i32_0 : i32, i32
  }
  func.func @transform_3(%arg0: i32, %arg1: i32) -> (i32, i32) {
    %c0_i32 = arith.constant 0 : i32
    %c0_i32_0 = arith.constant 0 : i32
    %c0_i32_1 = arith.constant 0 : i32
    return %c0_i32, %c0_i32_0 : i32, i32
  }
  func.func @transform_4(%arg0: i32, %arg1: i32) -> (i32, i32) {
    %c0_i32 = arith.constant 0 : i32
    %c0_i32_0 = arith.constant 0 : i32
    %c0_i32_1 = arith.constant 0 : i32
    return %c0_i32, %c0_i32_0 : i32, i32
  }
  func.func @transform_5(%arg0: i32, %arg1: i32) -> (i32, i32, i32) {
    %c0_i32 = arith.constant 0 : i32
    %c0_i32_0 = arith.constant 0 : i32
    %c0_i32_1 = arith.constant 0 : i32
    %c0_i32_2 = arith.constant 0 : i32
    return %c0_i32, %c0_i32_0, %c0_i32_1 : i32, i32, i32
  }
  func.func @transform_6(%arg0: i32, %arg1: i32) -> (i32, i32, i32) {
    %c0_i32 = arith.constant 0 : i32
    %c0_i32_0 = arith.constant 0 : i32
    %c0_i32_1 = arith.constant 0 : i32
    %c0_i32_2 = arith.constant 0 : i32
    return %c0_i32, %c0_i32_0, %c0_i32_1 : i32, i32, i32
  }
  func.func @transform_7(%arg0: i32, %arg1: i32) -> (i32, i32, i32) {
    %c0_i32 = arith.constant 0 : i32
    %c0_i32_0 = arith.constant 0 : i32
    %c0_i32_1 = arith.constant 0 : i32
    %c0_i32_2 = arith.constant 0 : i32
    return %c0_i32, %c0_i32_0, %c0_i32_1 : i32, i32, i32
  }
  func.func @transform_8(%arg0: i32, %arg1: i32) -> (i32, i32, i32) {
    %c0_i32 = arith.constant 0 : i32
    %c0_i32_0 = arith.constant 0 : i32
    %c0_i32_1 = arith.constant 0 : i32
    %c0_i32_2 = arith.constant 0 : i32
    return %c0_i32, %c0_i32_0, %c0_i32_1 : i32, i32, i32
  }
  func.func @transform_9(%arg0: i32, %arg1: i32) -> (i32, i32) {
    %c0_i32 = arith.constant 0 : i32
    %c0_i32_0 = arith.constant 0 : i32
    %c0_i32_1 = arith.constant 0 : i32
    return %c0_i32, %c0_i32_0 : i32, i32
  }
  func.func @transform_10(%arg0: i32, %arg1: i32) -> (i32, i32) {
    %c0_i32 = arith.constant 0 : i32
    %c0_i32_0 = arith.constant 0 : i32
    %c0_i32_1 = arith.constant 0 : i32
    return %c0_i32, %c0_i32_0 : i32, i32
  }
  func.func @transform_11(%arg0: i32, %arg1: i32) -> (i32, i32, i32) {
    %c0_i32 = arith.constant 0 : i32
    %c0_i32_0 = arith.constant 0 : i32
    return %arg0, %c0_i32, %arg1 : i32, i32, i32
  }
}

</mosaic_0001>

<bundles_post_ra>
// kernel: local_decoder_forward.1
= control target key start
LH: loop header
LB: loop body
LE: loop exit
PB: predicated region body
PF: predicated region fallthrough
CT: control target
= control target key end

     0   :  { %s11730_s0 = inlined_call_operand.vmem [shape: f32[2,8,2048], index: 0, kind: input, shape index: {}]   ;;  %s11731_s1 = inlined_call_operand.vmem [shape: f32[2,16,2048], index: 1, kind: input, shape index: {}]   ;;  %s11732_s2 = inlined_call_operand.vmem [shape: f32[32,8], index: 2, kind: input, shape index: {}]   ;;  %s11733_s3 = inlined_call_operand.vmem [shape: f32[160,16], index: 3, kind: input, shape index: {}]   ;;  %s11734_s4 = inlined_call_operand.vmem [shape: f32[192,1], index: 4, kind: input, shape index: {}]   ;;  %s11735_s5 = inlined_call_operand.vmem [shape: f32[5,32,32], index: 5, kind: input, shape index: {}]   ;;  %s11736_s6 = inlined_call_operand.vmem [shape: f32[5,32,1], index: 6, kind: input, shape index: {}]   ;;  %s11737_s7 = inlined_call_operand.vmem [shape: f32[5,32,32], index: 7, kind: input, shape index: {}]   ;;  %s11738_s8 = inlined_call_operand.vmem [shape: f32[5,32,1], index: 8, kind: input, shape index: {}]   ;;  %s11739_s9 = inlined_call_operand.vmem [shape: f32[32,1], index: 9, kind: input, shape index: {}]   ;;  %s11740_s10 = inlined_call_operand.<no memory space> [shape: f32[1,1], index: 10, kind: input, shape index: {}]   ;;  %s11741_s11 = inlined_call_operand.vmem [shape: f32[2,1,2048], index: 11, kind: output, shape index: {}]  }
   0x1   :  { %v16_v0 = vstv %s11740_s10 }
   0x2   :  { %17 = vst [vmem:[#allocation2] sm:$0x1] %v16_v0 }
   0x3   :  { %s8286_s19 = smov 0   ;;  %s8288_s20 = smov 0  }
   0x4   :  { %s8290_s21 = smov 0   ;;  %s8292_s22 = smov 0  }
   0x5   :  { %s8294_s23 = smov 0   ;;  %s8296_s24 = smov 0  }
   0x6   :  { %s8298_s25 = smov 0  }
   0x7 LB: > { %s32_s10 = sadd.s32 1, %s8210_s23  ;;  %s35_s26 = sadd.s32 1, %s8214_s24  ;;  %s8218_s25 = sphi %s8298_s25, %s23_s25   ;;  %s8214_s24 = sphi %s8296_s24, %s12179_s24   ;;  %s8210_s23 = sphi %s8294_s23, %s12178_s23   ;;  %s8206_s22 = sphi %s8292_s22, %s12177_s22   ;;  %s8202_s21 = sphi %s8290_s21, %s12176_s21   ;;  %s8198_s20 = sphi %s8288_s20, %s12175_s20   ;;  %s8194_s19 = sphi %s8286_s19, %s12174_s19  }
   0x8   : > { %p33_p0 = scmp.ge.s32.totalorder %s32_s10, 2  ;;  %p79_p1 = scmp.ne.s32.totalorder %s8198_s20, %s8194_s19 }
   0x9   : > { %p80_p2 = scmp.eq.s32.totalorder %s8218_s25, 0  ;;  %s72_s30 = sadd.s32 1, %s8198_s20 }
   0xa   : > { %s12181_s10 = smov (%p33_p0, %s32_s10), 0  ;;  %s12183_s26 = smov (!%p33_p0, %s35_s26), %s8214_s24 }
   0xb   : > { %11887 = sst [smem:[#allocation4_spill]] %s12181_s10  ;;  %p81_p3 = por %p80_p2, %p79_p1 }
   0xc   : > { %p37_p4 = scmp.ge.s32.totalorder %s12183_s26, 2  ;;  %s68_s27 = ssub.s32 %s8210_s23, %s12181_s10 }
   0xd   : > { %p6825_p6 = scmp.ge.s32.totalorder %s8218_s25, 4 }
   0xe   : > { %s12185_s26 = smov (%p37_p4, %s12183_s26), 0 }
   0xf   : > { %11888 = sst [smem:[#allocation5_spill]] %s12185_s26  ;;  %s67_s28 = ssub.s32 %s8214_s24, %s12185_s26 }
  0x10   : > { %s69_s29 = sor.u32 %s68_s27, %s67_s28  ;;  %349 = sbr.rel (%p6825_p6) target bundleno = 38 (0x26), region = 52 }
  0x11   : > { %p70_p5 = scmp.eq.s32.totalorder %s69_s29, 0 }
  0x13   : > { %s8337_s12 = scalar_select %p70_p5, %s8198_s20, %s72_s30  }
  0x17   : > { %365 = sbr.rel (!%p81_p3) target bundleno = 38 (0x26), region = 60  ;;  %s367_s13 = sand.u32 (%p81_p3), 1, %s8198_s20  }
  0x18   : > { %s6827_s14 = sshll.u32 (%p81_p3), %s8210_s23, 3  ;;  %s6826_s15 = sshll.u32 (%p81_p3), %s367_s13, 7 }
  0x19   : > { %s6828_s16 = sshll.u32 (%p81_p3), %s8214_s24, 5  ;;  %s369_s28 = scalar_lea.vmem (%p81_p3), [#allocation3], %s6826_s15 }
  0x1a   : > { %s372_s17 = sadd.s32 (%p81_p3), %s6828_s16, %s6827_s14 }
  0x1b   : > { %s6829_s18 = sshll.u32 (%p81_p3), %s372_s17, 3 }
  0x1c   : > { %s8346_s27 = scalar_lea.vmem (%p81_p3), %s11731_s1, %s6829_s18 }
  0x1d   : > { %v387_v1 = vld [vmem:[%s8346_s27] sm:$0xff] (%p81_p3)  ;;  %v389_v2 = vld [vmem:[%s8346_s27 + $0x8] sm:$0xff] (%p81_p3)  ;;  %v391_v3 = vld [vmem:[%s8346_s27 + $0x10] sm:$0xff] (%p81_p3) }
  0x1e   : > { %388 = vst [vmem:[%s369_s28] sm:$0xff] %v387_v1  ;;  %390 = vst [vmem:[%s369_s28 + $0x8] sm:$0xff] %v389_v2  ;;  %v393_v4 = vld [vmem:[%s8346_s27 + $0x18] sm:$0xff]  ;;  %v395_v5 = vld [vmem:[%s8346_s27 + $0x20] sm:$0xff] }
  0x1f   : > { %392 = vst [vmem:[%s369_s28 + $0x10] sm:$0xff] %v391_v3  ;;  %v397_v6 = vld [vmem:[%s8346_s27 + $0x28] sm:$0xff]  ;;  %394 = vst [vmem:[%s369_s28 + $0x18] sm:$0xff] %v393_v4  ;;  %v399_v7 = vld [vmem:[%s8346_s27 + $0x30] sm:$0xff] }
  0x20   : > { %396 = vst [vmem:[%s369_s28 + $0x20] sm:$0xff] %v395_v5  ;;  %398 = vst [vmem:[%s369_s28 + $0x28] sm:$0xff] %v397_v6  ;;  %v401_v8 = vld [vmem:[%s8346_s27 + $0x38] sm:$0xff]  ;;  %v403_v9 = vld [vmem:[%s8346_s27 + $0x80] sm:$0xff] }
  0x21   : > { %400 = vst [vmem:[%s369_s28 + $0x30] sm:$0xff] %v399_v7  ;;  %402 = vst [vmem:[%s369_s28 + $0x38] sm:$0xff] %v401_v8  ;;  %v405_v10 = vld [vmem:[%s8346_s27 + $0x88] sm:$0xff]  ;;  %v407_v11 = vld [vmem:[%s8346_s27 + $0x90] sm:$0xff] }
  0x22   : > { %404 = vst [vmem:[%s369_s28 + $0x40] sm:$0xff] %v403_v9  ;;  %v409_v12 = vld [vmem:[%s8346_s27 + $0x98] sm:$0xff]  ;;  %406 = vst [vmem:[%s369_s28 + $0x48] sm:$0xff] %v405_v10  ;;  %v411_v13 = vld [vmem:[%s8346_s27 + $0xa0] sm:$0xff] }
  0x23   : > { %408 = vst [vmem:[%s369_s28 + $0x50] sm:$0xff] %v407_v11  ;;  %410 = vst [vmem:[%s369_s28 + $0x58] sm:$0xff] %v409_v12  ;;  %v413_v14 = vld [vmem:[%s8346_s27 + $0xa8] sm:$0xff]  ;;  %v415_v15 = vld [vmem:[%s8346_s27 + $0xb0] sm:$0xff] }
  0x24   : > { %412 = vst [vmem:[%s369_s28 + $0x60] sm:$0xff] %v411_v13  ;;  %414 = vst [vmem:[%s369_s28 + $0x68] sm:$0xff] %v413_v14  ;;  %v417_v16 = vld [vmem:[%s8346_s27 + $0xb8] sm:$0xff] }
  0x25   : > { %416 = vst [vmem:[%s369_s28 + $0x70] sm:$0xff] %v415_v15  ;;  %418 = vst [vmem:[%s369_s28 + $0x78] sm:$0xff] %v417_v16 }
  0x26 PF: > { %p6830_p7 = scmp.ge.s32.totalorder %s8218_s25, 1  ;;  %p423_p8 = scmp.lt.s32.totalorder %s8218_s25, 5 }
  0x28   : > { %p424_p9 = pnand %p6830_p7, %p423_p8 }
  0x2a   : > { %427 = sbr.rel (%p424_p9) target bundleno = 2786 (0xae2), region = 83 }
  0x31   : > { %v942_v17 = vld [vmem:[%s11734_s4 + $0x20] sm:$0xff]  ;;  %s6832_s13 = sshll.u32 %s8202_s21, 3  ;;  %p482_p10 = scmp.lt.s32.totalorder %s8206_s22, 1  ;;  %v8220_v19 = vmov 0   ;;  %v943_v20 = vld [vmem:[%s11734_s4 + $0x28] sm:$0xff]  ;;  %v11744_v22 = vmov 0.0  }
  0x32   : > { %v529_v18 = vld [vmem:[%s11734_s4] sm:$0xff]  ;;  %8163 = vset.pattern.permute.xlu1 %v8220_v19  ;;  %8162 = vset.pattern.permute.xlu0 %v8220_v19  ;;  %p484_p11 = scmp.lt.s32.totalorder %s6832_s13, 15  ;;  %v530_v21 = vld [vmem:[%s11734_s4 + $0x8] sm:$0xff]  ;;  %s430_s28 = sand.u32 1, %s8194_s19   ;;  %v532_v23 = vld [vmem:[%s11734_s4 + $0x18] sm:$0xff]  ;;  %vm553_vm0 = vcmask 64512  }
  0x33   : > { %964 = vperm.xlu1 %8163, %v942_v17   ;;  %535 = vperm.xlu0 %8162, %v529_v18   ;;  %s12187_s22 = smov (!%p482_p10, %s8206_s22), 1  ;;  %v531_v24 = vld [vmem:[%s11734_s4 + $0x10] sm:$0xff]  ;;  %v8399_v29 = vld [vmem:[%s11732_s2] sm:$0xff]  ;;  %v945_v30 = vld [vmem:[%s11734_s4 + $0x38] sm:$0xff]  ;;  %vm1062_vm1 = vcmask 130048   ;;  %vm1955_vm2 = vcmask 261120  }
  0x34   : > { %s12189_s13 = smov (!%p484_p11, %s6832_s13), 15  ;;  %630 = vmatprep.mubr.f32.mxu0 %v11744_v22  ;;  %719 = vmatprep.mubr.f32.mxu1 %v11744_v22  ;;  %s6833_s21 = sshll.u32 %s12187_s22, 4  ;;  %v944_v31 = vld [vmem:[%s11734_s4 + $0x30] sm:$0xff]  ;;  %v8416_v34 = vld [vmem:[%s11732_s2 + $0x8] sm:$0xff]  ;;  %v1931_v38 = vld [vmem:[%s11736_s6] sm:$0xff] }
  0x35   : > { %s8383_s18 = sadd.s32 %s6833_s21, %s12189_s13  ;;  %s6831_s13 = sshll.u32 %s430_s28, 7  ;;  %v1932_v37 = vld [vmem:[%s11736_s6 + $0x8] sm:$0xff]  ;;  %v527_v43 = vld [vmem:[%s11732_s2 + $0x10] sm:$0xff]  ;;  %v1934_v44 = vld [vmem:[%s11736_s6 + $0x18] sm:$0xff] }
  0x36   : > { %s6834_s27 = sshll.u32 %s8383_s18, 3  ;;  %s8424_s22 = scalar_lea.vmem [#allocation3], %s6831_s13  ;;  %v1933_v45 = vld [vmem:[%s11736_s6 + $0x10] sm:$0xff]  ;;  %v528_v48 = vld [vmem:[%s11732_s2 + $0x18] sm:$0xff]  ;;  %v947_v49 = vld [vmem:[%s11734_s4 + $0x48] sm:$0xff] }
  0x37   : > { %969 = vperm.xlu1 %8163, %v943_v20   ;;  %540 = vperm.xlu0 %8162, %v530_v21   ;;  %s489_s29 = scalar_lea.vmem %s11730_s0, %s6834_s27  ;;  %v510_v39 = vld [vmem:[%s8424_s22 + $0x8] sm:$0xff]  ;;  %v512_v41 = vld [vmem:[%s8424_s22 + $0x18] sm:$0xff]  ;;  %v509_v51 = vld [vmem:[%s8424_s22] sm:$0xff]  ;;  %s499_s10 = scalar_lea.vmem %s11741_s11, %s8383_s18 }
  0x38   : > { %v502_v25 = vld [vmem:[%s489_s29 + $0x8] sm:$0xff]  ;;  %v504_v26 = vld [vmem:[%s489_s29 + $0x18] sm:$0xff]  ;;  %v501_v27 = vld [vmem:[%s489_s29] sm:$0xff] }
  0x39   : > { %566 = vmatprep.subr.mxu0 %v502_v25  ;;  %655 = vmatprep.subr.mxu1 %v504_v26  ;;  %v503_v28 = vld [vmem:[%s489_s29 + $0x10] sm:$0xff]  ;;  %v506_v32 = vld [vmem:[%s489_s29 + $0x28] sm:$0xff]  ;;  %v508_v33 = vld [vmem:[%s489_s29 + $0x38] sm:$0xff] }
  0x3a   : > { %567 = vmatpush1.msra.mxu0 %v501_v27  ;;  %656 = vmatpush1.msra.mxu1 %v503_v28  ;;  %v505_v35 = vld [vmem:[%s489_s29 + $0x20] sm:$0xff]  ;;  %v507_v36 = vld [vmem:[%s489_s29 + $0x30] sm:$0xff]  ;;  %v2361_v55 = vld [vmem:[%s11738_s8 + $0x8] sm:$0xff] }
  0x3b   : > { %550 = vperm.xlu1 %8163, %v532_v23   ;;  %545 = vperm.xlu0 %8162, %v531_v24   ;;  %v518_v40 = vld [vmem:[%s8424_s22 + $0x48] sm:$0xff]  ;;  %v520_v42 = vld [vmem:[%s8424_s22 + $0x58] sm:$0xff]  ;;  %v517_v52 = vld [vmem:[%s8424_s22 + $0x40] sm:$0xff] }
  0x3c   : > { %6837 = vmatmul.mubr.msk.f32.vlgmr.msra.gmra.mrb[0].mxu0 %vm553_vm0, %v8399_v29  ;;  %6841 = vmatmul.mubr.msk.f32.vlgmr.msra.gmra.mrb[0].mxu1 %vm553_vm0, %v8399_v29  ;;  %v7159_v46 = vpack.c.bf16 %v518_v40, %v510_v39  ;;  %v7163_v47 = vpack.c.bf16 %v520_v42, %v512_v41  ;;  %v946_v50 = vld [vmem:[%s11734_s4 + $0x40] sm:$0xff]  ;;  %v511_v53 = vld [vmem:[%s8424_s22 + $0x10] sm:$0xff]  ;;  %v7161_v57 = vpack.c.bf16 %v517_v52, %v509_v51  ;;  %v514_v59 = vld [vmem:[%s8424_s22 + $0x28] sm:$0xff] }
  0x3d   : > { %636 = vmatprep.mubr.f32.mxu0 %v11744_v22  ;;  %725 = vmatprep.mubr.f32.mxu1 %v11744_v22  ;;  %v519_v54 = vld [vmem:[%s8424_s22 + $0x50] sm:$0xff]  ;;  %v2360_v56 = vld [vmem:[%s11738_s8] sm:$0xff]  ;;  %v522_v60 = vld [vmem:[%s8424_s22 + $0x68] sm:$0xff] }
  0x3e   : > { %744 = vmatprep.subr.mxu0 %v506_v32  ;;  %833 = vmatprep.subr.mxu1 %v508_v33  ;;  %v7165_v58 = vpack.c.bf16 %v519_v54, %v511_v53  ;;  %v516_v61 = vld [vmem:[%s8424_s22 + $0x38] sm:$0xff]  ;;  %v948_v0 = vld [vmem:[%s11734_s4 + $0x50] sm:$0xff]  ;;  %v7167_v1 = vpack.c.bf16 %v522_v60, %v514_v59  ;;  %v6970_v5 = vld [vmem:[%s11736_s6 + $0x28] sm:$0xff] }
  0x3f   : > { %979 = vperm.xlu1 %8163, %v945_v30   ;;  %974 = vperm.xlu0 %8162, %v944_v31   ;;  %v524_v62 = vld [vmem:[%s8424_s22 + $0x78] sm:$0xff]  ;;  %v2362_v4 = vld [vmem:[%s11738_s8 + $0x10] sm:$0xff]  ;;  %v513_v7 = vld [vmem:[%s8424_s22 + $0x20] sm:$0xff] }
  0x40   : > { %6838 = vmatmul.mubr.msk.f32.gmra.mrb[2].mxu0 %vm553_vm0, %v8416_v34  ;;  %6842 = vmatmul.mubr.msk.f32.gmra.mrb[2].mxu1 %vm553_vm0, %v8416_v34  ;;  %v949_v63 = vld [vmem:[%s11734_s4 + $0x58] sm:$0xff]  ;;  %v7171_v2 = vpack.c.bf16 %v524_v62, %v516_v61  ;;  %v6969_v6 = vld [vmem:[%s11736_s6 + $0x20] sm:$0xff]  ;;  %v6971_v13 = vld [vmem:[%s11736_s6 + $0x30] sm:$0xff] }
  0x41   : > { %745 = vmatpush1.msra.mxu0 %v505_v35  ;;  %834 = vmatpush1.msra.mxu1 %v507_v36  ;;  %v2363_v3 = vld [vmem:[%s11738_s8 + $0x18] sm:$0xff]  ;;  %v521_v8 = vld [vmem:[%s8424_s22 + $0x60] sm:$0xff]  ;;  %v8555_v19 = vld [vmem:[%s11733_s3 + $0x10] sm:$0xff] }
  0x42   : > { %642 = vmatprep.mubr.f32.mxu0 %v11744_v22  ;;  %731 = vmatprep.mubr.f32.mxu1 %v11744_v22  ;;  %v515_v9 = vld [vmem:[%s8424_s22 + $0x30] sm:$0xff]  ;;  %v8521_v11 = vld [vmem:[%s11733_s3] sm:$0xff]  ;;  %v7169_v14 = vpack.c.bf16 %v521_v8, %v513_v7  ;;  %v8538_v16 = vld [vmem:[%s11733_s3 + $0x8] sm:$0xff] }
  0x43   : > { %1942 = vperm.xlu1 %8163, %v1932_v37   ;;  %1937 = vperm.xlu0 %8162, %v1931_v38   ;;  %v523_v10 = vld [vmem:[%s8424_s22 + $0x70] sm:$0xff]  ;;  %v951_v17 = vld [vmem:[%s11734_s4 + $0x68] sm:$0xff]  ;;  %v950_v18 = vld [vmem:[%s11734_s4 + $0x60] sm:$0xff] }
  0x44   : > { %6839 = vmatmul.mubr.msk.f32.gmra.mrb[4].mxu0 %vm553_vm0, %v527_v43  ;;  %6843 = vmatmul.mubr.msk.f32.gmra.mrb[4].mxu1 %vm553_vm0, %v527_v43  ;;  %v6972_v12 = vld [vmem:[%s11736_s6 + $0x38] sm:$0xff]  ;;  %v7173_v15 = vpack.c.bf16 %v523_v10, %v515_v9  ;;  %v6994_v20 = vld [vmem:[%s11738_s8 + $0x28] sm:$0xff]  ;;  %v6993_v21 = vld [vmem:[%s11738_s8 + $0x20] sm:$0xff] }
  0x45   : > { %648 = vmatprep.mubr.f32.mxu0 %v11744_v22  ;;  %737 = vmatprep.mubr.f32.mxu1 %v11744_v22  ;;  %v8572_v23 = vld [vmem:[%s11733_s3 + $0x18] sm:$0xff]  ;;  %v952_v25 = vld [vmem:[%s11734_s4 + $0x70] sm:$0xff]  ;;  %v8589_v26 = vld [vmem:[%s11733_s3 + $0x20] sm:$0xff] }
  0x46   : > { %7160 = vmatprep.subr.bf16.mxu0 %v7159_v46  ;;  %7164 = vmatprep.subr.bf16.mxu1 %v7163_v47  ;;  %v953_v24 = vld [vmem:[%s11734_s4 + $0x78] sm:$0xff]  ;;  %v6995_v28 = vld [vmem:[%s11738_s8 + $0x30] sm:$0xff]  ;;  %v7018_v30 = vld [vmem:[%s11736_s6 + $0x48] sm:$0xff] }
  0x47   : > { %1952 = vperm.xlu1 %8163, %v1934_v44   ;;  %1947 = vperm.xlu0 %8162, %v1933_v45   ;;  %v6996_v27 = vld [vmem:[%s11738_s8 + $0x38] sm:$0xff]  ;;  %v7017_v31 = vld [vmem:[%s11736_s6 + $0x40] sm:$0xff]  ;;  %v8623_v32 = vld [vmem:[%s11733_s3 + $0x30] sm:$0xff] }
  0x48   : > { %6840 = vmatmul.mubr.msk.f32.gmra.mrb[6].mxu0 %vm553_vm0, %v528_v48  ;;  %6844 = vmatmul.mubr.msk.f32.gmra.mrb[6].mxu1 %vm553_vm0, %v528_v48  ;;  %v7020_v33 = vld [vmem:[%s11736_s6 + $0x58] sm:$0xff]  ;;  %v955_v36 = vld [vmem:[%s11734_s4 + $0x88] sm:$0xff]  ;;  %v954_v37 = vld [vmem:[%s11734_s4 + $0x80] sm:$0xff] }
  0x49   : > { %808 = vmatprep.mubr.f32.mxu0 %v11744_v22  ;;  %897 = vmatprep.mubr.f32.mxu1 %v11744_v22  ;;  %v8640_v35 = vld [vmem:[%s11733_s3 + $0x38] sm:$0xff]  ;;  %v8657_v38 = vld [vmem:[%s11733_s3 + $0x40] sm:$0xff]  ;;  %v7042_v39 = vld [vmem:[%s11738_s8 + $0x48] sm:$0xff] }
  0x4a   : > { %v7041_v40 = vld [vmem:[%s11738_s8 + $0x40] sm:$0xff]  ;;  %v8674_v41 = vld [vmem:[%s11733_s3 + $0x48] sm:$0xff]  ;;  %v957_v42 = vld [vmem:[%s11734_s4 + $0x98] sm:$0xff] }
  0x4b   : > { %989 = vperm.xlu1 %8163, %v947_v49   ;;  %984 = vperm.xlu0 %8162, %v946_v50   ;;  %v8691_v44 = vld [vmem:[%s11733_s3 + $0x50] sm:$0xff]  ;;  %v7044_v45 = vld [vmem:[%s11738_s8 + $0x58] sm:$0xff]  ;;  %v7065_v49 = vld [vmem:[%s11736_s6 + $0x60] sm:$0xff] }
  0x4c   : > { %6845 = vmatmul.mubr.msk.f32.vlgmr.msra.gmra.mrb[8].mxu0 %vm553_vm0, %v8399_v29  ;;  %6849 = vmatmul.mubr.msk.f32.vlgmr.msra.gmra.mrb[8].mxu1 %vm553_vm0, %v8399_v29  ;;  %v8606_v29 = vld [vmem:[%s11733_s3 + $0x28] sm:$0xff]  ;;  %v7043_v46 = vld [vmem:[%s11738_s8 + $0x50] sm:$0xff]  ;;  %v8708_v47 = vld [vmem:[%s11733_s3 + $0x58] sm:$0xff] }
  0x4d   : > { %814 = vmatprep.mubr.f32.mxu0 %v11744_v22  ;;  %903 = vmatprep.mubr.f32.mxu1 %v11744_v22  ;;  %v8725_v50 = vld [vmem:[%s11733_s3 + $0x60] sm:$0xff]  ;;  %v7068_v51 = vld [vmem:[%s11736_s6 + $0x78] sm:$0xff]  ;;  %v7067_v52 = vld [vmem:[%s11736_s6 + $0x70] sm:$0xff] }
  0x4e   : > { %7162 = vmatpush1.bf16.msra.mxu0 %v7161_v57  ;;  %7166 = vmatpush1.bf16.msra.mxu1 %v7165_v58  ;;  %v8742_v53 = vld [vmem:[%s11733_s3 + $0x68] sm:$0xff]  ;;  %v7089_v58 = vld [vmem:[%s11738_s8 + $0x60] sm:$0xff]  ;;  %v8776_v59 = vld [vmem:[%s11733_s3 + $0x78] sm:$0xff] }
  0x4f   : > { %2371 = vperm.xlu1 %8163, %v2361_v55   ;;  %2366 = vperm.xlu0 %8162, %v2360_v56   ;;  %v959_v54 = vld [vmem:[%s11734_s4 + $0xa8] sm:$0xff]  ;;  %v958_v55 = vld [vmem:[%s11734_s4 + $0xa0] sm:$0xff]  ;;  %v8759_v56 = vld [vmem:[%s11733_s3 + $0x70] sm:$0xff] }
  0x50   : > { %6846 = vmatmul.mubr.msk.f32.gmra.mrb[10].mxu0 %vm553_vm0, %v8416_v34  ;;  %6850 = vmatmul.mubr.msk.f32.gmra.mrb[10].mxu1 %vm553_vm0, %v8416_v34  ;;  %v7019_v34 = vld [vmem:[%s11736_s6 + $0x50] sm:$0xff]  ;;  %v7090_v57 = vld [vmem:[%s11738_s8 + $0x68] sm:$0xff]  ;;  %v961_v60 = vld [vmem:[%s11734_s4 + $0xb8] sm:$0xff] }
  0x51   : > { %820 = vmatprep.mubr.f32.mxu0 %v11744_v22  ;;  %909 = vmatprep.mubr.f32.mxu1 %v11744_v22  ;;  %v960_v61 = vld [vmem:[%s11734_s4 + $0xb0] sm:$0xff]  ;;  %v8793_v62 = vld [vmem:[%s11733_s3 + $0x80] sm:$0xff]  ;;  %v8844_v7 = vld [vmem:[%s11733_s3 + $0x98] sm:$0xff] }
  0x52   : > { %7168 = vmatprep.subr.bf16.mxu0 %v7167_v1  ;;  %7172 = vmatprep.subr.bf16.mxu1 %v7171_v2  ;;  %v8810_v1 = vld [vmem:[%s11733_s3 + $0x88] sm:$0xff]  ;;  %v7137_v9 = vld [vmem:[%s11738_s8 + $0x80] sm:$0xff]  ;;  %v7140_v10 = vld [vmem:[%s11738_s8 + $0x98] sm:$0xff] }
  0x53   : > { %999 = vperm.xlu1 %8163, %v949_v63   ;;  %994 = vperm.xlu0 %8162, %v948_v0   ;;  %v7092_v63 = vld [vmem:[%s11738_s8 + $0x78] sm:$0xff]  ;;  %v7091_v0 = vld [vmem:[%s11738_s8 + $0x70] sm:$0xff]  ;;  %v7114_v2 = vld [vmem:[%s11736_s6 + $0x88] sm:$0xff] }
  0x54   : > { %6847 = vmatmul.mubr.msk.f32.gmra.mrb[12].mxu0 %vm553_vm0, %v527_v43  ;;  %6851 = vmatmul.mubr.msk.f32.gmra.mrb[12].mxu1 %vm553_vm0, %v527_v43  ;;  %v956_v43 = vld [vmem:[%s11734_s4 + $0x90] sm:$0xff]  ;;  %v7138_v8 = vld [vmem:[%s11738_s8 + $0x88] sm:$0xff] }
  0x55   : > { %826 = vmatprep.mubr.f32.mxu0 %v11744_v22  ;;  %915 = vmatprep.mubr.f32.mxu1 %v11744_v22 }
  0x57   : > { %2381 = vperm.xlu1 %8163, %v2363_v3   ;;  %2376 = vperm.xlu0 %8162, %v2362_v4   ;;  %v7113_v3 = vld [vmem:[%s11736_s6 + $0x80] sm:$0xff]  ;;  %v8827_v4 = vld [vmem:[%s11733_s3 + $0x90] sm:$0xff] }
  0x58   : > { %6848 = vmatmul.mubr.msk.f32.gmra.mrb[14].mxu0 %vm553_vm0, %v528_v48  ;;  %6852 = vmatmul.mubr.msk.f32.gmra.mrb[14].mxu1 %vm553_vm0, %v528_v48  ;;  %v7066_v48 = vld [vmem:[%s11736_s6 + $0x68] sm:$0xff] }
  0x59   : > { %1187 = vmatprep.mubr.f32.mxu0 %v11744_v22  ;;  %1372 = vmatprep.mubr.f32.mxu1 %v11744_v22 }
  0x5b   : > { %2865 = vperm.xlu1 %8163, %v6970_v5   ;;  %2860 = vperm.xlu0 %8162, %v6969_v6   ;;  %v7116_v5 = vld [vmem:[%s11736_s6 + $0x98] sm:$0xff]  ;;  %v7115_v6 = vld [vmem:[%s11736_s6 + $0x90] sm:$0xff] }
  0x5c   : > { %6853 = vmatmul.mubr.msk.f32.vlgmr.msra.gmra.mrb[0].mxu0 %vm1062_vm1, %v8521_v11  ;;  %6873 = vmatmul.mubr.msk.f32.vlgmr.msra.gmra.mrb[0].mxu1 %vm1062_vm1, %v8521_v11 }
  0x5d   : > { %1193 = vmatprep.mubr.f32.mxu0 %v11744_v22  ;;  %1378 = vmatprep.mubr.f32.mxu1 %v11744_v22 }
  0x5e   : > { %7170 = vmatpush1.bf16.msra.mxu0 %v7169_v14  ;;  %7174 = vmatpush1.bf16.msra.mxu1 %v7173_v15  ;;  %v6512_v14 = vld [vmem:[%s11739_s9] sm:$0xff]  ;;  %v6514_v15 = vld [vmem:[%s11739_s9 + $0x10] sm:$0xff] }
  0x5f   : > { %2875 = vperm.xlu1 %8163, %v6972_v12   ;;  %2870 = vperm.xlu0 %8162, %v6971_v13   ;;  %v7139_v12 = vld [vmem:[%s11738_s8 + $0x90] sm:$0xff]  ;;  %v6513_v13 = vld [vmem:[%s11739_s9 + $0x8] sm:$0xff] }
  0x60   : > { %6854 = vmatmul.mubr.msk.f32.gmra.mrb[2].mxu0 %vm1062_vm1, %v8538_v16  ;;  %6874 = vmatmul.mubr.msk.f32.gmra.mrb[2].mxu1 %vm1062_vm1, %v8538_v16 }
  0x61   : > { %1199 = vmatprep.mubr.f32.mxu0 %v11744_v22  ;;  %1384 = vmatprep.mubr.f32.mxu1 %v11744_v22 }
  0x63   : > { %1009 = vperm.xlu1 %8163, %v951_v17   ;;  %1004 = vperm.xlu0 %8162, %v950_v18  }
  0x64   : > { %6855 = vmatmul.mubr.msk.f32.gmra.mrb[4].mxu0 %vm1062_vm1, %v8555_v19  ;;  %6875 = vmatmul.mubr.msk.f32.gmra.mrb[4].mxu1 %vm1062_vm1, %v8555_v19 }
  0x65   : > { %1205 = vmatprep.mubr.f32.mxu0 %v11744_v22  ;;  %1390 = vmatprep.mubr.f32.mxu1 %v11744_v22 }
  0x67   : > { %3295 = vperm.xlu1 %8163, %v6994_v20   ;;  %3290 = vperm.xlu0 %8162, %v6993_v21  }
  0x68   : > { %6856 = vmatmul.mubr.msk.f32.gmra.mrb[6].mxu0 %vm1062_vm1, %v8572_v23  ;;  %6876 = vmatmul.mubr.msk.f32.gmra.mrb[6].mxu1 %vm1062_vm1, %v8572_v23 }
  0x69   : > { %1211 = vmatprep.mubr.f32.mxu0 %v11744_v22  ;;  %1396 = vmatprep.mubr.f32.mxu1 %v11744_v22 }
  0x6b   : > { %1019 = vperm.xlu1 %8163, %v953_v24   ;;  %1014 = vperm.xlu0 %8162, %v952_v25  }
  0x6c   : > { %6857 = vmatmul.mubr.msk.f32.gmra.mrb[16].mxu0 %vm1062_vm1, %v8589_v26  ;;  %6877 = vmatmul.mubr.msk.f32.gmra.mrb[16].mxu1 %vm1062_vm1, %v8589_v26 }
  0x6d   : > { %1217 = vmatprep.mubr.f32.mxu0 %v11744_v22  ;;  %1402 = vmatprep.mubr.f32.mxu1 %v11744_v22 }
  0x6f   : > { %3305 = vperm.xlu1 %8163, %v6996_v27   ;;  %3300 = vperm.xlu0 %8162, %v6995_v28  }
  0x70   : > { %6858 = vmatmul.mubr.msk.f32.gmra.mrb[18].mxu0 %vm1062_vm1, %v8606_v29  ;;  %6878 = vmatmul.mubr.msk.f32.gmra.mrb[18].mxu1 %vm1062_vm1, %v8606_v29 }
  0x71   : > { %1223 = vmatprep.mubr.f32.mxu0 %v11744_v22  ;;  %1408 = vmatprep.mubr.f32.mxu1 %v11744_v22 }
  0x73   : > { %3789 = vperm.xlu1 %8163, %v7018_v30   ;;  %3784 = vperm.xlu0 %8162, %v7017_v31  }
  0x74   : > { %6859 = vmatmul.mubr.msk.f32.gmra.mrb[20].mxu0 %vm1062_vm1, %v8623_v32  ;;  %6879 = vmatmul.mubr.msk.f32.gmra.mrb[20].mxu1 %vm1062_vm1, %v8623_v32 }
  0x75   : > { %1229 = vmatprep.mubr.f32.mxu0 %v11744_v22  ;;  %1414 = vmatprep.mubr.f32.mxu1 %v11744_v22 }
  0x77   : > { %3799 = vperm.xlu1 %8163, %v7020_v33   ;;  %3794 = vperm.xlu0 %8162, %v7019_v34  }
  0x78   : > { %6860 = vmatmul.mubr.msk.f32.gmra.mrb[22].mxu0 %vm1062_vm1, %v8640_v35  ;;  %6880 = vmatmul.mubr.msk.f32.gmra.mrb[22].mxu1 %vm1062_vm1, %v8640_v35 }
  0x79   : > { %1235 = vmatprep.mubr.f32.mxu0 %v11744_v22  ;;  %1420 = vmatprep.mubr.f32.mxu1 %v11744_v22 }
  0x7b   : > { %1029 = vperm.xlu1 %8163, %v955_v36   ;;  %1024 = vperm.xlu0 %8162, %v954_v37  }
  0x7c   : > { %6861 = vmatmul.mubr.msk.f32.gmra.mrb[24].mxu0 %vm1062_vm1, %v8657_v38  ;;  %6881 = vmatmul.mubr.msk.f32.gmra.mrb[24].mxu1 %vm1062_vm1, %v8657_v38 }
  0x7d   : > { %1241 = vmatprep.mubr.f32.mxu0 %v11744_v22  ;;  %1426 = vmatprep.mubr.f32.mxu1 %v11744_v22 }
  0x7f   : > { %4219 = vperm.xlu1 %8163, %v7042_v39   ;;  %4214 = vperm.xlu0 %8162, %v7041_v40  }
  0x80   : > { %6862 = vmatmul.mubr.msk.f32.gmra.mrb[26].mxu0 %vm1062_vm1, %v8674_v41  ;;  %6882 = vmatmul.mubr.msk.f32.gmra.mrb[26].mxu1 %vm1062_vm1, %v8674_v41 }
  0x81   : > { %1247 = vmatprep.mubr.f32.mxu0 %v11744_v22  ;;  %1432 = vmatprep.mubr.f32.mxu1 %v11744_v22 }
  0x83   : > { %1039 = vperm.xlu1 %8163, %v957_v42   ;;  %1034 = vperm.xlu0 %8162, %v956_v43  }
  0x84   : > { %6863 = vmatmul.mubr.msk.f32.gmra.mrb[28].mxu0 %vm1062_vm1, %v8691_v44  ;;  %6883 = vmatmul.mubr.msk.f32.gmra.mrb[28].mxu1 %vm1062_vm1, %v8691_v44 }
  0x85   : > { %1253 = vmatprep.mubr.f32.mxu0 %v11744_v22  ;;  %1438 = vmatprep.mubr.f32.mxu1 %v11744_v22 }
  0x87   : > { %4229 = vperm.xlu1 %8163, %v7044_v45   ;;  %4224 = vperm.xlu0 %8162, %v7043_v46  }
  0x88   : > { %6864 = vmatmul.mubr.msk.f32.gmra.mrb[30].mxu0 %vm1062_vm1, %v8708_v47  ;;  %6884 = vmatmul.mubr.msk.f32.gmra.mrb[30].mxu1 %vm1062_vm1, %v8708_v47 }
  0x89   : > { %1259 = vmatprep.mubr.f32.mxu0 %v11744_v22  ;;  %1444 = vmatprep.mubr.f32.mxu1 %v11744_v22 }
  0x8b   : > { %4713 = vperm.xlu1 %8163, %v7066_v48   ;;  %4708 = vperm.xlu0 %8162, %v7065_v49  }
  0x8c   : > { %6865 = vmatmul.mubr.msk.f32.gmra.mrb[32].mxu0 %vm1062_vm1, %v8725_v50  ;;  %6885 = vmatmul.mubr.msk.f32.gmra.mrb[32].mxu1 %vm1062_vm1, %v8725_v50 }
  0x8d   : > { %1265 = vmatprep.mubr.f32.mxu0 %v11744_v22  ;;  %1450 = vmatprep.mubr.f32.mxu1 %v11744_v22 }
  0x8f   : > { %4723 = vperm.xlu1 %8163, %v7068_v51   ;;  %4718 = vperm.xlu0 %8162, %v7067_v52  }
  0x90   : > { %6866 = vmatmul.mubr.msk.f32.gmra.mrb[34].mxu0 %vm1062_vm1, %v8742_v53  ;;  %6886 = vmatmul.mubr.msk.f32.gmra.mrb[34].mxu1 %vm1062_vm1, %v8742_v53 }
  0x91   : > { %1271 = vmatprep.mubr.f32.mxu0 %v11744_v22  ;;  %1456 = vmatprep.mubr.f32.mxu1 %v11744_v22 }
  0x93   : > { %1049 = vperm.xlu1 %8163, %v959_v54   ;;  %1044 = vperm.xlu0 %8162, %v958_v55  }
  0x94   : > { %6867 = vmatmul.mubr.msk.f32.gmra.mrb[36].mxu0 %vm1062_vm1, %v8759_v56  ;;  %6887 = vmatmul.mubr.msk.f32.gmra.mrb[36].mxu1 %vm1062_vm1, %v8759_v56 }
  0x95   : > { %1277 = vmatprep.mubr.f32.mxu0 %v11744_v22  ;;  %1462 = vmatprep.mubr.f32.mxu1 %v11744_v22 }
  0x97   : > { %5143 = vperm.xlu1 %8163, %v7090_v57   ;;  %5138 = vperm.xlu0 %8162, %v7089_v58  }
  0x98   : > { %6868 = vmatmul.mubr.msk.f32.gmra.mrb[38].mxu0 %vm1062_vm1, %v8776_v59  ;;  %6888 = vmatmul.mubr.msk.f32.gmra.mrb[38].mxu1 %vm1062_vm1, %v8776_v59 }
  0x99   : > { %1283 = vmatprep.mubr.f32.mxu0 %v11744_v22  ;;  %1468 = vmatprep.mubr.f32.mxu1 %v11744_v22 }
  0x9b   : > { %1059 = vperm.xlu1 %8163, %v961_v60   ;;  %1054 = vperm.xlu0 %8162, %v960_v61  }
  0x9c   : > { %6869 = vmatmul.mubr.msk.f32.gmra.mrb[40].mxu0 %vm1062_vm1, %v8793_v62  ;;  %6889 = vmatmul.mubr.msk.f32.gmra.mrb[40].mxu1 %vm1062_vm1, %v8793_v62 }
  0x9d   : > { %1289 = vmatprep.mubr.f32.mxu0 %v11744_v22  ;;  %1474 = vmatprep.mubr.f32.mxu1 %v11744_v22 }
  0x9f   : > { %5153 = vperm.xlu1 %8163, %v7092_v63   ;;  %5148 = vperm.xlu0 %8162, %v7091_v0  }
  0xa0   : > { %6870 = vmatmul.mubr.msk.f32.gmra.mrb[42].mxu0 %vm1062_vm1, %v8810_v1  ;;  %6890 = vmatmul.mubr.msk.f32.gmra.mrb[42].mxu1 %vm1062_vm1, %v8810_v1 }
  0xa1   : > { %1295 = vmatprep.mubr.f32.mxu0 %v11744_v22  ;;  %1480 = vmatprep.mubr.f32.mxu1 %v11744_v22 }
  0xa3   : > { %5637 = vperm.xlu1 %8163, %v7114_v2   ;;  %5632 = vperm.xlu0 %8162, %v7113_v3  }
  0xa4   : > { %6871 = vmatmul.mubr.msk.f32.gmra.mrb[44].mxu0 %vm1062_vm1, %v8827_v4  ;;  %6891 = vmatmul.mubr.msk.f32.gmra.mrb[44].mxu1 %vm1062_vm1, %v8827_v4 }
  0xa5   : > { %1301 = vmatprep.mubr.f32.mxu0 %v11744_v22  ;;  %1486 = vmatprep.mubr.f32.mxu1 %v11744_v22 }
  0xa7   : > { %5647 = vperm.xlu1 %8163, %v7116_v5   ;;  %5642 = vperm.xlu0 %8162, %v7115_v6  }
  0xa8   : > { %6872 = vmatmul.mubr.msk.f32.gmra.mrb[46].mxu0 %vm1062_vm1, %v8844_v7  ;;  %6892 = vmatmul.mubr.msk.f32.gmra.mrb[46].mxu1 %vm1062_vm1, %v8844_v7 }
  0xa9   : > { %1557 = vmatprep.mubr.f32.mxu0 %v11744_v22  ;;  %1742 = vmatprep.mubr.f32.mxu1 %v11744_v22 }
  0xab   : > { %6067 = vperm.xlu1 %8163, %v7138_v8   ;;  %6062 = vperm.xlu0 %8162, %v7137_v9  }
  0xac   : > { %6893 = vmatmul.mubr.msk.f32.vlgmr.msra.gmra.mrb[8].mxu0 %vm1062_vm1, %v8521_v11  ;;  %6913 = vmatmul.mubr.msk.f32.vlgmr.msra.gmra.mrb[8].mxu1 %vm1062_vm1, %v8521_v11  ;;  %v6515_v11 = vld [vmem:[%s11739_s9 + $0x18] sm:$0xff] }
  0xad   : > { %1563 = vmatprep.mubr.f32.mxu0 %v11744_v22  ;;  %1748 = vmatprep.mubr.f32.mxu1 %v11744_v22 }
  0xaf   : > { %6077 = vperm.xlu1 %8163, %v7140_v10   ;;  %6072 = vperm.xlu0 %8162, %v7139_v12  }
  0xb0   : > { %6894 = vmatmul.mubr.msk.f32.gmra.mrb[10].mxu0 %vm1062_vm1, %v8538_v16  ;;  %6914 = vmatmul.mubr.msk.f32.gmra.mrb[10].mxu1 %vm1062_vm1, %v8538_v16  ;;  %v6640_v16 = vld [vmem:[#allocation2] sm:$0x1] }
  0xb1   : > { %1569 = vmatprep.mubr.f32.mxu0 %v11744_v22  ;;  %1754 = vmatprep.mubr.f32.mxu1 %v11744_v22 }
  0xb2   : > { %v8996_v17 = vpop.permute.xlu1 %964  ;;  %v8998_v18 = vpop.permute.xlu0 %535 }
  0xb3   : > { %6523 = vperm.xlu1 %8163, %v6513_v13   ;;  %6518 = vperm.xlu0 %8162, %v6512_v14  }
  0xb4   : > { %6895 = vmatmul.mubr.msk.f32.gmra.mrb[12].mxu0 %vm1062_vm1, %v8555_v19  ;;  %6915 = vmatmul.mubr.msk.f32.gmra.mrb[12].mxu1 %vm1062_vm1, %v8555_v19 }
  0xb5   : > { %1575 = vmatprep.mubr.f32.mxu0 %v11744_v22  ;;  %1760 = vmatprep.mubr.f32.mxu1 %v11744_v22 }
  0xb6   : > { %v9000_v19 = vpop.permute.xlu1 %969  ;;  %v9002_v20 = vpop.permute.xlu0 %540 }
  0xb7   : > { %6533 = vperm.xlu1 %8163, %v6515_v11   ;;  %6528 = vperm.xlu0 %8162, %v6514_v15   ;;  %v9018_v28 = vadd.f32 %v9000_v19, %v9002_v20 }
  0xb8   : > { %6896 = vmatmul.mubr.msk.f32.gmra.mrb[14].mxu0 %vm1062_vm1, %v8572_v23  ;;  %6916 = vmatmul.mubr.msk.f32.gmra.mrb[14].mxu1 %vm1062_vm1, %v8572_v23 }
  0xb9   : > { %1581 = vmatprep.mubr.f32.mxu0 %v11744_v22  ;;  %1766 = vmatprep.mubr.f32.mxu1 %v11744_v22 }
  0xba   : > { %v9004_v21 = vpop.permute.xlu1 %550  ;;  %v9006_v23 = vpop.permute.xlu0 %545 }
  0xbb   : > { %6643 = vperm.xlu0 %8162, %v6640_v16  }
  0xbc   : > { %6897 = vmatmul.mubr.msk.f32.gmra.mrb[48].mxu0 %vm1062_vm1, %v8589_v26  ;;  %6917 = vmatmul.mubr.msk.f32.gmra.mrb[48].mxu1 %vm1062_vm1, %v8589_v26 }
  0xbd   : > { %1587 = vmatprep.mubr.f32.mxu0 %v11744_v22  ;;  %1772 = vmatprep.mubr.f32.mxu1 %v11744_v22 }
  0xbe   : > { %v9038_v36 = vpop.permute.xlu0 %974 }
  0xbf   : > { %v9062_v43 = vadd.f32 %v9038_v36, %v9006_v23 }
  0xc0   : > { %6898 = vmatmul.mubr.msk.f32.gmra.mrb[50].mxu0 %vm1062_vm1, %v8606_v29  ;;  %6918 = vmatmul.mubr.msk.f32.gmra.mrb[50].mxu1 %vm1062_vm1, %v8606_v29  ;;  %v9022_v29 = vadd.f32 %v8996_v17, %v8998_v18 }
  0xc1   : > { %1593 = vmatprep.mubr.f32.mxu0 %v11744_v22  ;;  %1778 = vmatprep.mubr.f32.mxu1 %v11744_v22 }
  0xc4   : > { %6899 = vmatmul.mubr.msk.f32.gmra.mrb[52].mxu0 %vm1062_vm1, %v8623_v32  ;;  %6919 = vmatmul.mubr.msk.f32.gmra.mrb[52].mxu1 %vm1062_vm1, %v8623_v32 }
  0xc5   : > { %1599 = vmatprep.mubr.f32.mxu0 %v11744_v22  ;;  %1784 = vmatprep.mubr.f32.mxu1 %v11744_v22 }
  0xc8   : > { %6900 = vmatmul.mubr.msk.f32.gmra.mrb[54].mxu0 %vm1062_vm1, %v8640_v35  ;;  %6920 = vmatmul.mubr.msk.f32.gmra.mrb[54].mxu1 %vm1062_vm1, %v8640_v35  ;;  %v9036_v35 = vpop.permute.xlu1 %979 }
  0xc9   : > { %1605 = vmatprep.mubr.f32.mxu0 %v11744_v22  ;;  %1790 = vmatprep.mubr.f32.mxu1 %v11744_v22  ;;  %v9082_v49 = vadd.f32 %v9036_v35, %v9004_v21 }
  0xcc   : > { %6901 = vmatmul.mubr.msk.f32.gmra.mrb[56].mxu0 %vm1062_vm1, %v8657_v38  ;;  %6921 = vmatmul.mubr.msk.f32.gmra.mrb[56].mxu1 %vm1062_vm1, %v8657_v38 }
  0xcd   : > { %1611 = vmatprep.mubr.f32.mxu0 %v11744_v22  ;;  %1796 = vmatprep.mubr.f32.mxu1 %v11744_v22 }
  0xd0   : > { %6902 = vmatmul.mubr.msk.f32.gmra.mrb[58].mxu0 %vm1062_vm1, %v8674_v41  ;;  %6922 = vmatmul.mubr.msk.f32.gmra.mrb[58].mxu1 %vm1062_vm1, %v8674_v41 }
  0xd1   : > { %1617 = vmatprep.mubr.f32.mxu0 %v11744_v22  ;;  %1802 = vmatprep.mubr.f32.mxu1 %v11744_v22 }
  0xd4   : > { %6903 = vmatmul.mubr.msk.f32.gmra.mrb[60].mxu0 %vm1062_vm1, %v8691_v44  ;;  %6923 = vmatmul.mubr.msk.f32.gmra.mrb[60].mxu1 %vm1062_vm1, %v8691_v44 }
  0xd5   : > { %1623 = vmatprep.mubr.f32.mxu0 %v11744_v22  ;;  %1808 = vmatprep.mubr.f32.mxu1 %v11744_v22 }
  0xd8   : > { %6904 = vmatmul.mubr.msk.f32.gmra.mrb[62].mxu0 %vm1062_vm1, %v8708_v47  ;;  %6924 = vmatmul.mubr.msk.f32.gmra.mrb[62].mxu1 %vm1062_vm1, %v8708_v47 }
  0xd9   : > { %1629 = vmatprep.mubr.f32.mxu0 %v11744_v22  ;;  %1814 = vmatprep.mubr.f32.mxu1 %v11744_v22 }
  0xdc   : > { %6905 = vmatmul.mubr.msk.f32.gmra.mrb[64].mxu0 %vm1062_vm1, %v8725_v50  ;;  %6925 = vmatmul.mubr.msk.f32.gmra.mrb[64].mxu1 %vm1062_vm1, %v8725_v50 }
  0xdd   : > { %1635 = vmatprep.mubr.f32.mxu0 %v11744_v22  ;;  %1820 = vmatprep.mubr.f32.mxu1 %v11744_v22 }
  0xe0   : > { %6906 = vmatmul.mubr.msk.f32.gmra.mrb[66].mxu0 %vm1062_vm1, %v8742_v53  ;;  %6926 = vmatmul.mubr.msk.f32.gmra.mrb[66].mxu1 %vm1062_vm1, %v8742_v53 }
  0xe1   : > { %1641 = vmatprep.mubr.f32.mxu0 %v11744_v22  ;;  %1826 = vmatprep.mubr.f32.mxu1 %v11744_v22 }
  0xe4   : > { %6907 = vmatmul.mubr.msk.f32.gmra.mrb[68].mxu0 %vm1062_vm1, %v8759_v56  ;;  %6927 = vmatmul.mubr.msk.f32.gmra.mrb[68].mxu1 %vm1062_vm1, %v8759_v56 }
  0xe5   : > { %1647 = vmatprep.mubr.f32.mxu0 %v11744_v22  ;;  %1832 = vmatprep.mubr.f32.mxu1 %v11744_v22 }
  0xe8   : > { %6908 = vmatmul.mubr.msk.f32.gmra.mrb[70].mxu0 %vm1062_vm1, %v8776_v59  ;;  %6928 = vmatmul.mubr.msk.f32.gmra.mrb[70].mxu1 %vm1062_vm1, %v8776_v59 }
  0xe9   : > { %1653 = vmatprep.mubr.f32.mxu0 %v11744_v22  ;;  %1838 = vmatprep.mubr.f32.mxu1 %v11744_v22 }
  0xec   : > { %6909 = vmatmul.mubr.msk.f32.gmra.mrb[72].mxu0 %vm1062_vm1, %v8793_v62  ;;  %6929 = vmatmul.mubr.msk.f32.gmra.mrb[72].mxu1 %vm1062_vm1, %v8793_v62 }
  0xed   : > { %1659 = vmatprep.mubr.f32.mxu0 %v11744_v22  ;;  %1844 = vmatprep.mubr.f32.mxu1 %v11744_v22 }
  0xf0   : > { %6910 = vmatmul.mubr.msk.f32.gmra.mrb[74].mxu0 %vm1062_vm1, %v8810_v1  ;;  %6930 = vmatmul.mubr.msk.f32.gmra.mrb[74].mxu1 %vm1062_vm1, %v8810_v1 }
  0xf1   : > { %1665 = vmatprep.mubr.f32.mxu0 %v11744_v22  ;;  %1850 = vmatprep.mubr.f32.mxu1 %v11744_v22 }
  0xf4   : > { %6911 = vmatmul.mubr.msk.f32.gmra.mrb[76].mxu0 %vm1062_vm1, %v8827_v4  ;;  %6931 = vmatmul.mubr.msk.f32.gmra.mrb[76].mxu1 %vm1062_vm1, %v8827_v4 }
  0xf5   : > { %1671 = vmatprep.mubr.f32.mxu0 %v11744_v22  ;;  %1856 = vmatprep.mubr.f32.mxu1 %v11744_v22 }
  0xf8   : > { %6912 = vmatmul.mubr.msk.f32.gmra.mrb[78].mxu0 %vm1062_vm1, %v8844_v7  ;;  %6932 = vmatmul.mubr.msk.f32.gmra.mrb[78].mxu1 %vm1062_vm1, %v8844_v7 }
  0xf9   : > { %2032 = vmatprep.mubr.f32.mxu0 %v11744_v22  ;;  %2121 = vmatprep.mubr.f32.mxu1 %v11744_v22 }
 0x12f   : > { %v9008_v24 = vpop.f32.mrb[0].mxu0  ;;  %v9010_v25 = vpop.f32.mrb[0].mxu1 }
 0x130   : > { %v9012_v26 = vpop.f32.mrb[1].mxu0  ;;  %v9014_v27 = vpop.f32.mrb[1].mxu1  ;;  %v9066_v44 = vadd.f32 %v9022_v29, %v9008_v24  ;;  %v9070_v45 = vadd.f32 %v9022_v29, %v9010_v25 }
 0x131   : > { %v9050_v39 = vadd.f32 %v9022_v29, %v9012_v26  ;;  %v9074_v46 = vadd.f32 %v9022_v29, %v9014_v27 }
 0x132   : > { %11894 = vst [vmem:[#allocation11_spill] sm:$0xff] %v9066_v44  ;;  %11895 = vst [vmem:[#allocation12_spill] sm:$0xff] %v9070_v45  ;;  %v1899_v57 = vmax.f32 %v9066_v44, 0.0  ;;  %v1901_v58 = vmax.f32 %v9070_v45, 0.0 }
 0x133   : > { %v9024_v30 = vpop.f32.mrb[2].mxu0  ;;  %v9026_v31 = vpop.f32.mrb[2].mxu1  ;;  %11892 = vst [vmem:[#allocation9_spill] sm:$0xff] %v9050_v39  ;;  %11896 = vst [vmem:[#allocation13_spill] sm:$0xff] %v9074_v46  ;;  %v1900_v53 = vmax.f32 %v9050_v39, 0.0  ;;  %v1902_v59 = vmax.f32 %v9074_v46, 0.0 }
 0x134   : > { %v9028_v32 = vpop.f32.mrb[3].mxu0  ;;  %v9030_v33 = vpop.f32.mrb[3].mxu1  ;;  %v9042_v37 = vadd.f32 %v9018_v28, %v9024_v30  ;;  %v9054_v40 = vadd.f32 %v9018_v28, %v9026_v31 }
 0x135   : > { %v9034_v34 = vadd.f32 %v9018_v28, %v9028_v32  ;;  %v9046_v38 = vadd.f32 %v9018_v28, %v9030_v33 }
 0x136   : > { %11890 = vst [vmem:[#allocation7_spill] sm:$0xff] %v9042_v37  ;;  %11893 = vst [vmem:[#allocation10_spill] sm:$0xff] %v9054_v40  ;;  %v1907_v51 = vmax.f32 %v9042_v37, 0.0  ;;  %v1909_v54 = vmax.f32 %v9054_v40, 0.0 }
 0x137   : > { %11889 = vst [vmem:[#allocation6_spill] sm:$0xff] %v9034_v34  ;;  %11891 = vst [vmem:[#allocation8_spill] sm:$0xff] %v9046_v38  ;;  %v9056_v41 = vpop.f32.mrb[4].mxu0  ;;  %v9058_v42 = vpop.f32.mrb[4].mxu1  ;;  %v1908_v50 = vmax.f32 %v9034_v34, 0.0  ;;  %v1910_v52 = vmax.f32 %v9046_v38, 0.0 }
 0x138   : > { %v9076_v47 = vpop.f32.mrb[5].mxu0  ;;  %v9078_v48 = vpop.f32.mrb[5].mxu1  ;;  %v9106_v63 = vadd.f32 %v9062_v43, %v9056_v41  ;;  %v7177_v3 = vpack.c.bf16 %v1907_v51, %v1899_v57  ;;  %v7185_v7 = vpack.c.bf16 %v1909_v54, %v1901_v58  ;;  %v9126_v8 = vadd.f32 %v9062_v43, %v9058_v42  ;;  %v9143_v57 = vld [vmem:[%s11735_s5] sm:$0xff]  ;;  %v9151_v58 = vld [vmem:[%s11735_s5 + $0x8] sm:$0xff] }
 0x139   : > { %v9098_v60 = vadd.f32 %v9062_v43, %v9076_v47  ;;  %v7175_v2 = vpack.c.bf16 %v1908_v50, %v1900_v53  ;;  %v9118_v4 = vadd.f32 %v9062_v43, %v9078_v48  ;;  %v7183_v5 = vpack.c.bf16 %v1910_v52, %v1902_v59  ;;  %v9162_v59 = vld [vmem:[%s11735_s5 + $0x10] sm:$0xff] }
 0x13a   : > { %11898 = vst [vmem:[#allocation15_spill] sm:$0xff] %v9106_v63  ;;  %11903 = vst [vmem:[#allocation20_spill] sm:$0xff] %v9126_v8  ;;  %v1915_v14 = vmax.f32 %v9106_v63, 0.0  ;;  %v1917_v51 = vmax.f32 %v9126_v8, 0.0 }
 0x13b   : > { %v9089_v55 = vpop.f32.mrb[6].mxu0  ;;  %v9091_v56 = vpop.f32.mrb[6].mxu1  ;;  %11897 = vst [vmem:[#allocation14_spill] sm:$0xff] %v9098_v60  ;;  %11901 = vst [vmem:[#allocation18_spill] sm:$0xff] %v9118_v4  ;;  %7176 = vmatprep.subr.bf16.mxu0 %v7175_v2  ;;  %v1916_v10 = vmax.f32 %v9098_v60, 0.0  ;;  %7184 = vmatprep.subr.bf16.mxu1 %v7183_v5  ;;  %v1918_v15 = vmax.f32 %v9118_v4, 0.0 }
 0x13c   : > { %v9100_v61 = vpop.f32.mrb[7].mxu0  ;;  %v9102_v62 = vpop.f32.mrb[7].mxu1  ;;  %v9110_v0 = vadd.f32 %v9082_v49, %v9089_v55  ;;  %v9114_v1 = vadd.f32 %v9082_v49, %v9091_v56  ;;  %7178 = vmatpush1.bf16.msra.mxu0 %v7177_v3  ;;  %7186 = vmatpush1.bf16.msra.mxu1 %v7185_v7  ;;  %v9173_v2 = vld [vmem:[%s11735_s5 + $0x18] sm:$0xff] }
 0x13d   : > { %v9122_v6 = vadd.f32 %v9082_v49, %v9100_v61  ;;  %v9133_v13 = vadd.f32 %v9082_v49, %v9102_v62 }
 0x13e   : > { %11899 = vst [vmem:[#allocation16_spill] sm:$0xff] %v9110_v0  ;;  %11900 = vst [vmem:[#allocation17_spill] sm:$0xff] %v9114_v1  ;;  %v1923_v9 = vmax.f32 %v9110_v0, 0.0  ;;  %v1925_v11 = vmax.f32 %v9114_v1, 0.0 }
 0x13f   : > { %11902 = vst [vmem:[#allocation19_spill] sm:$0xff] %v9122_v6  ;;  %v1924_v12 = vmax.f32 %v9122_v6, 0.0  ;;  %11904 = vst [vmem:[#allocation21_spill] sm:$0xff] %v9133_v13  ;;  %v1926_v16 = vmax.f32 %v9133_v13, 0.0 }
 0x140   : > { %v7181_v52 = vpack.c.bf16 %v1923_v9, %v1915_v14  ;;  %v7189_v54 = vpack.c.bf16 %v1925_v11, %v1917_v51 }
 0x141   : > { %v7179_v50 = vpack.c.bf16 %v1924_v12, %v1916_v10  ;;  %v7187_v53 = vpack.c.bf16 %v1926_v16, %v1918_v15 }
 0x143   : > { %7180 = vmatprep.subr.bf16.mxu0 %v7179_v50  ;;  %7188 = vmatprep.subr.bf16.mxu1 %v7187_v53 }
 0x144   : > { %7182 = vmatpush1.bf16.msra.mxu0 %v7181_v52  ;;  %7190 = vmatpush1.bf16.msra.mxu1 %v7189_v54 }
 0x147   : > { %6933 = vmatmul.mubr.msk.f32.vlgmr.msra.gmra.mrb[80].mxu0 %vm1955_vm2, %v9143_v57  ;;  %6937 = vmatmul.mubr.msk.f32.vlgmr.msra.gmra.mrb[80].mxu1 %vm1955_vm2, %v9143_v57 }
 0x148   : > { %2038 = vmatprep.mubr.f32.mxu0 %v11744_v22  ;;  %2127 = vmatprep.mubr.f32.mxu1 %v11744_v22 }
 0x14b   : > { %6934 = vmatmul.mubr.msk.f32.gmra.mrb[82].mxu0 %vm1955_vm2, %v9151_v58  ;;  %6938 = vmatmul.mubr.msk.f32.gmra.mrb[82].mxu1 %vm1955_vm2, %v9151_v58 }
 0x14c   : > { %2044 = vmatprep.mubr.f32.mxu0 %v11744_v22  ;;  %2133 = vmatprep.mubr.f32.mxu1 %v11744_v22 }
 0x14f   : > { %6935 = vmatmul.mubr.msk.f32.gmra.mrb[84].mxu0 %vm1955_vm2, %v9162_v59  ;;  %6939 = vmatmul.mubr.msk.f32.gmra.mrb[84].mxu1 %vm1955_vm2, %v9162_v59 }
 0x150   : > { %2050 = vmatprep.mubr.f32.mxu0 %v11744_v22  ;;  %2139 = vmatprep.mubr.f32.mxu1 %v11744_v22 }
 0x153   : > { %6936 = vmatmul.mubr.msk.f32.gmra.mrb[86].mxu0 %vm1955_vm2, %v9173_v2  ;;  %6940 = vmatmul.mubr.msk.f32.gmra.mrb[86].mxu1 %vm1955_vm2, %v9173_v2 }
 0x154   : > { %2210 = vmatprep.mubr.f32.mxu0 %v11744_v22  ;;  %2299 = vmatprep.mubr.f32.mxu1 %v11744_v22 }
 0x17f   : > { %v9184_v3 = vpop.f32.mrb[8].mxu0  ;;  %v9186_v5 = vpop.f32.mrb[8].mxu1 }
 0x180   : > { %v9188_v7 = vpop.f32.mrb[9].mxu0  ;;  %v9190_v9 = vpop.f32.mrb[9].mxu1  ;;  %v9218_v52 = vadd.f32 %v9022_v29, %v9184_v3 }
 0x181   : > { %v9222_v53 = vadd.f32 %v9022_v29, %v9188_v7  ;;  %v9226_v54 = vadd.f32 %v9022_v29, %v9190_v9 }
 0x182   : > { %11911 = vst [vmem:[#allocation28_spill] sm:$0xff] %v9218_v52  ;;  %v1903_v63 = vmax.f32 %v9218_v52, 0.0 }
 0x183   : > { %v9192_v10 = vpop.f32.mrb[10].mxu0  ;;  %v9194_v12 = vpop.f32.mrb[10].mxu1  ;;  %11912 = vst [vmem:[#allocation29_spill] sm:$0xff] %v9222_v53  ;;  %11913 = vst [vmem:[#allocation30_spill] sm:$0xff] %v9226_v54  ;;  %v1904_v38 = vmax.f32 %v9222_v53, 0.0  ;;  %v1906_v34 = vmax.f32 %v9226_v54, 0.0 }
 0x184   : > { %v9196_v14 = vpop.f32.mrb[11].mxu0  ;;  %v9198_v11 = vpop.f32.mrb[11].mxu1  ;;  %v9210_v50 = vadd.f32 %v9018_v28, %v9192_v10  ;;  %v9214_v51 = vadd.f32 %v9018_v28, %v9194_v12 }
 0x185   : > { %11905 = vst [vmem:[#allocation22_spill] sm:$0xff] %v9196_v14  ;;  %11906 = vst [vmem:[#allocation23_spill] sm:$0xff] %v9198_v11  ;;  %v9202_v15 = vadd.f32 %v9018_v28, %v9196_v14  ;;  %v9206_v16 = vadd.f32 %v9018_v28, %v9198_v11  ;;  %v9234_v28 = vadd.f32 %v9022_v29, %v9186_v5 }
 0x186   : > { %11909 = vst [vmem:[#allocation26_spill] sm:$0xff] %v9210_v50  ;;  %11910 = vst [vmem:[#allocation27_spill] sm:$0xff] %v9214_v51  ;;  %v1911_v60 = vmax.f32 %v9210_v50, 0.0  ;;  %v1913_v8 = vmax.f32 %v9214_v51, 0.0 }
 0x187   : > { %11907 = vst [vmem:[#allocation24_spill] sm:$0xff] %v9202_v15  ;;  %11908 = vst [vmem:[#allocation25_spill] sm:$0xff] %v9206_v16  ;;  %v9228_v22 = vpop.f32.mrb[12].mxu0  ;;  %v9230_v13 = vpop.f32.mrb[12].mxu1  ;;  %v1912_v0 = vmax.f32 %v9202_v15, 0.0  ;;  %v1914_v4 = vmax.f32 %v9206_v16, 0.0 }
 0x188   : > { %11914 = vst [vmem:[#allocation31_spill] sm:$0xff] %v9228_v22  ;;  %11915 = vst [vmem:[#allocation32_spill] sm:$0xff] %v9230_v13  ;;  %v9236_v6 = vpop.f32.mrb[13].mxu0  ;;  %v9238_v1 = vpop.f32.mrb[13].mxu1  ;;  %v1905_v37 = vmax.f32 %v9234_v28, 0.0  ;;  %v9254_v15 = vadd.f32 %v9062_v43, %v9228_v22  ;;  %v7193_v39 = vpack.c.bf16 %v1911_v60, %v1903_v63  ;;  %v9278_v44 = vadd.f32 %v9062_v43, %v9230_v13 }
 0x189   : > { %11916 = vst [vmem:[#allocation33_spill] sm:$0xff] %v9234_v28  ;;  %11917 = vst [vmem:[#allocation34_spill] sm:$0xff] %v9236_v6  ;;  %v9258_v16 = vadd.f32 %v9062_v43, %v9236_v6  ;;  %v9270_v53 = vadd.f32 %v9062_v43, %v9238_v1  ;;  %v7191_v52 = vpack.c.bf16 %v1912_v0, %v1904_v38 }
 0x18a   : > { %11918 = vst [vmem:[#allocation35_spill] sm:$0xff] %v9238_v1  ;;  %11921 = vst [vmem:[#allocation38_spill] sm:$0xff] %v9254_v15  ;;  %v7199_v46 = vpack.c.bf16 %v1914_v4, %v1906_v34  ;;  %v7201_v45 = vpack.c.bf16 %v1913_v8, %v1905_v37  ;;  %v1919_v43 = vmax.f32 %v9254_v15, 0.0 }
 0x18b   : > { %v9247_v29 = vpop.f32.mrb[14].mxu0  ;;  %v9249_v40 = vpop.f32.mrb[14].mxu1  ;;  %11922 = vst [vmem:[#allocation39_spill] sm:$0xff] %v9258_v16  ;;  %11926 = vst [vmem:[#allocation43_spill] sm:$0xff] %v9270_v53  ;;  %7192 = vmatprep.subr.bf16.mxu0 %v7191_v52  ;;  %v1920_v34 = vmax.f32 %v9258_v16, 0.0  ;;  %v1922_v60 = vmax.f32 %v9270_v53, 0.0 }
 0x18c   : > { %11919 = vst [vmem:[#allocation36_spill] sm:$0xff] %v9247_v29  ;;  %11920 = vst [vmem:[#allocation37_spill] sm:$0xff] %v9249_v40  ;;  %v9262_v51 = vadd.f32 %v9082_v49, %v9247_v29  ;;  %v9264_v50 = vpop.f32.mrb[15].mxu0  ;;  %v9266_v54 = vpop.f32.mrb[15].mxu1  ;;  %v9274_v28 = vadd.f32 %v9082_v49, %v9249_v40  ;;  %7200 = vmatprep.subr.bf16.mxu1 %v7199_v46  ;;  %7194 = vmatpush1.bf16.msra.mxu0 %v7193_v39  ;;  %v1921_v46 = vmax.f32 %v9278_v44, 0.0  ;;  %v11931_v39 = vmov 0.0  }
 0x18d   : > { %11924 = vst [vmem:[#allocation41_spill] sm:$0xff] %v9264_v50  ;;  %11925 = vst [vmem:[#allocation42_spill] sm:$0xff] %v9266_v54  ;;  %v9282_v29 = vadd.f32 %v9082_v49, %v9264_v50  ;;  %v9287_v40 = vadd.f32 %v9082_v49, %v9266_v54  ;;  %7202 = vmatpush1.bf16.msra.mxu1 %v7201_v45 }
 0x18e   : > { %11923 = vst [vmem:[#allocation40_spill] sm:$0xff] %v9262_v51  ;;  %11927 = vst [vmem:[#allocation44_spill] sm:$0xff] %v9274_v28  ;;  %v1927_v6 = vmax.f32 %v9262_v51, 0.0  ;;  %v1929_v37 = vmax.f32 %v9274_v28, 0.0 }
 0x18f   : > { %11928 = vst [vmem:[#allocation45_spill] sm:$0xff] %v9278_v44  ;;  %11929 = vst [vmem:[#allocation46_spill] sm:$0xff] %v9282_v29  ;;  %v1928_v38 = vmax.f32 %v9282_v29, 0.0  ;;  %v1930_v63 = vmax.f32 %v9287_v40, 0.0 }
 0x190   : > { %11930 = vst [vmem:[#allocation47_spill] sm:$0xff] %v9287_v40  ;;  %v7197_v4 = vpack.c.bf16 %v1927_v6, %v1919_v43  ;;  %v7205_v8 = vpack.c.bf16 %v1929_v37, %v1921_v46 }
 0x191   : > { %v7195_v0 = vpack.c.bf16 %v1928_v38, %v1920_v34  ;;  %v7203_v49 = vpack.c.bf16 %v1930_v63, %v1922_v60  ;;  %v9323_v34 = vpop.permute.xlu1 %1942 }
 0x193   : > { %7196 = vmatprep.subr.bf16.mxu0 %v7195_v0  ;;  %7204 = vmatprep.subr.bf16.mxu1 %v7203_v49 }
 0x194   : > { %7198 = vmatpush1.bf16.msra.mxu0 %v7197_v4  ;;  %7206 = vmatpush1.bf16.msra.mxu1 %v7205_v8 }
 0x195   : > { %v9335_v54 = vpop.permute.xlu1 %1952 }
 0x197   : > { %6941 = vmatmul.mubr.msk.f32.vlgmr.msra.gmra.mrb[88].mxu0 %vm1955_vm2, %v9143_v57  ;;  %6945 = vmatmul.mubr.msk.f32.vlgmr.msra.gmra.mrb[88].mxu1 %vm1955_vm2, %v9143_v57  ;;  %v9320_v57 = vpop.permute.xlu0 %1937 }
 0x198   : > { %2216 = vmatprep.mubr.f32.mxu0 %v11931_v39  ;;  %2305 = vmatprep.mubr.f32.mxu1 %v11931_v39 }
 0x19b   : > { %6942 = vmatmul.mubr.msk.f32.gmra.mrb[90].mxu0 %vm1955_vm2, %v9151_v58  ;;  %6946 = vmatmul.mubr.msk.f32.gmra.mrb[90].mxu1 %vm1955_vm2, %v9151_v58  ;;  %v9332_v16 = vpop.permute.xlu0 %1947 }
 0x19c   : > { %2222 = vmatprep.mubr.f32.mxu0 %v11931_v39  ;;  %2311 = vmatprep.mubr.f32.mxu1 %v11931_v39 }
 0x19f   : > { %6943 = vmatmul.mubr.msk.f32.gmra.mrb[92].mxu0 %vm1955_vm2, %v9162_v59  ;;  %6947 = vmatmul.mubr.msk.f32.gmra.mrb[92].mxu1 %vm1955_vm2, %v9162_v59 }
 0x1a0   : > { %2228 = vmatprep.mubr.f32.mxu0 %v11931_v39  ;;  %2317 = vmatprep.mubr.f32.mxu1 %v11931_v39 }
 0x1a3   : > { %6944 = vmatmul.mubr.msk.f32.gmra.mrb[94].mxu0 %vm1955_vm2, %v9173_v2  ;;  %6948 = vmatmul.mubr.msk.f32.gmra.mrb[94].mxu1 %vm1955_vm2, %v9173_v2 }
 0x1a4   : > { %2460 = vmatprep.mubr.f32.mxu0 %v11931_v39  ;;  %2549 = vmatprep.mubr.f32.mxu1 %v11931_v39 }
 0x21a   : > { %v2034_v45 = vpop.f32.mrb[80].mxu0  ;;  %v2123_v58 = vpop.f32.mrb[80].mxu1 }
 0x21b   : > { %v2036_v6 = vpop.f32.mrb[81].mxu0  ;;  %v2035_v59 = vadd.f32 %v2034_v45, %v9320_v57  ;;  %v2125_v52 = vpop.f32.mrb[81].mxu1  ;;  %v2124_v43 = vadd.f32 %v2123_v58, %v9320_v57 }
 0x21c   : > { %v2037_v37 = vadd.f32 %v2036_v6, %v9320_v57  ;;  %v2126_v63 = vadd.f32 %v2125_v52, %v9320_v57 }
 0x21d   : > { %v2328_v4 = vmax.f32 %v2035_v59, 0.0  ;;  %v2330_v51 = vmax.f32 %v2124_v43, 0.0 }
 0x21e   : > { %v2040_v38 = vpop.f32.mrb[82].mxu0  ;;  %v2129_v46 = vpop.f32.mrb[82].mxu1  ;;  %v2329_v40 = vmax.f32 %v2037_v37, 0.0  ;;  %v2331_v52 = vmax.f32 %v2126_v63, 0.0 }
 0x21f   : > { %v2041_v2 = vadd.f32 %v2040_v38, %v9323_v34  ;;  %v2042_v60 = vpop.f32.mrb[83].mxu0  ;;  %v2130_v8 = vadd.f32 %v2129_v46, %v9323_v34  ;;  %v2131_v45 = vpop.f32.mrb[83].mxu1 }
 0x220   : > { %v2043_v0 = vadd.f32 %v2042_v60, %v9323_v34  ;;  %v2132_v6 = vadd.f32 %v2131_v45, %v9323_v34 }
 0x221   : > { %v2336_v49 = vmax.f32 %v2041_v2, 0.0  ;;  %v2338_v53 = vmax.f32 %v2130_v8, 0.0 }
 0x222   : > { %v2337_v29 = vmax.f32 %v2043_v0, 0.0  ;;  %v2046_v28 = vpop.f32.mrb[84].mxu0  ;;  %v2339_v15 = vmax.f32 %v2132_v6, 0.0  ;;  %v2135_v60 = vpop.f32.mrb[84].mxu1 }
 0x223   : > { %v7209_v58 = vpack.c.bf16 %v2336_v49, %v2328_v4  ;;  %v2048_v38 = vpop.f32.mrb[85].mxu0  ;;  %v7217_v59 = vpack.c.bf16 %v2338_v53, %v2330_v51  ;;  %v2047_v2 = vadd.f32 %v2046_v28, %v9332_v16  ;;  %v2137_v46 = vpop.f32.mrb[85].mxu1  ;;  %v2136_v43 = vadd.f32 %v2135_v60, %v9332_v16 }
 0x224   : > { %v7207_v44 = vpack.c.bf16 %v2337_v29, %v2329_v40  ;;  %v7215_v37 = vpack.c.bf16 %v2339_v15, %v2331_v52  ;;  %v2049_v0 = vadd.f32 %v2048_v38, %v9332_v16  ;;  %v2138_v40 = vadd.f32 %v2137_v46, %v9332_v16 }
 0x225   : > { %v2344_v53 = vmax.f32 %v2047_v2, 0.0  ;;  %v2346_v38 = vmax.f32 %v2136_v43, 0.0  ;;  %v9347_v2 = vld [vmem:[%s11737_s7] sm:$0xff] }
 0x226   : > { %v2052_v45 = vpop.f32.mrb[86].mxu0  ;;  %7208 = vmatprep.subr.bf16.mxu0 %v7207_v44  ;;  %v2141_v29 = vpop.f32.mrb[86].mxu1  ;;  %7216 = vmatprep.subr.bf16.mxu1 %v7215_v37  ;;  %v2345_v8 = vmax.f32 %v2049_v0, 0.0  ;;  %v9377_v0 = vld [vmem:[%s11737_s7 + $0x18] sm:$0xff] }
 0x227   : > { %v2053_v4 = vadd.f32 %v2052_v45, %v9335_v54  ;;  %v2054_v49 = vpop.f32.mrb[87].mxu0  ;;  %7210 = vmatpush1.bf16.msra.mxu0 %v7209_v58  ;;  %v2142_v15 = vadd.f32 %v2141_v29, %v9335_v54  ;;  %v2143_v63 = vpop.f32.mrb[87].mxu1  ;;  %7218 = vmatpush1.bf16.msra.mxu1 %v7217_v59  ;;  %v2347_v58 = vmax.f32 %v2138_v40, 0.0  ;;  %v9355_v59 = vld [vmem:[%s11737_s7 + $0x8] sm:$0xff] }
 0x228   : > { %v2055_v51 = vadd.f32 %v2054_v49, %v9335_v54  ;;  %v2144_v6 = vadd.f32 %v2143_v63, %v9335_v54 }
 0x229   : > { %v2352_v28 = vmax.f32 %v2053_v4, 0.0  ;;  %v2354_v60 = vmax.f32 %v2142_v15, 0.0 }
 0x22a   : > { %v2353_v44 = vmax.f32 %v2055_v51, 0.0  ;;  %v2355_v46 = vmax.f32 %v2144_v6, 0.0 }
 0x22b   : > { %v7213_v52 = vpack.c.bf16 %v2352_v28, %v2344_v53  ;;  %v7221_v50 = vpack.c.bf16 %v2354_v60, %v2346_v38 }
 0x22c   : > { %v7211_v45 = vpack.c.bf16 %v2353_v44, %v2345_v8  ;;  %v7219_v37 = vpack.c.bf16 %v2355_v46, %v2347_v58 }
 0x22e   : > { %7212 = vmatprep.subr.bf16.mxu0 %v7211_v45  ;;  %7220 = vmatprep.subr.bf16.mxu1 %v7219_v37 }
 0x22f   : > { %7214 = vmatpush1.bf16.msra.mxu0 %v7213_v52  ;;  %7222 = vmatpush1.bf16.msra.mxu1 %v7221_v50  ;;  %v9366_v50 = vld [vmem:[%s11737_s7 + $0x10] sm:$0xff] }
 0x232   : > { %6949 = vmatmul.mubr.msk.f32.vlgmr.msra.gmra.mrb[16].mxu0 %vm1955_vm2, %v9347_v2  ;;  %6953 = vmatmul.mubr.msk.f32.vlgmr.msra.gmra.mrb[16].mxu1 %vm1955_vm2, %v9347_v2 }
 0x233   : > { %2466 = vmatprep.mubr.f32.mxu0 %v11931_v39  ;;  %2555 = vmatprep.mubr.f32.mxu1 %v11931_v39 }
 0x236   : > { %6950 = vmatmul.mubr.msk.f32.gmra.mrb[18].mxu0 %vm1955_vm2, %v9355_v59  ;;  %6954 = vmatmul.mubr.msk.f32.gmra.mrb[18].mxu1 %vm1955_vm2, %v9355_v59 }
 0x237   : > { %2472 = vmatprep.mubr.f32.mxu0 %v11931_v39  ;;  %2561 = vmatprep.mubr.f32.mxu1 %v11931_v39 }
 0x23a   : > { %6951 = vmatmul.mubr.msk.f32.gmra.mrb[20].mxu0 %vm1955_vm2, %v9366_v50  ;;  %6955 = vmatmul.mubr.msk.f32.gmra.mrb[20].mxu1 %vm1955_vm2, %v9366_v50 }
 0x23b   : > { %2478 = vmatprep.mubr.f32.mxu0 %v11931_v39  ;;  %2567 = vmatprep.mubr.f32.mxu1 %v11931_v39 }
 0x23e   : > { %6952 = vmatmul.mubr.msk.f32.gmra.mrb[22].mxu0 %vm1955_vm2, %v9377_v0  ;;  %6956 = vmatmul.mubr.msk.f32.gmra.mrb[22].mxu1 %vm1955_vm2, %v9377_v0 }
 0x23f   : > { %2638 = vmatprep.mubr.f32.mxu0 %v11931_v39  ;;  %2727 = vmatprep.mubr.f32.mxu1 %v11931_v39 }
 0x26a   : > { %v2212_v43 = vpop.f32.mrb[88].mxu0  ;;  %v2301_v4 = vpop.f32.mrb[88].mxu1 }
 0x26b   : > { %v2214_v49 = vpop.f32.mrb[89].mxu0  ;;  %v2303_v40 = vpop.f32.mrb[89].mxu1  ;;  %v2213_v29 = vadd.f32 %v2212_v43, %v9320_v57  ;;  %v2302_v51 = vadd.f32 %v2301_v4, %v9320_v57 }
 0x26c   : > { %v2215_v53 = vadd.f32 %v2214_v49, %v9320_v57  ;;  %v2304_v15 = vadd.f32 %v2303_v40, %v9320_v57 }
 0x26d   : > { %v2332_v60 = vmax.f32 %v2213_v29, 0.0  ;;  %v2334_v46 = vmax.f32 %v2302_v51, 0.0 }
 0x26e   : > { %v2218_v28 = vpop.f32.mrb[90].mxu0  ;;  %v2307_v8 = vpop.f32.mrb[90].mxu1  ;;  %v2333_v37 = vmax.f32 %v2215_v53, 0.0  ;;  %v2335_v1 = vmax.f32 %v2304_v15, 0.0 }
 0x26f   : > { %v2219_v63 = vadd.f32 %v2218_v28, %v9323_v34  ;;  %v2220_v44 = vpop.f32.mrb[91].mxu0  ;;  %v2308_v6 = vadd.f32 %v2307_v8, %v9323_v34  ;;  %v2309_v52 = vpop.f32.mrb[91].mxu1 }
 0x270   : > { %v2221_v38 = vadd.f32 %v2220_v44, %v9323_v34  ;;  %v2310_v45 = vadd.f32 %v2309_v52, %v9323_v34 }
 0x271   : > { %v2340_v58 = vmax.f32 %v2219_v63, 0.0  ;;  %v2342_v43 = vmax.f32 %v2308_v6, 0.0 }
 0x272   : > { %v2341_v4 = vmax.f32 %v2221_v38, 0.0  ;;  %v2224_v49 = vpop.f32.mrb[92].mxu0  ;;  %v2343_v40 = vmax.f32 %v2310_v45, 0.0  ;;  %v2313_v28 = vpop.f32.mrb[92].mxu1 }
 0x273   : > { %v7225_v57 = vpack.c.bf16 %v2340_v58, %v2332_v60  ;;  %v2226_v13 = vpop.f32.mrb[93].mxu0  ;;  %v7233_v22 = vpack.c.bf16 %v2342_v43, %v2334_v46  ;;  %v2315_v8 = vpop.f32.mrb[93].mxu1  ;;  %v2225_v44 = vadd.f32 %v2224_v49, %v9332_v16  ;;  %v2314_v29 = vadd.f32 %v2313_v28, %v9332_v16 }
 0x274   : > { %v7223_v11 = vpack.c.bf16 %v2341_v4, %v2333_v37  ;;  %v7231_v14 = vpack.c.bf16 %v2343_v40, %v2335_v1  ;;  %v2227_v34 = vadd.f32 %v2226_v13, %v9332_v16  ;;  %v2316_v53 = vadd.f32 %v2315_v8, %v9332_v16 }
 0x275   : > { %v2348_v60 = vmax.f32 %v2225_v44, 0.0  ;;  %v2350_v45 = vmax.f32 %v2314_v29, 0.0  ;;  %v9443_v28 = vadd.f32 nan, %v9002_v20  ;;  %v9455_v29 = vpop.permute.xlu1 %989 }
 0x276   : > { %v2230_v51 = vpop.f32.mrb[94].mxu0  ;;  %7224 = vmatprep.subr.bf16.mxu0 %v7223_v11  ;;  %v2319_v63 = vpop.f32.mrb[94].mxu1  ;;  %7232 = vmatprep.subr.bf16.mxu1 %v7231_v14  ;;  %v2349_v11 = vmax.f32 %v2227_v34, 0.0  ;;  %v2351_v37 = vmax.f32 %v2316_v53, 0.0  ;;  %v1383_v34 = vadd.f32 %v9030_v33, %v9000_v19  ;;  %v1387_v33 = vadd.f32 %v9058_v42, %v9038_v36 }
 0x277   : > { %v2231_v15 = vadd.f32 %v2230_v51, %v9335_v54  ;;  %v2232_v6 = vpop.f32.mrb[95].mxu0  ;;  %7226 = vmatpush1.bf16.msra.mxu0 %v7225_v57  ;;  %v2320_v38 = vadd.f32 %v2319_v63, %v9335_v54  ;;  %v2321_v52 = vpop.f32.mrb[95].mxu1  ;;  %7234 = vmatpush1.bf16.msra.mxu1 %v7233_v22  ;;  %v9429_v22 = vadd.f32 nan, %v8998_v18  ;;  %v1202_v63 = vadd.f32 %v9056_v41, %v9038_v36 }
 0x278   : > { %v2233_v1 = vadd.f32 %v2232_v6, %v9335_v54  ;;  %v2322_v13 = vadd.f32 %v2321_v52, %v9335_v54  ;;  %v1190_v54 = vadd.f32 %v9008_v24, %v8996_v17  ;;  %v1196_v24 = vadd.f32 %v9024_v30, %v9000_v19 }
 0x279   : > { %v2356_v58 = vmax.f32 %v2231_v15, 0.0  ;;  %v2358_v46 = vmax.f32 %v2320_v38, 0.0  ;;  %v9466_v15 = vadd.f32 nan, %v9006_v23  ;;  %v1204_v38 = vadd.f32 %v9076_v47, %v9038_v36 }
 0x27a   : > { %v2357_v16 = vmax.f32 %v2233_v1, 0.0  ;;  %v2359_v4 = vmax.f32 %v2322_v13, 0.0  ;;  %v1863_v40 = vadd.f32 %v1190_v54, %v9429_v22  ;;  %v1871_v20 = vadd.f32 %v1196_v24, %v9443_v28 }
 0x27b   : > { %v7229_v43 = vpack.c.bf16 %v2356_v58, %v2348_v60  ;;  %v7237_v14 = vpack.c.bf16 %v2358_v46, %v2350_v45  ;;  %v9478_v52 = vadd.f32 nan, %v9004_v21  ;;  %v1874_v23 = vadd.f32 %v1383_v34, %v9443_v28 }
 0x27c   : > { %v7227_v49 = vpack.c.bf16 %v2357_v16, %v2349_v11  ;;  %v7235_v57 = vpack.c.bf16 %v2359_v4, %v2351_v37  ;;  %v7565_v41 = vadd.f32 %v1871_v20, %v9455_v29  ;;  %v1389_v13 = vadd.f32 %v9078_v48, %v9038_v36  ;;  %v9494_v11 = vpop.permute.xlu1 %2371 }
 0x27d   : > { %v1879_v46 = vadd.f32 %v1202_v63, %v9466_v15  ;;  %v7664_v24 = vadd.f32 %v1874_v23, %v9455_v29 }
 0x27e   : > { %7228 = vmatprep.subr.bf16.mxu0 %v7227_v49  ;;  %7236 = vmatprep.subr.bf16.mxu1 %v7235_v57  ;;  %v1880_v49 = vadd.f32 %v1204_v38, %v9466_v15  ;;  %v1208_v57 = vadd.f32 %v9089_v55, %v9036_v35  ;;  %v1210_v55 = vadd.f32 %v9100_v61, %v9036_v35 }
 0x27f   : > { %7230 = vmatpush1.bf16.msra.mxu0 %v7229_v43  ;;  %7238 = vmatpush1.bf16.msra.mxu1 %v7237_v14  ;;  %v1881_v14 = vadd.f32 %v1387_v33, %v9466_v15  ;;  %v7665_v33 = vadd.f32 %v7664_v24, %v9494_v11 }
 0x280   : > { %v1887_v34 = vadd.f32 %v1208_v57, %v9478_v52  ;;  %v1888_v23 = vadd.f32 %v1210_v55, %v9478_v52 }
 0x282   : > { %6957 = vmatmul.mubr.msk.f32.vlgmr.msra.gmra.mrb[48].mxu0 %vm1955_vm2, %v9347_v2  ;;  %6961 = vmatmul.mubr.msk.f32.vlgmr.msra.gmra.mrb[48].mxu1 %vm1955_vm2, %v9347_v2  ;;  %v1192_v2 = vadd.f32 %v9012_v26, %v8996_v17 }
 0x283   : > { %2644 = vmatprep.mubr.f32.mxu0 %v11931_v39  ;;  %2733 = vmatprep.mubr.f32.mxu1 %v11931_v39 }
 0x284   : > { %v1864_v18 = vadd.f32 %v1192_v2, %v9429_v22 }
 0x286   : > { %6958 = vmatmul.mubr.msk.f32.gmra.mrb[50].mxu0 %vm1955_vm2, %v9355_v59  ;;  %6962 = vmatmul.mubr.msk.f32.gmra.mrb[50].mxu1 %vm1955_vm2, %v9355_v59  ;;  %v1375_v59 = vadd.f32 %v9010_v25, %v8996_v17  ;;  %v1381_v25 = vadd.f32 %v9026_v31, %v9000_v19 }
 0x287   : > { %2650 = vmatprep.mubr.f32.mxu0 %v11931_v39  ;;  %2739 = vmatprep.mubr.f32.mxu1 %v11931_v39 }
 0x288   : > { %v1865_v26 = vadd.f32 %v1375_v59, %v9429_v22  ;;  %v1873_v31 = vadd.f32 %v1381_v25, %v9443_v28  ;;  %v1393_v59 = vadd.f32 %v9091_v56, %v9036_v35 }
 0x28a   : > { %6959 = vmatmul.mubr.msk.f32.gmra.mrb[52].mxu0 %vm1955_vm2, %v9366_v50  ;;  %6963 = vmatmul.mubr.msk.f32.gmra.mrb[52].mxu1 %vm1955_vm2, %v9366_v50  ;;  %v1377_v50 = vadd.f32 %v9014_v27, %v8996_v17  ;;  %v1198_v27 = vadd.f32 %v9028_v32, %v9000_v19  ;;  %v7661_v21 = vadd.f32 %v1873_v31, %v9455_v29 }
 0x28b   : > { %2656 = vmatprep.mubr.f32.mxu0 %v11931_v39  ;;  %2745 = vmatprep.mubr.f32.mxu1 %v11931_v39  ;;  %v1889_v63 = vadd.f32 %v1393_v59, %v9478_v52 }
 0x28c   : > { %v1866_v8 = vadd.f32 %v1377_v50, %v9429_v22  ;;  %v1872_v32 = vadd.f32 %v1198_v27, %v9443_v28  ;;  %v7662_v25 = vadd.f32 %v7661_v21, %v9494_v11 }
 0x28e   : > { %6960 = vmatmul.mubr.msk.f32.gmra.mrb[54].mxu0 %vm1955_vm2, %v9377_v0  ;;  %6964 = vmatmul.mubr.msk.f32.gmra.mrb[54].mxu1 %vm1955_vm2, %v9377_v0  ;;  %v9439_v0 = vpop.permute.xlu0 %984  ;;  %v7568_v43 = vadd.f32 %v1872_v32, %v9455_v29  ;;  %v9546_v32 = vpop.permute.xlu1 %999 }
 0x28f   : > { %2954 = vmatprep.mubr.f32.mxu0 %v11931_v39  ;;  %3043 = vmatprep.mubr.f32.mxu1 %v11931_v39  ;;  %v7559_v44 = vadd.f32 %v1863_v40, %v9439_v0  ;;  %v7562_v30 = vadd.f32 %v1864_v18, %v9439_v0  ;;  %v7655_v53 = vadd.f32 %v1865_v26, %v9439_v0 }
 0x290   : > { %v7658_v6 = vadd.f32 %v1866_v8, %v9439_v0  ;;  %v7566_v18 = vadd.f32 %v7565_v41, %v9494_v11  ;;  %v1882_v26 = vadd.f32 %v1389_v13, %v9466_v15 }
 0x292   : > { %v9461_v51 = vpop.permute.xlu0 %2366 }
 0x293   : > { %v7560_v1 = vadd.f32 %v7559_v44, %v9461_v51  ;;  %v7563_v58 = vadd.f32 %v7562_v30, %v9461_v51  ;;  %v7656_v47 = vadd.f32 %v7655_v53, %v9461_v51  ;;  %v7659_v48 = vadd.f32 %v7658_v6, %v9461_v51 }
 0x294   : > { %v7569_v44 = vadd.f32 %v7568_v43, %v9494_v11  ;;  %v1395_v30 = vadd.f32 %v9102_v62, %v9036_v35 }
 0x296   : > { %v9504_v4 = vpop.permute.xlu0 %994 }
 0x297   : > { %v7571_v20 = vadd.f32 %v1879_v46, %v9504_v4  ;;  %v7667_v53 = vadd.f32 %v1881_v14, %v9504_v4  ;;  %v7574_v62 = vadd.f32 %v1880_v49, %v9504_v4  ;;  %v7670_v41 = vadd.f32 %v1882_v26, %v9504_v4 }
 0x298   : > { %v1890_v46 = vadd.f32 %v1395_v30, %v9478_v52  ;;  %v7577_v14 = vadd.f32 %v1887_v34, %v9546_v32 }
 0x305   : > { %v9481_v60 = vpop.f32.mrb[16].mxu0  ;;  %v9497_v16 = vpop.f32.mrb[16].mxu1 }
 0x306   : > { %v9488_v42 = vadd.f32 %v7560_v1, %v9481_v60  ;;  %v9491_v45 = vpop.f32.mrb[17].mxu0  ;;  %v9511_v54 = vadd.f32 %v7656_v47, %v9497_v16  ;;  %v9513_v2 = vpop.f32.mrb[17].mxu1 }
 0x307   : > { %v9500_v37 = vadd.f32 %v7563_v58, %v9491_v45  ;;  %v9518_v50 = vadd.f32 %v7659_v48, %v9513_v2  ;;  %v9556_v1 = vpop.permute.xlu0 %2376 }
 0x308   : > { %11932 = vst [vmem:[#allocation48_spill] sm:$0xff] %v9488_v42  ;;  %11934 = vst [vmem:[#allocation50_spill] sm:$0xff] %v9511_v54  ;;  %v7572_v47 = vadd.f32 %v7571_v20, %v9556_v1  ;;  %v7668_v48 = vadd.f32 %v7667_v53, %v9556_v1  ;;  %v7575_v57 = vadd.f32 %v7574_v62, %v9556_v1 }
 0x309   : > { %11933 = vst [vmem:[#allocation49_spill] sm:$0xff] %v9500_v37  ;;  %11935 = vst [vmem:[#allocation51_spill] sm:$0xff] %v9518_v50  ;;  %v9520_v40 = vpop.f32.mrb[18].mxu0  ;;  %v9533_v27 = vpop.f32.mrb[18].mxu1  ;;  %v7671_v26 = vadd.f32 %v7670_v41, %v9556_v1  ;;  %v2822_v41 = vmax.f32 %v9500_v37, 0.0 }
 0x30a   : > { %v9528_v8 = vpop.f32.mrb[19].mxu0  ;;  %v9531_v56 = vadd.f32 %v7566_v18, %v9520_v40  ;;  %v9541_v61 = vadd.f32 %v7662_v25, %v9533_v27  ;;  %v9543_v31 = vpop.f32.mrb[19].mxu1  ;;  %v7673_v18 = vadd.f32 %v1889_v63, %v9546_v32  ;;  %v7580_v25 = vadd.f32 %v1888_v23, %v9546_v32 }
 0x30b   : > { %v9550_v6 = vadd.f32 %v7569_v44, %v9528_v8  ;;  %v9563_v13 = vadd.f32 %v7665_v33, %v9543_v31  ;;  %v9587_v44 = vpop.permute.xlu1 %2381  ;;  %v7676_v23 = vadd.f32 %v1890_v46, %v9546_v32 }
 0x30c   : > { %11936 = vst [vmem:[#allocation52_spill] sm:$0xff] %v9531_v56  ;;  %11937 = vst [vmem:[#allocation53_spill] sm:$0xff] %v9541_v61  ;;  %v7578_v33 = vadd.f32 %v7577_v14, %v9587_v44  ;;  %v2821_v14 = vmax.f32 %v9488_v42, 0.0 }
 0x30d   : > { %11938 = vst [vmem:[#allocation54_spill] sm:$0xff] %v9550_v6  ;;  %v9553_v38 = vpop.f32.mrb[20].mxu0  ;;  %11940 = vst [vmem:[#allocation56_spill] sm:$0xff] %v9563_v13  ;;  %v9566_v21 = vpop.f32.mrb[20].mxu1  ;;  %v2830_v20 = vmax.f32 %v9550_v6, 0.0  ;;  %v2832_v53 = vmax.f32 %v9563_v13, 0.0 }
 0x30e   : > { %v9559_v58 = vpop.f32.mrb[21].mxu0  ;;  %v9570_v43 = vpop.f32.mrb[21].mxu1  ;;  %v9574_v49 = vadd.f32 %v7572_v47, %v9553_v38  ;;  %v9581_v24 = vadd.f32 %v7668_v48, %v9566_v21  ;;  %v2829_v47 = vmax.f32 %v9531_v56, 0.0  ;;  %v2831_v48 = vmax.f32 %v9541_v61, 0.0 }
 0x30f   : > { %11939 = vst [vmem:[#allocation55_spill] sm:$0xff] %v9559_v58  ;;  %11941 = vst [vmem:[#allocation57_spill] sm:$0xff] %v9570_v43  ;;  %v9591_v34 = vadd.f32 %v7575_v57, %v9559_v58  ;;  %v9597_v63 = vadd.f32 %v7671_v26, %v9570_v43  ;;  %v7674_v57 = vadd.f32 %v7673_v18, %v9587_v44  ;;  %v2824_v6 = vmax.f32 %v9518_v50, 0.0 }
 0x310   : > { %11942 = vst [vmem:[#allocation58_spill] sm:$0xff] %v9574_v49  ;;  %11943 = vst [vmem:[#allocation59_spill] sm:$0xff] %v9581_v24  ;;  %v7581_v26 = vadd.f32 %v7580_v25, %v9587_v44  ;;  %v2823_v43 = vmax.f32 %v9511_v54, 0.0  ;;  %v7239_v37 = vpack.c.bf16 %v2830_v20, %v2822_v41  ;;  %v7677_v61 = vadd.f32 %v7676_v23, %v9587_v44 }
 0x311   : > { %v9577_v59 = vpop.f32.mrb[22].mxu0  ;;  %11944 = vst [vmem:[#allocation60_spill] sm:$0xff] %v9591_v34  ;;  %v9593_v30 = vpop.f32.mrb[22].mxu1  ;;  %11945 = vst [vmem:[#allocation61_spill] sm:$0xff] %v9597_v63  ;;  %v7247_v56 = vpack.c.bf16 %v2832_v53, %v2824_v6  ;;  %v7241_v58 = vpack.c.bf16 %v2829_v47, %v2821_v14  ;;  %v2838_v54 = vmax.f32 %v9591_v34, 0.0  ;;  %v2839_v53 = vmax.f32 %v9581_v24, 0.0 }
 0x312   : > { %v9584_v55 = vpop.f32.mrb[23].mxu0  ;;  %v9600_v62 = vpop.f32.mrb[23].mxu1  ;;  %v9609_v13 = vadd.f32 %v7578_v33, %v9577_v59  ;;  %v9615_v46 = vadd.f32 %v7674_v57, %v9593_v30  ;;  %v7249_v18 = vpack.c.bf16 %v2831_v48, %v2823_v43  ;;  %7240 = vmatprep.subr.bf16.mxu0 %v7239_v37  ;;  %v2837_v43 = vmax.f32 %v9574_v49, 0.0  ;;  %v9656_v47 = vld [vmem:[%s11735_s5 + $0x30] sm:$0xff]  ;;  %v9667_v48 = vld [vmem:[%s11735_s5 + $0x38] sm:$0xff] }
 0x313   : > { %v9619_v50 = vadd.f32 %v7581_v26, %v9584_v55  ;;  %7248 = vmatprep.subr.bf16.mxu1 %v7247_v56  ;;  %v9623_v25 = vadd.f32 %v7677_v61, %v9600_v62  ;;  %7242 = vmatpush1.bf16.msra.mxu0 %v7241_v58  ;;  %v2840_v37 = vmax.f32 %v9597_v63, 0.0  ;;  %v9635_v58 = vld [vmem:[%s11735_s5 + $0x20] sm:$0xff]  ;;  %v1560_v26 = vadd.f32 %v9184_v3, %v8996_v17 }
 0x314   : > { %11946 = vst [vmem:[#allocation62_spill] sm:$0xff] %v9609_v13  ;;  %11947 = vst [vmem:[#allocation63_spill] sm:$0xff] %v9615_v46  ;;  %v2845_v33 = vmax.f32 %v9609_v13, 0.0  ;;  %v2847_v57 = vmax.f32 %v9615_v46, 0.0  ;;  %7250 = vmatpush1.bf16.msra.mxu1 %v7249_v18  ;;  %v1745_v14 = vadd.f32 %v9186_v5, %v8996_v17  ;;  %v1562_v18 = vadd.f32 %v9188_v7, %v8996_v17 }
 0x315   : > { %11948 = vst [vmem:[#allocation64_spill] sm:$0xff] %v9619_v50  ;;  %11949 = vst [vmem:[#allocation65_spill] sm:$0xff] %v9623_v25  ;;  %v2846_v6 = vmax.f32 %v9619_v50, 0.0  ;;  %v2848_v20 = vmax.f32 %v9623_v25, 0.0  ;;  %v1751_v5 = vadd.f32 %v9194_v12, %v9000_v19 }
 0x316   : > { %v7245_v23 = vpack.c.bf16 %v2845_v33, %v2837_v43  ;;  %v7253_v41 = vpack.c.bf16 %v2847_v57, %v2839_v53  ;;  %v1747_v33 = vadd.f32 %v9190_v9, %v8996_v17  ;;  %v1867_v57 = vadd.f32 %v1560_v26, %v9429_v22  ;;  %v11951_v53 = vld [vmem:[#allocation23_spill] sm:$0xff] }
 0x317   : > { %v7243_v56 = vpack.c.bf16 %v2846_v6, %v2838_v54  ;;  %v7251_v61 = vpack.c.bf16 %v2848_v20, %v2840_v37  ;;  %v9645_v54 = vld [vmem:[%s11735_s5 + $0x28] sm:$0xff]  ;;  %v1869_v6 = vadd.f32 %v1745_v14, %v9429_v22  ;;  %v1868_v43 = vadd.f32 %v1562_v18, %v9429_v22  ;;  %v11953_v14 = vld [vmem:[#allocation32_spill] sm:$0xff] }
 0x318   : > { %v1566_v37 = vadd.f32 %v9192_v10, %v9000_v19  ;;  %v1870_v3 = vadd.f32 %v1747_v33, %v9429_v22  ;;  %v11950_v20 = vld [vmem:[#allocation22_spill] sm:$0xff]  ;;  %v1753_v17 = vadd.f32 %v11951_v53, %v9000_v19  ;;  %v11952_v9 = vld [vmem:[#allocation31_spill] sm:$0xff] }
 0x319   : > { %7244 = vmatprep.subr.bf16.mxu0 %v7243_v56  ;;  %7252 = vmatprep.subr.bf16.mxu1 %v7251_v61  ;;  %v1568_v7 = vadd.f32 %v11950_v20, %v9000_v19  ;;  %v1572_v56 = vadd.f32 %v11952_v9, %v9038_v36  ;;  %v7847_v10 = vadd.f32 %v1869_v6, %v9439_v0 }
 0x31a   : > { %7246 = vmatpush1.bf16.msra.mxu0 %v7245_v23  ;;  %7254 = vmatpush1.bf16.msra.mxu1 %v7253_v41  ;;  %v7751_v23 = vadd.f32 %v1867_v57, %v9439_v0  ;;  %v1875_v61 = vadd.f32 %v1566_v37, %v9443_v28  ;;  %v7754_v22 = vadd.f32 %v1868_v43, %v9439_v0  ;;  %v11954_v57 = vld [vmem:[#allocation34_spill] sm:$0xff]  ;;  %v11955_v43 = vld [vmem:[#allocation35_spill] sm:$0xff] }
 0x31b   : > { %v1877_v41 = vadd.f32 %v1751_v5, %v9443_v28  ;;  %v7850_v12 = vadd.f32 %v1870_v3, %v9439_v0  ;;  %v1876_v26 = vadd.f32 %v1568_v7, %v9443_v28  ;;  %v1757_v19 = vadd.f32 %v11953_v14, %v9038_v36 }
 0x31c   : > { %v1878_v18 = vadd.f32 %v1753_v17, %v9443_v28  ;;  %v1883_v33 = vadd.f32 %v1572_v56, %v9466_v15  ;;  %v1574_v37 = vadd.f32 %v11954_v57, %v9038_v36  ;;  %v7752_v6 = vadd.f32 %v7751_v23, %v9461_v51  ;;  %v11956_v28 = vld [vmem:[#allocation36_spill] sm:$0xff] }
 0x31d   : > { %6973 = vmatmul.mubr.msk.f32.vlgmr.msra.gmra.mrb[96].mxu0 %vm1955_vm2, %v9635_v58  ;;  %6977 = vmatmul.mubr.msk.f32.vlgmr.msra.gmra.mrb[96].mxu1 %vm1955_vm2, %v9635_v58  ;;  %v1759_v20 = vadd.f32 %v11955_v43, %v9038_v36  ;;  %v7848_v3 = vadd.f32 %v7847_v10, %v9461_v51  ;;  %v7755_v7 = vadd.f32 %v7754_v22, %v9461_v51 }
 0x31e   : > { %2960 = vmatprep.mubr.f32.mxu0 %v11931_v39  ;;  %3049 = vmatprep.mubr.f32.mxu1 %v11931_v39  ;;  %v7757_v53 = vadd.f32 %v1875_v61, %v9455_v29  ;;  %v1578_v17 = vadd.f32 %v11956_v28, %v9036_v35  ;;  %v7851_v36 = vadd.f32 %v7850_v12, %v9461_v51  ;;  %v11960_v28 = vld [vmem:[#allocation37_spill] sm:$0xff] }
 0x31f   : > { %v7853_v14 = vadd.f32 %v1877_v41, %v9455_v29  ;;  %v1885_v10 = vadd.f32 %v1757_v19, %v9466_v15  ;;  %v1884_v43 = vadd.f32 %v1574_v37, %v9466_v15  ;;  %v1763_v25 = vadd.f32 %v11960_v28, %v9036_v35 }
 0x320   : > { %v7856_v41 = vadd.f32 %v1878_v18, %v9455_v29  ;;  %v1886_v19 = vadd.f32 %v1759_v20, %v9466_v15  ;;  %v1891_v50 = vadd.f32 %v1578_v17, %v9478_v52  ;;  %v7763_v20 = vadd.f32 %v1883_v33, %v9504_v4 }
 0x321   : > { %6974 = vmatmul.mubr.msk.f32.gmra.mrb[98].mxu0 %vm1955_vm2, %v9645_v54  ;;  %6978 = vmatmul.mubr.msk.f32.gmra.mrb[98].mxu1 %vm1955_vm2, %v9645_v54  ;;  %v7854_v28 = vadd.f32 %v7853_v14, %v9494_v11  ;;  %v1893_v17 = vadd.f32 %v1763_v25, %v9478_v52  ;;  %v7766_v63 = vadd.f32 %v1884_v43, %v9504_v4 }
 0x322   : > { %2966 = vmatprep.mubr.f32.mxu0 %v11931_v39  ;;  %3055 = vmatprep.mubr.f32.mxu1 %v11931_v39  ;;  %v7857_v14 = vadd.f32 %v7856_v41, %v9494_v11  ;;  %v7862_v33 = vadd.f32 %v1886_v19, %v9504_v4  ;;  %v7764_v43 = vadd.f32 %v7763_v20, %v9556_v1 }
 0x323   : > { %v7767_v49 = vadd.f32 %v7766_v63, %v9556_v1  ;;  %v7865_v19 = vadd.f32 %v1893_v17, %v9546_v32 }
 0x324   : > { %v7863_v20 = vadd.f32 %v7862_v33, %v9556_v1 }
 0x325   : > { %6975 = vmatmul.mubr.msk.f32.gmra.mrb[100].mxu0 %vm1955_vm2, %v9656_v47  ;;  %6979 = vmatmul.mubr.msk.f32.gmra.mrb[100].mxu1 %vm1955_vm2, %v9656_v47 }
 0x326   : > { %2972 = vmatprep.mubr.f32.mxu0 %v11931_v39  ;;  %3061 = vmatprep.mubr.f32.mxu1 %v11931_v39 }
 0x329   : > { %6976 = vmatmul.mubr.msk.f32.gmra.mrb[102].mxu0 %vm1955_vm2, %v9667_v48  ;;  %6980 = vmatmul.mubr.msk.f32.gmra.mrb[102].mxu1 %vm1955_vm2, %v9667_v48 }
 0x32a   : > { %3132 = vmatprep.mubr.f32.mxu0 %v11931_v39  ;;  %3221 = vmatprep.mubr.f32.mxu1 %v11931_v39 }
 0x355   : > { %v9714_v5 = vpop.f32.mrb[48].mxu0  ;;  %v9724_v56 = vpop.f32.mrb[48].mxu1 }
 0x356   : > { %v9722_v9 = vadd.f32 %v7752_v6, %v9714_v5  ;;  %v9726_v23 = vpop.f32.mrb[49].mxu0  ;;  %v9732_v22 = vadd.f32 %v7848_v3, %v9724_v56  ;;  %v9737_v57 = vpop.f32.mrb[49].mxu1  ;;  %v7760_v6 = vadd.f32 %v1876_v26, %v9455_v29  ;;  %v11962_v26 = vld [vmem:[#allocation41_spill] sm:$0xff] }
 0x357   : > { %v9735_v61 = vadd.f32 %v7755_v7, %v9726_v23  ;;  %v9744_v12 = vadd.f32 %v7851_v36, %v9737_v57  ;;  %v7758_v7 = vadd.f32 %v7757_v53, %v9494_v11  ;;  %v1580_v46 = vadd.f32 %v11962_v26, %v9036_v35 }
 0x358   : > { %11957 = vst [vmem:[#allocation22_spill] sm:$0xff] %v9722_v9  ;;  %11958 = vst [vmem:[#allocation23_spill] sm:$0xff] %v9732_v22  ;;  %v7761_v15 = vadd.f32 %v7760_v6, %v9494_v11  ;;  %v7859_v53 = vadd.f32 %v1885_v10, %v9504_v4 }
 0x359   : > { %11959 = vst [vmem:[#allocation31_spill] sm:$0xff] %v9735_v61  ;;  %11961 = vst [vmem:[#allocation32_spill] sm:$0xff] %v9744_v12  ;;  %v9748_v3 = vpop.f32.mrb[50].mxu0  ;;  %v9754_v37 = vpop.f32.mrb[50].mxu1  ;;  %v1892_v10 = vadd.f32 %v1580_v46, %v9478_v52 }
 0x35a   : > { %v9757_v13 = vpop.f32.mrb[51].mxu0  ;;  %v9760_v36 = vadd.f32 %v7758_v7, %v9748_v3  ;;  %v9763_v18 = vpop.f32.mrb[51].mxu1  ;;  %v9769_v26 = vadd.f32 %v7854_v28, %v9754_v37  ;;  %v11967_v7 = vld [vmem:[#allocation42_spill] sm:$0xff] }
 0x35b   : > { %11963 = vst [vmem:[#allocation34_spill] sm:$0xff] %v9757_v13  ;;  %11965 = vst [vmem:[#allocation36_spill] sm:$0xff] %v9763_v18  ;;  %v1765_v34 = vadd.f32 %v11967_v7, %v9036_v35  ;;  %v9776_v6 = vadd.f32 %v7761_v15, %v9757_v13  ;;  %v9783_v25 = vadd.f32 %v7857_v14, %v9763_v18 }
 0x35c   : > { %11964 = vst [vmem:[#allocation35_spill] sm:$0xff] %v9760_v36  ;;  %11966 = vst [vmem:[#allocation37_spill] sm:$0xff] %v9769_v26  ;;  %v7860_v35 = vadd.f32 %v7859_v53, %v9556_v1  ;;  %v7769_v15 = vadd.f32 %v1891_v50, %v9546_v32  ;;  %v7772_v17 = vadd.f32 %v1892_v10, %v9546_v32  ;;  %v2828_v10 = vmax.f32 %v9744_v12, 0.0 }
 0x35d   : > { %11968 = vst [vmem:[#allocation41_spill] sm:$0xff] %v9776_v6  ;;  %v9778_v24 = vpop.f32.mrb[52].mxu0  ;;  %11970 = vst [vmem:[#allocation66_spill] sm:$0xff] %v9783_v25  ;;  %v9785_v28 = vpop.f32.mrb[52].mxu1  ;;  %v1894_v46 = vadd.f32 %v1765_v34, %v9478_v52  ;;  %v2834_v52 = vmax.f32 %v9776_v6, 0.0  ;;  %v2836_v34 = vmax.f32 %v9783_v25, 0.0 }
 0x35e   : > { %11969 = vst [vmem:[#allocation42_spill] sm:$0xff] %v9778_v24  ;;  %11971 = vst [vmem:[#allocation67_spill] sm:$0xff] %v9785_v28  ;;  %v9787_v41 = vpop.f32.mrb[53].mxu0  ;;  %v9791_v7 = vpop.f32.mrb[53].mxu1  ;;  %v9798_v14 = vadd.f32 %v7764_v43, %v9778_v24  ;;  %v9801_v42 = vadd.f32 %v7860_v35, %v9785_v28  ;;  %v7770_v33 = vadd.f32 %v7769_v15, %v9587_v44  ;;  %v2826_v24 = vmax.f32 %v9735_v61, 0.0 }
 0x35f   : > { %11972 = vst [vmem:[#allocation68_spill] sm:$0xff] %v9787_v41  ;;  %11973 = vst [vmem:[#allocation69_spill] sm:$0xff] %v9791_v7  ;;  %v9807_v53 = vadd.f32 %v7767_v49, %v9787_v41  ;;  %v9817_v43 = vadd.f32 %v7863_v20, %v9791_v7  ;;  %v2833_v49 = vmax.f32 %v9760_v36, 0.0  ;;  %v2835_v41 = vmax.f32 %v9769_v26, 0.0 }
 0x360   : > { %11974 = vst [vmem:[#allocation70_spill] sm:$0xff] %v9798_v14  ;;  %11975 = vst [vmem:[#allocation71_spill] sm:$0xff] %v9801_v42  ;;  %v7866_v28 = vadd.f32 %v7865_v19, %v9587_v44  ;;  %v7868_v20 = vadd.f32 %v1894_v46, %v9546_v32  ;;  %v2825_v25 = vmax.f32 %v9722_v9, 0.0  ;;  %v2827_v15 = vmax.f32 %v9732_v22, 0.0 }
 0x361   : > { %v9804_v18 = vpop.f32.mrb[54].mxu0  ;;  %11976 = vst [vmem:[#allocation72_spill] sm:$0xff] %v9807_v53  ;;  %v9809_v50 = vpop.f32.mrb[54].mxu1  ;;  %11977 = vst [vmem:[#allocation73_spill] sm:$0xff] %v9817_v43  ;;  %v7773_v26 = vadd.f32 %v7772_v17, %v9587_v44  ;;  %v7255_v36 = vpack.c.bf16 %v2834_v52, %v2826_v24  ;;  %v7263_v19 = vpack.c.bf16 %v2836_v34, %v2828_v10  ;;  %v2842_v22 = vmax.f32 %v9807_v53, 0.0 }
 0x362   : > { %v9811_v63 = vpop.f32.mrb[55].mxu0  ;;  %v9820_v35 = vpop.f32.mrb[55].mxu1  ;;  %v9828_v6 = vadd.f32 %v7770_v33, %v9804_v18  ;;  %v9834_v7 = vadd.f32 %v7866_v28, %v9809_v50  ;;  %v7257_v13 = vpack.c.bf16 %v2833_v49, %v2825_v25  ;;  %v7265_v61 = vpack.c.bf16 %v2835_v41, %v2827_v15 }
 0x363   : > { %v9838_v12 = vadd.f32 %v7773_v26, %v9811_v63  ;;  %7256 = vmatprep.subr.bf16.mxu0 %v7255_v36  ;;  %7264 = vmatprep.subr.bf16.mxu1 %v7263_v19  ;;  %v7869_v46 = vadd.f32 %v7868_v20, %v9587_v44  ;;  %v2841_v24 = vmax.f32 %v9798_v14, 0.0  ;;  %v2844_v17 = vmax.f32 %v9817_v43, 0.0  ;;  %v9879_v20 = vpop.permute.xlu1 %2865 }
 0x364   : > { %11978 = vst [vmem:[#allocation74_spill] sm:$0xff] %v9828_v6  ;;  %11979 = vst [vmem:[#allocation75_spill] sm:$0xff] %v9834_v7  ;;  %v2849_v33 = vmax.f32 %v9828_v6, 0.0  ;;  %7258 = vmatpush1.bf16.msra.mxu0 %v7257_v13  ;;  %7266 = vmatpush1.bf16.msra.mxu1 %v7265_v61  ;;  %v2851_v26 = vmax.f32 %v9834_v7, 0.0  ;;  %v2843_v34 = vmax.f32 %v9801_v42, 0.0  ;;  %v9876_v61 = vpop.permute.xlu0 %2860 }
 0x365   : > { %11980 = vst [vmem:[#allocation76_spill] sm:$0xff] %v9838_v12  ;;  %v2850_v28 = vmax.f32 %v9838_v12, 0.0  ;;  %v9846_v25 = vadd.f32 %v7869_v46, %v9820_v35 }
 0x366   : > { %v7261_v36 = vpack.c.bf16 %v2849_v33, %v2841_v24  ;;  %v7269_v13 = vpack.c.bf16 %v2851_v26, %v2843_v34 }
 0x367   : > { %11981 = vst [vmem:[#allocation77_spill] sm:$0xff] %v9846_v25  ;;  %v7259_v41 = vpack.c.bf16 %v2850_v28, %v2842_v22  ;;  %v2852_v52 = vmax.f32 %v9846_v25, 0.0 }
 0x368   : > { %v9888_v6 = vpop.permute.xlu0 %2870 }
 0x369   : > { %7260 = vmatprep.subr.bf16.mxu0 %v7259_v41  ;;  %v7267_v49 = vpack.c.bf16 %v2852_v52, %v2844_v17 }
 0x36a   : > { %7262 = vmatpush1.bf16.msra.mxu0 %v7261_v36 }
 0x36b   : > { %7268 = vmatprep.subr.bf16.mxu1 %v7267_v49 }
 0x36c   : > { %7270 = vmatpush1.bf16.msra.mxu1 %v7269_v13 }
 0x36d   : > { %6981 = vmatmul.mubr.msk.f32.vlgmr.msra.gmra.mrb[104].mxu0 %vm1955_vm2, %v9635_v58 }
 0x36e   : > { %3138 = vmatprep.mubr.f32.mxu0 %v11931_v39 }
 0x36f   : > { %6985 = vmatmul.mubr.msk.f32.vlgmr.msra.gmra.mrb[104].mxu1 %vm1955_vm2, %v9635_v58 }
 0x370   : > { %3227 = vmatprep.mubr.f32.mxu1 %v11931_v39 }
 0x371   : > { %6982 = vmatmul.mubr.msk.f32.gmra.mrb[106].mxu0 %vm1955_vm2, %v9645_v54 }
 0x372   : > { %3144 = vmatprep.mubr.f32.mxu0 %v11931_v39 }
 0x373   : > { %6986 = vmatmul.mubr.msk.f32.gmra.mrb[106].mxu1 %vm1955_vm2, %v9645_v54 }
 0x374   : > { %3233 = vmatprep.mubr.f32.mxu1 %v11931_v39 }
 0x375   : > { %6983 = vmatmul.mubr.msk.f32.gmra.mrb[108].mxu0 %vm1955_vm2, %v9656_v47 }
 0x376   : > { %3150 = vmatprep.mubr.f32.mxu0 %v11931_v39 }
 0x377   : > { %6987 = vmatmul.mubr.msk.f32.gmra.mrb[108].mxu1 %vm1955_vm2, %v9656_v47 }
 0x378   : > { %3239 = vmatprep.mubr.f32.mxu1 %v11931_v39 }
 0x379   : > { %6984 = vmatmul.mubr.msk.f32.gmra.mrb[110].mxu0 %vm1955_vm2, %v9667_v48 }
 0x37a   : > { %3384 = vmatprep.mubr.f32.mxu0 %v11931_v39 }
 0x37b   : > { %6988 = vmatmul.mubr.msk.f32.gmra.mrb[110].mxu1 %vm1955_vm2, %v9667_v48 }
 0x37c   : > { %3473 = vmatprep.mubr.f32.mxu1 %v11931_v39 }
 0x3f0   : > { %v2956_v58 = vpop.f32.mrb[96].mxu0  ;;  %v3045_v54 = vpop.f32.mrb[96].mxu1 }
 0x3f1   : > { %v2958_v22 = vpop.f32.mrb[97].mxu0  ;;  %v3047_v10 = vpop.f32.mrb[97].mxu1  ;;  %v2957_v47 = vadd.f32 %v2956_v58, %v9876_v61  ;;  %v3046_v15 = vadd.f32 %v3045_v54, %v9876_v61 }
 0x3f2   : > { %v2959_v19 = vadd.f32 %v2958_v22, %v9876_v61  ;;  %v3048_v46 = vadd.f32 %v3047_v10, %v9876_v61 }
 0x3f3   : > { %v3251_v36 = vmax.f32 %v2957_v47, 0.0  ;;  %v3253_v49 = vmax.f32 %v3046_v15, 0.0 }
 0x3f4   : > { %v2962_v33 = vpop.f32.mrb[98].mxu0  ;;  %v3051_v28 = vpop.f32.mrb[98].mxu1  ;;  %v3252_v13 = vmax.f32 %v2959_v19, 0.0  ;;  %v3254_v25 = vmax.f32 %v3048_v46, 0.0 }
 0x3f5   : > { %v2963_v48 = vadd.f32 %v2962_v33, %v9879_v20  ;;  %v2964_v24 = vpop.f32.mrb[99].mxu0  ;;  %v3052_v26 = vadd.f32 %v3051_v28, %v9879_v20  ;;  %v3053_v17 = vpop.f32.mrb[99].mxu1 }
 0x3f6   : > { %v2965_v41 = vadd.f32 %v2964_v24, %v9879_v20  ;;  %v3054_v34 = vadd.f32 %v3053_v17, %v9879_v20 }
 0x3f7   : > { %v3259_v52 = vmax.f32 %v2963_v48, 0.0  ;;  %v3261_v58 = vmax.f32 %v3052_v26, 0.0  ;;  %v9891_v48 = vpop.permute.xlu1 %2875 }
 0x3f8   : > { %v3260_v54 = vmax.f32 %v2965_v41, 0.0  ;;  %v2968_v22 = vpop.f32.mrb[100].mxu0  ;;  %v3262_v12 = vmax.f32 %v3054_v34, 0.0  ;;  %v3057_v33 = vpop.f32.mrb[100].mxu1 }
 0x3f9   : > { %v7273_v10 = vpack.c.bf16 %v3259_v52, %v3251_v36  ;;  %v2970_v7 = vpop.f32.mrb[101].mxu0  ;;  %v7281_v28 = vpack.c.bf16 %v3261_v58, %v3253_v49  ;;  %v3059_v24 = vpop.f32.mrb[101].mxu1  ;;  %v2969_v47 = vadd.f32 %v2968_v22, %v9888_v6  ;;  %v3058_v15 = vadd.f32 %v3057_v33, %v9888_v6 }
 0x3fa   : > { %v7271_v43 = vpack.c.bf16 %v3260_v54, %v3252_v13  ;;  %v7279_v53 = vpack.c.bf16 %v3262_v12, %v3254_v25  ;;  %v2971_v19 = vadd.f32 %v2970_v7, %v9888_v6  ;;  %v3060_v46 = vadd.f32 %v3059_v24, %v9888_v6 }
 0x3fb   : > { %v3267_v34 = vmax.f32 %v2969_v47, 0.0  ;;  %v3269_v13 = vmax.f32 %v3058_v15, 0.0  ;;  %v9913_v47 = vld [vmem:[%s11737_s7 + $0x28] sm:$0xff]  ;;  %v9924_v15 = vld [vmem:[%s11737_s7 + $0x30] sm:$0xff] }
 0x3fc   : > { %v2974_v26 = vpop.f32.mrb[102].mxu0  ;;  %7272 = vmatprep.subr.bf16.mxu0 %v7271_v43  ;;  %v3063_v17 = vpop.f32.mrb[102].mxu1  ;;  %7280 = vmatprep.subr.bf16.mxu1 %v7279_v53  ;;  %v3268_v43 = vmax.f32 %v2971_v19, 0.0  ;;  %v3270_v22 = vmax.f32 %v3060_v46, 0.0  ;;  %v9935_v19 = vld [vmem:[%s11737_s7 + $0x38] sm:$0xff] }
 0x3fd   : > { %v2975_v41 = vadd.f32 %v2974_v26, %v9891_v48  ;;  %v2976_v36 = vpop.f32.mrb[103].mxu0  ;;  %7274 = vmatpush1.bf16.msra.mxu0 %v7273_v10  ;;  %v3064_v12 = vadd.f32 %v3063_v17, %v9891_v48  ;;  %v3065_v52 = vpop.f32.mrb[103].mxu1  ;;  %7282 = vmatpush1.bf16.msra.mxu1 %v7281_v28  ;;  %v9903_v28 = vld [vmem:[%s11737_s7 + $0x20] sm:$0xff] }
 0x3fe   : > { %v2977_v25 = vadd.f32 %v2976_v36, %v9891_v48  ;;  %v3066_v7 = vadd.f32 %v3065_v52, %v9891_v48 }
 0x3ff   : > { %v3275_v49 = vmax.f32 %v2975_v41, 0.0  ;;  %v3277_v58 = vmax.f32 %v3064_v12, 0.0 }
 0x400   : > { %v3276_v54 = vmax.f32 %v2977_v25, 0.0  ;;  %v3278_v24 = vmax.f32 %v3066_v7, 0.0 }
 0x401   : > { %v7277_v33 = vpack.c.bf16 %v3275_v49, %v3267_v34  ;;  %v7285_v53 = vpack.c.bf16 %v3277_v58, %v3269_v13 }
 0x402   : > { %v7275_v26 = vpack.c.bf16 %v3276_v54, %v3268_v43  ;;  %v7283_v10 = vpack.c.bf16 %v3278_v24, %v3270_v22 }
 0x404   : > { %7276 = vmatprep.subr.bf16.mxu0 %v7275_v26  ;;  %7284 = vmatprep.subr.bf16.mxu1 %v7283_v10 }
 0x405   : > { %7278 = vmatpush1.bf16.msra.mxu0 %v7277_v33  ;;  %7286 = vmatpush1.bf16.msra.mxu1 %v7285_v53 }
 0x408   : > { %6997 = vmatmul.mubr.msk.f32.vlgmr.msra.gmra.mrb[24].mxu0 %vm1955_vm2, %v9903_v28  ;;  %7001 = vmatmul.mubr.msk.f32.vlgmr.msra.gmra.mrb[24].mxu1 %vm1955_vm2, %v9903_v28 }
 0x409   : > { %3390 = vmatprep.mubr.f32.mxu0 %v11931_v39  ;;  %3479 = vmatprep.mubr.f32.mxu1 %v11931_v39 }
 0x40c   : > { %6998 = vmatmul.mubr.msk.f32.gmra.mrb[26].mxu0 %vm1955_vm2, %v9913_v47  ;;  %7002 = vmatmul.mubr.msk.f32.gmra.mrb[26].mxu1 %vm1955_vm2, %v9913_v47 }
 0x40d   : > { %3396 = vmatprep.mubr.f32.mxu0 %v11931_v39  ;;  %3485 = vmatprep.mubr.f32.mxu1 %v11931_v39 }
 0x410   : > { %6999 = vmatmul.mubr.msk.f32.gmra.mrb[28].mxu0 %vm1955_vm2, %v9924_v15  ;;  %7003 = vmatmul.mubr.msk.f32.gmra.mrb[28].mxu1 %vm1955_vm2, %v9924_v15 }
 0x411   : > { %3402 = vmatprep.mubr.f32.mxu0 %v11931_v39  ;;  %3491 = vmatprep.mubr.f32.mxu1 %v11931_v39 }
 0x414   : > { %7000 = vmatmul.mubr.msk.f32.gmra.mrb[30].mxu0 %vm1955_vm2, %v9935_v19  ;;  %7004 = vmatmul.mubr.msk.f32.gmra.mrb[30].mxu1 %vm1955_vm2, %v9935_v19 }
 0x415   : > { %3562 = vmatprep.mubr.f32.mxu0 %v11931_v39  ;;  %3651 = vmatprep.mubr.f32.mxu1 %v11931_v39 }
 0x440   : > { %v3134_v46 = vpop.f32.mrb[104].mxu0 }
 0x441   : > { %v3136_v41 = vpop.f32.mrb[105].mxu0  ;;  %v3135_v17 = vadd.f32 %v3134_v46, %v9876_v61 }
 0x442   : > { %v3223_v36 = vpop.f32.mrb[104].mxu1  ;;  %v3137_v12 = vadd.f32 %v3136_v41, %v9876_v61 }
 0x443   : > { %v3225_v25 = vpop.f32.mrb[105].mxu1  ;;  %v3224_v7 = vadd.f32 %v3223_v36, %v9876_v61  ;;  %v3255_v43 = vmax.f32 %v3135_v17, 0.0 }
 0x444   : > { %v3140_v52 = vpop.f32.mrb[106].mxu0  ;;  %v3226_v58 = vadd.f32 %v3225_v25, %v9876_v61  ;;  %v3256_v33 = vmax.f32 %v3137_v12, 0.0 }
 0x445   : > { %v3141_v34 = vadd.f32 %v3140_v52, %v9879_v20  ;;  %v3142_v49 = vpop.f32.mrb[107].mxu0  ;;  %v3257_v42 = vmax.f32 %v3224_v7, 0.0 }
 0x446   : > { %v3143_v13 = vadd.f32 %v3142_v49, %v9879_v20  ;;  %v3229_v22 = vpop.f32.mrb[106].mxu1  ;;  %v3258_v9 = vmax.f32 %v3226_v58, 0.0 }
 0x447   : > { %v3263_v54 = vmax.f32 %v3141_v34, 0.0  ;;  %v3230_v24 = vadd.f32 %v3229_v22, %v9879_v20  ;;  %v3231_v26 = vpop.f32.mrb[107].mxu1 }
 0x448   : > { %v3264_v53 = vmax.f32 %v3143_v13, 0.0  ;;  %v3146_v10 = vpop.f32.mrb[108].mxu0  ;;  %v3232_v41 = vadd.f32 %v3231_v26, %v9879_v20 }
 0x449   : > { %v7289_v46 = vpack.c.bf16 %v3263_v54, %v3255_v43  ;;  %v3148_v52 = vpop.f32.mrb[109].mxu0  ;;  %v3265_v14 = vmax.f32 %v3230_v24, 0.0  ;;  %v3147_v17 = vadd.f32 %v3146_v10, %v9888_v6 }
 0x44a   : > { %v7287_v36 = vpack.c.bf16 %v3264_v53, %v3256_v33  ;;  %v3266_v49 = vmax.f32 %v3232_v41, 0.0  ;;  %v3235_v61 = vpop.f32.mrb[108].mxu1  ;;  %v3149_v12 = vadd.f32 %v3148_v52, %v9888_v6 }
 0x44b   : > { %v7297_v25 = vpack.c.bf16 %v3265_v14, %v3257_v42  ;;  %v3237_v34 = vpop.f32.mrb[109].mxu1  ;;  %v3236_v20 = vadd.f32 %v3235_v61, %v9888_v6  ;;  %v3271_v58 = vmax.f32 %v3147_v17, 0.0 }
 0x44c   : > { %v3152_v22 = vpop.f32.mrb[110].mxu0  ;;  %7288 = vmatprep.subr.bf16.mxu0 %v7287_v36  ;;  %v7295_v13 = vpack.c.bf16 %v3266_v49, %v3258_v9  ;;  %v3238_v33 = vadd.f32 %v3237_v34, %v9888_v6  ;;  %v3272_v42 = vmax.f32 %v3149_v12, 0.0  ;;  %v11983_v34 = vld [vmem:[#allocation12_spill] sm:$0xff] }
 0x44d   : > { %v3153_v43 = vadd.f32 %v3152_v22, %v9891_v48  ;;  %v3154_v54 = vpop.f32.mrb[111].mxu0  ;;  %7290 = vmatpush1.bf16.msra.mxu0 %v7289_v46  ;;  %v3273_v46 = vmax.f32 %v3236_v20, 0.0  ;;  %v10003_v20 = vpop.permute.xlu0 %1004 }
 0x44e   : > { %v3155_v7 = vadd.f32 %v3154_v54, %v9891_v48  ;;  %v3241_v53 = vpop.f32.mrb[110].mxu1  ;;  %7296 = vmatprep.subr.bf16.mxu1 %v7295_v13  ;;  %v3274_v49 = vmax.f32 %v3238_v33, 0.0  ;;  %v11984_v13 = vld [vmem:[#allocation9_spill] sm:$0xff] }
 0x44f   : > { %v3279_v24 = vmax.f32 %v3153_v43, 0.0  ;;  %v3242_v14 = vadd.f32 %v3241_v53, %v9891_v48  ;;  %v3243_v10 = vpop.f32.mrb[111].mxu1  ;;  %7298 = vmatpush1.bf16.msra.mxu1 %v7297_v25  ;;  %v11982_v25 = vld [vmem:[#allocation11_spill] sm:$0xff]  ;;  %v2469_v43 = vadd.f32 %v9520_v40, %v9494_v11  ;;  %v11985_v54 = vld [vmem:[#allocation13_spill] sm:$0xff] }
 0x450   : > { %v3280_v26 = vmax.f32 %v3155_v7, 0.0  ;;  %v3244_v41 = vadd.f32 %v3243_v10, %v9891_v48  ;;  %v2463_v48 = vadd.f32 %v9481_v60, %v9461_v51  ;;  %v9998_v60 = vadd.f32 nan, %v9439_v0 }
 0x451   : > { %v7293_v9 = vpack.c.bf16 %v3279_v24, %v3271_v58  ;;  %v3281_v52 = vmax.f32 %v3242_v14, 0.0  ;;  %v2560_v7 = vadd.f32 %v9543_v31, %v9494_v11  ;;  %v2475_v58 = vadd.f32 %v9553_v38, %v9556_v1  ;;  %v11986_v24 = vld [vmem:[#allocation7_spill] sm:$0xff]  ;;  %v11988_v31 = vld [vmem:[#allocation6_spill] sm:$0xff]  ;;  %v11989_v38 = vld [vmem:[#allocation8_spill] sm:$0xff] }
 0x452   : > { %v7291_v36 = vpack.c.bf16 %v3280_v26, %v3272_v42  ;;  %v3282_v61 = vmax.f32 %v3244_v41, 0.0  ;;  %v2752_v12 = vadd.f32 %v11982_v25, %v2463_v48  ;;  %v2760_v53 = vadd.f32 %v11986_v24, %v2469_v43  ;;  %v10020_v26 = vpop.permute.xlu1 %1009  ;;  %v11990_v41 = vld [vmem:[#allocation15_spill] sm:$0xff]  ;;  %v10035_v48 = vpop.permute.xlu0 %3290 }
 0x453   : > { %v7301_v17 = vpack.c.bf16 %v3281_v52, %v3273_v46  ;;  %v2768_v46 = vadd.f32 %v11990_v41, %v2475_v58  ;;  %v2564_v52 = vadd.f32 %v9566_v21, %v9556_v1  ;;  %v11996_v58 = vld [vmem:[#allocation16_spill] sm:$0xff] }
 0x454   : > { %7292 = vmatprep.subr.bf16.mxu0 %v7291_v36  ;;  %v7299_v6 = vpack.c.bf16 %v3282_v61, %v3274_v49  ;;  %v2784_v40 = vadd.f32 %v2752_v12, %v9998_v60  ;;  %v10028_v36 = vadd.f32 nan, %v9504_v4  ;;  %v11992_v61 = vld [vmem:[#allocation57_spill] sm:$0xff] }
 0x455   : > { %7294 = vmatpush1.bf16.msra.mxu0 %v7293_v9  ;;  %v2763_v9 = vadd.f32 %v11989_v38, %v2560_v7 }
 0x456   : > { %7300 = vmatprep.subr.bf16.mxu1 %v7299_v6  ;;  %v7583_v6 = vadd.f32 %v2784_v40, %v10003_v20  ;;  %v10056_v7 = vpop.permute.xlu1 %3295  ;;  %v10075_v38 = vpop.permute.xlu0 %1014 }
 0x457   : > { %7302 = vmatpush1.bf16.msra.mxu1 %v7301_v17  ;;  %v2566_v17 = vadd.f32 %v11992_v61, %v9556_v1 }
 0x458   : > { %7005 = vmatmul.mubr.msk.f32.vlgmr.msra.gmra.mrb[56].mxu0 %vm1955_vm2, %v9903_v28 }
 0x459   : > { %3568 = vmatprep.mubr.f32.mxu0 %v11931_v39 }
 0x45a   : > { %7009 = vmatmul.mubr.msk.f32.vlgmr.msra.gmra.mrb[56].mxu1 %vm1955_vm2, %v9903_v28  ;;  %v2552_v28 = vadd.f32 %v9497_v16, %v9461_v51 }
 0x45b   : > { %3657 = vmatprep.mubr.f32.mxu1 %v11931_v39 }
 0x45c   : > { %7006 = vmatmul.mubr.msk.f32.gmra.mrb[58].mxu0 %vm1955_vm2, %v9913_v47  ;;  %v2754_v22 = vadd.f32 %v11983_v34, %v2552_v28 }
 0x45d   : > { %3574 = vmatprep.mubr.f32.mxu0 %v11931_v39 }
 0x45e   : > { %7010 = vmatmul.mubr.msk.f32.gmra.mrb[58].mxu1 %vm1955_vm2, %v9913_v47  ;;  %v2465_v47 = vadd.f32 %v9491_v45, %v9461_v51  ;;  %v2558_v45 = vadd.f32 %v9533_v27, %v9494_v11  ;;  %v2786_v0 = vadd.f32 %v2754_v22, %v9998_v60  ;;  %v10016_v27 = vadd.f32 nan, %v9455_v29  ;;  %v11991_v29 = vld [vmem:[#allocation55_spill] sm:$0xff] }
 0x45f   : > { %3663 = vmatprep.mubr.f32.mxu1 %v11931_v39  ;;  %v2477_v49 = vadd.f32 %v11991_v29, %v9556_v1 }
 0x460   : > { %7007 = vmatmul.mubr.msk.f32.gmra.mrb[60].mxu0 %vm1955_vm2, %v9924_v15  ;;  %v2792_v28 = vadd.f32 %v2760_v53, %v10016_v27  ;;  %v7679_v21 = vadd.f32 %v2786_v0, %v10003_v20  ;;  %v2795_v22 = vadd.f32 %v2763_v9, %v10016_v27 }
 0x461   : > { %3580 = vmatprep.mubr.f32.mxu0 %v11931_v39 }
 0x462   : > { %7011 = vmatmul.mubr.msk.f32.gmra.mrb[60].mxu1 %vm1955_vm2, %v9924_v15  ;;  %v2554_v15 = vadd.f32 %v9513_v2, %v9461_v51  ;;  %v2471_v2 = vadd.f32 %v9528_v8, %v9494_v11  ;;  %v11987_v8 = vld [vmem:[#allocation10_spill] sm:$0xff]  ;;  %v7589_v53 = vadd.f32 %v2792_v28, %v10020_v26 }
 0x463   : > { %3669 = vmatprep.mubr.f32.mxu1 %v11931_v39  ;;  %v2762_v14 = vadd.f32 %v11987_v8, %v2558_v45 }
 0x464   : > { %7008 = vmatmul.mubr.msk.f32.gmra.mrb[62].mxu0 %vm1955_vm2, %v9935_v19  ;;  %v2755_v16 = vadd.f32 %v11985_v54, %v2554_v15  ;;  %v2761_v10 = vadd.f32 %v11988_v31, %v2471_v2  ;;  %v10043_v15 = vadd.f32 nan, %v9546_v32  ;;  %v2570_v32 = vadd.f32 %v9593_v30, %v9587_v44 }
 0x465   : > { %3878 = vmatprep.mubr.f32.mxu0 %v11931_v39  ;;  %v2794_v25 = vadd.f32 %v2762_v14, %v10016_v27  ;;  %v7584_v2 = vadd.f32 %v7583_v6, %v10035_v48  ;;  %v7688_v6 = vadd.f32 %v2795_v22, %v10020_v26  ;;  %v10106_v22 = vpop.permute.xlu1 %1019 }
 0x466   : > { %7012 = vmatmul.mubr.msk.f32.gmra.mrb[62].mxu1 %vm1955_vm2, %v9935_v19  ;;  %v2753_v19 = vadd.f32 %v11984_v13, %v2465_v47  ;;  %v2787_v42 = vadd.f32 %v2755_v16, %v9998_v60  ;;  %v2481_v47 = vadd.f32 %v9577_v59, %v9587_v44  ;;  %v2793_v34 = vadd.f32 %v2761_v10, %v10016_v27  ;;  %v11994_v59 = vld [vmem:[#allocation14_spill] sm:$0xff] }
 0x467   : > { %3967 = vmatprep.mubr.f32.mxu1 %v11931_v39  ;;  %v2800_v13 = vadd.f32 %v2768_v46, %v10028_v36  ;;  %v2769_v54 = vadd.f32 %v11994_v59, %v2477_v49  ;;  %v11995_v16 = vld [vmem:[#allocation18_spill] sm:$0xff]  ;;  %v7685_v10 = vadd.f32 %v2794_v25, %v10020_v26  ;;  %v12000_v49 = vld [vmem:[#allocation17_spill] sm:$0xff] }
 0x468   : > { %v2785_v33 = vadd.f32 %v2753_v19, %v9998_v60  ;;  %v7682_v12 = vadd.f32 %v2787_v42, %v10003_v20  ;;  %v11993_v19 = vld [vmem:[#allocation20_spill] sm:$0xff]  ;;  %v2771_v45 = vadd.f32 %v11995_v16, %v2566_v17  ;;  %v2776_v40 = vadd.f32 %v11996_v58, %v2481_v47 }
 0x469   : > { %v2770_v43 = vadd.f32 %v11993_v19, %v2564_v52  ;;  %v2483_v42 = vadd.f32 %v9584_v55, %v9587_v44  ;;  %v7592_v52 = vadd.f32 %v2793_v34, %v10020_v26  ;;  %v2801_v29 = vadd.f32 %v2769_v54, %v10028_v36 }
 0x46a   : > { %v7586_v4 = vadd.f32 %v2785_v33, %v10003_v20  ;;  %v7680_v33 = vadd.f32 %v7679_v21, %v10035_v48  ;;  %v7683_v31 = vadd.f32 %v7682_v12, %v10035_v48  ;;  %v2778_v61 = vadd.f32 %v12000_v49, %v2570_v32  ;;  %v12002_v12 = vld [vmem:[#allocation19_spill] sm:$0xff] }
 0x46b   : > { %v2802_v9 = vadd.f32 %v2770_v43, %v10028_v36  ;;  %v2803_v28 = vadd.f32 %v2771_v45, %v10028_v36  ;;  %v2572_v47 = vadd.f32 %v9600_v62, %v9587_v44  ;;  %v2808_v25 = vadd.f32 %v2776_v40, %v10043_v15 }
 0x46c   : > { %v7587_v24 = vadd.f32 %v7586_v4, %v10035_v48  ;;  %v7590_v4 = vadd.f32 %v7589_v53, %v10056_v7  ;;  %v2777_v34 = vadd.f32 %v12002_v12, %v2483_v42  ;;  %v7686_v43 = vadd.f32 %v7685_v10, %v10056_v7  ;;  %v12007_v53 = vld [vmem:[#allocation21_spill] sm:$0xff] }
 0x46d   : > { %v7593_v62 = vadd.f32 %v7592_v52, %v10056_v7  ;;  %v7595_v45 = vadd.f32 %v2800_v13, %v10075_v38  ;;  %v7691_v32 = vadd.f32 %v2802_v9, %v10075_v38  ;;  %v7689_v40 = vadd.f32 %v7688_v6, %v10056_v7 }
 0x46e   : > { %v2779_v42 = vadd.f32 %v12007_v53, %v2572_v47  ;;  %v7694_v13 = vadd.f32 %v2803_v28, %v10075_v38  ;;  %v2809_v9 = vadd.f32 %v2777_v34, %v10043_v15  ;;  %v10146_v34 = vpop.permute.xlu1 %3305 }
 0x470   : > { %v7604_v53 = vadd.f32 %v2809_v9, %v10106_v22 }
 0x4db   : > { %v10059_v0 = vpop.f32.mrb[24].mxu0  ;;  %v10069_v30 = vpop.f32.mrb[24].mxu1 }
 0x4dc   : > { %v10067_v8 = vadd.f32 %v7584_v2, %v10059_v0  ;;  %v10071_v14 = vpop.f32.mrb[25].mxu0  ;;  %v10079_v41 = vadd.f32 %v7680_v33, %v10069_v30  ;;  %v10084_v46 = vpop.f32.mrb[25].mxu1  ;;  %v2810_v2 = vadd.f32 %v2778_v61, %v10043_v15  ;;  %v7598_v33 = vadd.f32 %v2801_v29, %v10075_v38 }
 0x4dd   : > { %v10082_v55 = vadd.f32 %v7587_v24, %v10071_v14  ;;  %v10090_v17 = vadd.f32 %v7683_v31, %v10084_v46  ;;  %v10122_v24 = vpop.permute.xlu0 %3300 }
 0x4de   : > { %11997 = vst [vmem:[#allocation11_spill] sm:$0xff] %v10067_v8  ;;  %11998 = vst [vmem:[#allocation12_spill] sm:$0xff] %v10079_v41  ;;  %v7596_v29 = vadd.f32 %v7595_v45, %v10122_v24  ;;  %v7692_v6 = vadd.f32 %v7691_v32, %v10122_v24  ;;  %v7599_v12 = vadd.f32 %v7598_v33, %v10122_v24 }
 0x4df   : > { %11999 = vst [vmem:[#allocation9_spill] sm:$0xff] %v10082_v55  ;;  %12001 = vst [vmem:[#allocation13_spill] sm:$0xff] %v10090_v17  ;;  %v10096_v21 = vpop.f32.mrb[26].mxu0  ;;  %v10101_v19 = vpop.f32.mrb[26].mxu1  ;;  %v7697_v28 = vadd.f32 %v2810_v2, %v10106_v22  ;;  %v7695_v45 = vadd.f32 %v7694_v13, %v10122_v24  ;;  %v3748_v9 = vmax.f32 %v10090_v17, 0.0 }
 0x4e0   : > { %v10104_v59 = vpop.f32.mrb[27].mxu0  ;;  %v10109_v54 = vadd.f32 %v7590_v4, %v10096_v21  ;;  %v10112_v16 = vpop.f32.mrb[27].mxu1  ;;  %v10118_v58 = vadd.f32 %v7686_v43, %v10101_v19  ;;  %v7601_v4 = vadd.f32 %v2808_v25, %v10106_v22  ;;  %v2811_v43 = vadd.f32 %v2779_v42, %v10043_v15 }
 0x4e1   : > { %12003 = vst [vmem:[#allocation7_spill] sm:$0xff] %v10104_v59  ;;  %12005 = vst [vmem:[#allocation6_spill] sm:$0xff] %v10112_v16  ;;  %v10126_v31 = vadd.f32 %v7593_v62, %v10104_v59  ;;  %v10133_v52 = vadd.f32 %v7689_v40, %v10112_v16  ;;  %v3746_v16 = vmax.f32 %v10082_v55, 0.0 }
 0x4e2   : > { %12004 = vst [vmem:[#allocation10_spill] sm:$0xff] %v10109_v54  ;;  %12006 = vst [vmem:[#allocation8_spill] sm:$0xff] %v10118_v58  ;;  %v7602_v13 = vadd.f32 %v7601_v4, %v10146_v34  ;;  %v3747_v4 = vmax.f32 %v10079_v41, 0.0 }
 0x4e3   : > { %12008 = vst [vmem:[#allocation15_spill] sm:$0xff] %v10126_v31  ;;  %v10128_v10 = vpop.f32.mrb[28].mxu0  ;;  %12010 = vst [vmem:[#allocation57_spill] sm:$0xff] %v10133_v52  ;;  %v10135_v49 = vpop.f32.mrb[28].mxu1  ;;  %v3754_v42 = vmax.f32 %v10126_v31, 0.0 }
 0x4e4   : > { %12009 = vst [vmem:[#allocation55_spill] sm:$0xff] %v10128_v10  ;;  %12011 = vst [vmem:[#allocation20_spill] sm:$0xff] %v10135_v49  ;;  %v10137_v61 = vpop.f32.mrb[29].mxu0  ;;  %v10141_v47 = vpop.f32.mrb[29].mxu1  ;;  %v10150_v62 = vadd.f32 %v7596_v29, %v10128_v10  ;;  %v10153_v40 = vadd.f32 %v7692_v6, %v10135_v49  ;;  %v3756_v29 = vmax.f32 %v10133_v52, 0.0  ;;  %v7698_v10 = vadd.f32 %v7697_v28, %v10146_v34 }
 0x4e5   : > { %12012 = vst [vmem:[#allocation14_spill] sm:$0xff] %v10137_v61  ;;  %12013 = vst [vmem:[#allocation18_spill] sm:$0xff] %v10141_v47  ;;  %v10159_v25 = vadd.f32 %v7599_v12, %v10137_v61  ;;  %v10169_v6 = vadd.f32 %v7695_v45, %v10141_v47  ;;  %v3753_v12 = vmax.f32 %v10109_v54, 0.0  ;;  %v3755_v61 = vmax.f32 %v10118_v58, 0.0 }
 0x4e6   : > { %12014 = vst [vmem:[#allocation16_spill] sm:$0xff] %v10150_v62  ;;  %12015 = vst [vmem:[#allocation17_spill] sm:$0xff] %v10153_v40  ;;  %v7700_v45 = vadd.f32 %v2811_v43, %v10106_v22  ;;  %v3745_v52 = vmax.f32 %v10067_v8, 0.0  ;;  %v7605_v58 = vadd.f32 %v7604_v53, %v10146_v34  ;;  %v7303_v54 = vpack.c.bf16 %v3754_v42, %v3746_v16 }
 0x4e7   : > { %v10156_v32 = vpop.f32.mrb[30].mxu0  ;;  %12016 = vst [vmem:[#allocation19_spill] sm:$0xff] %v10159_v25  ;;  %v10161_v33 = vpop.f32.mrb[30].mxu1  ;;  %12017 = vst [vmem:[#allocation21_spill] sm:$0xff] %v10169_v6  ;;  %v7311_v28 = vpack.c.bf16 %v3756_v29, %v3748_v9  ;;  %v7313_v55 = vpack.c.bf16 %v3755_v61, %v3747_v4  ;;  %v3762_v41 = vmax.f32 %v10159_v25, 0.0  ;;  %v3761_v16 = vmax.f32 %v10150_v62, 0.0 }
 0x4e8   : > { %v10163_v2 = vpop.f32.mrb[31].mxu0  ;;  %v10172_v49 = vpop.f32.mrb[31].mxu1  ;;  %v10180_v31 = vadd.f32 %v7602_v13, %v10156_v32  ;;  %v10186_v47 = vadd.f32 %v7698_v10, %v10161_v33  ;;  %v7305_v59 = vpack.c.bf16 %v3753_v12, %v3745_v52  ;;  %7304 = vmatprep.subr.bf16.mxu0 %v7303_v54  ;;  %v7701_v43 = vadd.f32 %v7700_v45, %v10146_v34  ;;  %v10226_v9 = vld [vmem:[%s11735_s5 + $0x50] sm:$0xff]  ;;  %v10237_v45 = vld [vmem:[%s11735_s5 + $0x58] sm:$0xff] }
 0x4e9   : > { %v10190_v17 = vadd.f32 %v7605_v58, %v10163_v2  ;;  %7312 = vmatprep.subr.bf16.mxu1 %v7311_v28  ;;  %v3764_v53 = vmax.f32 %v10169_v6, 0.0  ;;  %v3763_v29 = vmax.f32 %v10153_v40, 0.0  ;;  %v2641_v4 = vadd.f32 %v9714_v5, %v9461_v51 }
 0x4ea   : > { %12018 = vst [vmem:[#allocation78_spill] sm:$0xff] %v10180_v31  ;;  %12019 = vst [vmem:[#allocation79_spill] sm:$0xff] %v10186_v47  ;;  %v3769_v13 = vmax.f32 %v10180_v31, 0.0  ;;  %7306 = vmatpush1.bf16.msra.mxu0 %v7305_v59  ;;  %7314 = vmatpush1.bf16.msra.mxu1 %v7313_v55  ;;  %v10198_v52 = vadd.f32 %v7701_v43, %v10172_v49  ;;  %v3771_v58 = vmax.f32 %v10186_v47, 0.0  ;;  %v10207_v55 = vld [vmem:[%s11735_s5 + $0x40] sm:$0xff]  ;;  %v12022_v43 = vld [vmem:[#allocation28_spill] sm:$0xff] }
 0x4eb   : > { %12020 = vst [vmem:[#allocation80_spill] sm:$0xff] %v10190_v17  ;;  %v3770_v10 = vmax.f32 %v10190_v17, 0.0  ;;  %v2643_v28 = vadd.f32 %v9726_v23, %v9461_v51  ;;  %v2736_v5 = vadd.f32 %v9754_v37, %v9494_v11  ;;  %v12025_v23 = vld [vmem:[#allocation34_spill] sm:$0xff] }
 0x4ec   : > { %12021 = vst [vmem:[#allocation81_spill] sm:$0xff] %v10198_v52  ;;  %v7309_v54 = vpack.c.bf16 %v3769_v13, %v3761_v16  ;;  %v3772_v42 = vmax.f32 %v10198_v52, 0.0  ;;  %v7317_v59 = vpack.c.bf16 %v3771_v58, %v3763_v29  ;;  %v2730_v13 = vadd.f32 %v9724_v56, %v9461_v51  ;;  %v12023_v58 = vld [vmem:[#allocation29_spill] sm:$0xff] }
 0x4ed   : > { %v7307_v61 = vpack.c.bf16 %v3770_v10, %v3762_v41  ;;  %v10215_v41 = vld [vmem:[%s11735_s5 + $0x48] sm:$0xff]  ;;  %v2756_v10 = vadd.f32 %v12022_v43, %v2641_v4  ;;  %v2732_v16 = vadd.f32 %v9737_v57, %v9461_v51  ;;  %v2649_v29 = vadd.f32 %v12025_v23, %v9494_v11  ;;  %v12027_v4 = vld [vmem:[#allocation36_spill] sm:$0xff] }
 0x4ee   : > { %v7315_v12 = vpack.c.bf16 %v3772_v42, %v3764_v53  ;;  %v2647_v53 = vadd.f32 %v9748_v3, %v9494_v11  ;;  %v2738_v51 = vadd.f32 %v12027_v4, %v9494_v11  ;;  %v12029_v3 = vld [vmem:[#allocation42_spill] sm:$0xff]  ;;  %v12031_v23 = vld [vmem:[#allocation27_spill] sm:$0xff]  ;;  %v12034_v4 = vld [vmem:[#allocation68_spill] sm:$0xff] }
 0x4ef   : > { %7308 = vmatprep.subr.bf16.mxu0 %v7307_v61  ;;  %v2757_v61 = vadd.f32 %v12023_v58, %v2643_v28  ;;  %v2788_v56 = vadd.f32 %v2756_v10, %v9998_v60  ;;  %v12028_v28 = vld [vmem:[#allocation26_spill] sm:$0xff]  ;;  %v12030_v58 = vld [vmem:[#allocation67_spill] sm:$0xff]  ;;  %v2766_v52 = vadd.f32 %v12031_v23, %v2736_v5  ;;  %v12032_v10 = vld [vmem:[#allocation24_spill] sm:$0xff] }
 0x4f0   : > { %7310 = vmatpush1.bf16.msra.mxu0 %v7309_v54  ;;  %7316 = vmatprep.subr.bf16.mxu1 %v7315_v12  ;;  %v12024_v54 = vld [vmem:[#allocation33_spill] sm:$0xff]  ;;  %v12026_v12 = vld [vmem:[#allocation30_spill] sm:$0xff]  ;;  %v2764_v43 = vadd.f32 %v12028_v28, %v2647_v53  ;;  %v2742_v37 = vadd.f32 %v12030_v58, %v9556_v1  ;;  %v2765_v17 = vadd.f32 %v12032_v10, %v2649_v29  ;;  %v12038_v23 = vld [vmem:[#allocation39_spill] sm:$0xff] }
 0x4f1   : > { %7318 = vmatpush1.bf16.msra.mxu1 %v7317_v59  ;;  %v2758_v42 = vadd.f32 %v12024_v54, %v2730_v13  ;;  %v2759_v59 = vadd.f32 %v12026_v12, %v2732_v16  ;;  %v2789_v57 = vadd.f32 %v2757_v61, %v9998_v60  ;;  %v2653_v13 = vadd.f32 %v12029_v3, %v9556_v1  ;;  %v12033_v12 = vld [vmem:[#allocation25_spill] sm:$0xff]  ;;  %v12035_v58 = vld [vmem:[#allocation38_spill] sm:$0xff] }
 0x4f2   : > { %v2767_v11 = vadd.f32 %v12033_v12, %v2738_v51  ;;  %v7775_v61 = vadd.f32 %v2788_v56, %v10003_v20  ;;  %v2796_v53 = vadd.f32 %v2764_v43, %v10016_v27  ;;  %v2655_v28 = vadd.f32 %v12034_v4, %v9556_v1  ;;  %v12037_v5 = vld [vmem:[#allocation69_spill] sm:$0xff] }
 0x4f3   : > { %7021 = vmatmul.mubr.msk.f32.vlgmr.msra.gmra.mrb[112].mxu0 %vm1955_vm2, %v10207_v55  ;;  %v2790_v54 = vadd.f32 %v2758_v42, %v9998_v60  ;;  %v2791_v16 = vadd.f32 %v2759_v59, %v9998_v60  ;;  %v7778_v3 = vadd.f32 %v2789_v57, %v10003_v20  ;;  %v2772_v47 = vadd.f32 %v12035_v58, %v2653_v13  ;;  %v12036_v42 = vld [vmem:[#allocation45_spill] sm:$0xff] }
 0x4f4   : > { %3884 = vmatprep.mubr.f32.mxu0 %v11931_v39  ;;  %7025 = vmatmul.mubr.msk.f32.vlgmr.msra.gmra.mrb[112].mxu1 %vm1955_vm2, %v10207_v55  ;;  %v2774_v31 = vadd.f32 %v12036_v42, %v2742_v37  ;;  %v2744_v29 = vadd.f32 %v12037_v5, %v9556_v1  ;;  %v2798_v60 = vadd.f32 %v2766_v52, %v10016_v27  ;;  %v12043_v5 = vld [vmem:[#allocation44_spill] sm:$0xff] }
 0x4f5   : > { %3973 = vmatprep.mubr.f32.mxu1 %v11931_v39  ;;  %v2797_v59 = vadd.f32 %v2765_v17, %v10016_v27  ;;  %v7871_v56 = vadd.f32 %v2790_v54, %v10003_v20  ;;  %v2799_v51 = vadd.f32 %v2767_v11, %v10016_v27  ;;  %v2659_v43 = vadd.f32 %v9804_v18, %v9587_v44  ;;  %v12039_v18 = vld [vmem:[#allocation43_spill] sm:$0xff] }
 0x4f6   : > { %v7776_v57 = vadd.f32 %v7775_v61, %v10035_v48  ;;  %v7874_v13 = vadd.f32 %v2791_v16, %v10003_v20  ;;  %v2773_v37 = vadd.f32 %v12038_v23, %v2655_v28  ;;  %v2748_v1 = vadd.f32 %v9809_v50, %v9587_v44  ;;  %v12046_v23 = vld [vmem:[#allocation46_spill] sm:$0xff] }
 0x4f7   : > { %7022 = vmatmul.mubr.msk.f32.gmra.mrb[114].mxu0 %vm1955_vm2, %v10215_v41  ;;  %v7779_v17 = vadd.f32 %v7778_v3, %v10035_v48  ;;  %v7781_v52 = vadd.f32 %v2796_v53, %v10020_v26  ;;  %v2804_v27 = vadd.f32 %v2772_v47, %v10028_v36  ;;  %v2806_v54 = vadd.f32 %v2774_v31, %v10028_v36  ;;  %v12042_v47 = vld [vmem:[#allocation40_spill] sm:$0xff] }
 0x4f8   : > { %3890 = vmatprep.mubr.f32.mxu0 %v11931_v39  ;;  %7026 = vmatmul.mubr.msk.f32.gmra.mrb[114].mxu1 %vm1955_vm2, %v10215_v41  ;;  %v2775_v12 = vadd.f32 %v12039_v18, %v2744_v29  ;;  %v2661_v50 = vadd.f32 %v9811_v63, %v9587_v44  ;;  %v7872_v61 = vadd.f32 %v7871_v56, %v10035_v48 }
 0x4f9   : > { %3979 = vmatprep.mubr.f32.mxu1 %v11931_v39  ;;  %v7877_v53 = vadd.f32 %v2798_v60, %v10020_v26  ;;  %v2780_v28 = vadd.f32 %v12042_v47, %v2659_v43  ;;  %v2750_v31 = vadd.f32 %v9820_v35, %v9587_v44  ;;  %v7875_v58 = vadd.f32 %v7874_v13, %v10035_v48 }
 0x4fa   : > { %v7784_v42 = vadd.f32 %v2797_v59, %v10020_v26  ;;  %v2805_v63 = vadd.f32 %v2773_v37, %v10028_v36  ;;  %v2782_v29 = vadd.f32 %v12043_v5, %v2748_v1  ;;  %v7782_v43 = vadd.f32 %v7781_v52, %v10056_v7 }
 0x4fb   : > { %7023 = vmatmul.mubr.msk.f32.gmra.mrb[116].mxu0 %vm1955_vm2, %v10226_v9  ;;  %v2807_v44 = vadd.f32 %v2775_v12, %v10028_v36  ;;  %v7880_v59 = vadd.f32 %v2799_v51, %v10020_v26  ;;  %v2781_v37 = vadd.f32 %v12046_v23, %v2661_v50  ;;  %v7787_v18 = vadd.f32 %v2804_v27, %v10075_v38 }
 0x4fc   : > { %3896 = vmatprep.mubr.f32.mxu0 %v11931_v39  ;;  %7027 = vmatmul.mubr.msk.f32.gmra.mrb[116].mxu1 %vm1955_vm2, %v10226_v9  ;;  %v2812_v52 = vadd.f32 %v2780_v28, %v10043_v15  ;;  %v7785_v47 = vadd.f32 %v7784_v42, %v10056_v7  ;;  %v2814_v51 = vadd.f32 %v2782_v29, %v10043_v15 }
 0x4fd   : > { %3985 = vmatprep.mubr.f32.mxu1 %v11931_v39  ;;  %v7790_v27 = vadd.f32 %v2805_v63, %v10075_v38  ;;  %v7788_v42 = vadd.f32 %v7787_v18, %v10122_v24  ;;  %v7886_v29 = vadd.f32 %v2807_v44, %v10075_v38 }
 0x4ff   : > { %7024 = vmatmul.mubr.msk.f32.gmra.mrb[118].mxu0 %vm1955_vm2, %v10237_v45 }
 0x500   : > { %4056 = vmatprep.mubr.f32.mxu0 %v11931_v39  ;;  %7028 = vmatmul.mubr.msk.f32.gmra.mrb[118].mxu1 %vm1955_vm2, %v10237_v45 }
 0x501   : > { %4145 = vmatprep.mubr.f32.mxu1 %v11931_v39 }
 0x52b   : > { %v10300_v10 = vpop.f32.mrb[56].mxu0 }
 0x52c   : > { %v10308_v11 = vadd.f32 %v7776_v57, %v10300_v10  ;;  %v10310_v16 = vpop.f32.mrb[57].mxu0 }
 0x52d   : > { %v10316_v4 = vadd.f32 %v7779_v17, %v10310_v16  ;;  %v10322_v3 = vpop.f32.mrb[56].mxu1  ;;  %v7878_v17 = vadd.f32 %v7877_v53, %v10056_v7 }
 0x52e   : > { %12040 = vst [vmem:[#allocation28_spill] sm:$0xff] %v10308_v11  ;;  %v10329_v56 = vadd.f32 %v7872_v61, %v10322_v3  ;;  %v10331_v57 = vpop.f32.mrb[57].mxu1  ;;  %v12048_v61 = vld [vmem:[#allocation47_spill] sm:$0xff] }
 0x52f   : > { %12041 = vst [vmem:[#allocation29_spill] sm:$0xff] %v10316_v4  ;;  %v10333_v60 = vpop.f32.mrb[58].mxu0  ;;  %v10338_v35 = vadd.f32 %v7875_v58, %v10331_v57  ;;  %v2783_v36 = vadd.f32 %v12048_v61, %v2750_v31  ;;  %v7883_v58 = vadd.f32 %v2806_v54, %v10075_v38  ;;  %v7881_v31 = vadd.f32 %v7880_v59, %v10056_v7 }
 0x530   : > { %12044 = vst [vmem:[#allocation33_spill] sm:$0xff] %v10329_v56  ;;  %v10340_v13 = vpop.f32.mrb[59].mxu0  ;;  %v10345_v1 = vadd.f32 %v7782_v43, %v10333_v60  ;;  %v2813_v54 = vadd.f32 %v2781_v37, %v10043_v15  ;;  %v7791_v37 = vadd.f32 %v7790_v27, %v10122_v24 }
 0x531   : > { %12045 = vst [vmem:[#allocation34_spill] sm:$0xff] %v10338_v35  ;;  %v10351_v12 = vpop.f32.mrb[58].mxu1  ;;  %v10365_v28 = vadd.f32 %v7785_v47, %v10340_v13  ;;  %v2815_v23 = vadd.f32 %v2783_v36, %v10043_v15  ;;  %v7884_v63 = vadd.f32 %v7883_v58, %v10122_v24  ;;  %v7793_v47 = vadd.f32 %v2812_v52, %v10106_v22 }
 0x532   : > { %12047 = vst [vmem:[#allocation30_spill] sm:$0xff] %v10345_v1  ;;  %v10357_v50 = vadd.f32 %v7878_v17, %v10351_v12  ;;  %v10359_v5 = vpop.f32.mrb[59].mxu1  ;;  %v7889_v15 = vadd.f32 %v2814_v51, %v10106_v22  ;;  %v7887_v52 = vadd.f32 %v7886_v29, %v10122_v24  ;;  %v7796_v25 = vadd.f32 %v2813_v54, %v10106_v22 }
 0x533   : > { %v10361_v53 = vpop.f32.mrb[60].mxu0  ;;  %12050 = vst [vmem:[#allocation26_spill] sm:$0xff] %v10365_v28  ;;  %v10375_v17 = vadd.f32 %v7881_v31, %v10359_v5  ;;  %v3758_v31 = vmax.f32 %v10365_v28, 0.0  ;;  %v7794_v27 = vadd.f32 %v7793_v47, %v10146_v34  ;;  %v7892_v51 = vadd.f32 %v2815_v23, %v10106_v22 }
 0x534   : > { %12049 = vst [vmem:[#allocation36_spill] sm:$0xff] %v10357_v50  ;;  %v10368_v43 = vpop.f32.mrb[61].mxu0  ;;  %v10382_v59 = vadd.f32 %v7788_v42, %v10361_v53  ;;  %v3750_v28 = vmax.f32 %v10316_v4, 0.0  ;;  %v3759_v47 = vmax.f32 %v10357_v50, 0.0  ;;  %v3749_v54 = vmax.f32 %v10308_v11, 0.0 }
 0x535   : > { %12051 = vst [vmem:[#allocation42_spill] sm:$0xff] %v10368_v43  ;;  %12052 = vst [vmem:[#allocation67_spill] sm:$0xff] %v10375_v17  ;;  %v10377_v61 = vpop.f32.mrb[60].mxu1  ;;  %v10396_v58 = vadd.f32 %v7791_v37, %v10368_v43  ;;  %v3760_v40 = vmax.f32 %v10375_v17, 0.0  ;;  %v7890_v37 = vadd.f32 %v7889_v15, %v10146_v34  ;;  %v3752_v23 = vmax.f32 %v10338_v35, 0.0 }
 0x536   : > { %12053 = vst [vmem:[#allocation27_spill] sm:$0xff] %v10382_v59  ;;  %v10385_v6 = vpop.f32.mrb[61].mxu1  ;;  %v10391_v44 = vadd.f32 %v7884_v63, %v10377_v61  ;;  %v3757_v63 = vmax.f32 %v10345_v1, 0.0  ;;  %v7319_v1 = vpack.c.bf16 %v3758_v31, %v3750_v28  ;;  %v7797_v15 = vadd.f32 %v7796_v25, %v10146_v34 }
 0x537   : > { %12054 = vst [vmem:[#allocation24_spill] sm:$0xff] %v10385_v6  ;;  %v10387_v18 = vpop.f32.mrb[62].mxu0  ;;  %12057 = vst [vmem:[#allocation38_spill] sm:$0xff] %v10396_v58  ;;  %v10408_v62 = vadd.f32 %v7887_v52, %v10385_v6  ;;  %v3751_v52 = vmax.f32 %v10329_v56, 0.0  ;;  %v7327_v43 = vpack.c.bf16 %v3760_v40, %v3752_v23  ;;  %v7893_v4 = vadd.f32 %v7892_v51, %v10146_v34 }
 0x538   : > { %12055 = vst [vmem:[#allocation25_spill] sm:$0xff] %v10391_v44  ;;  %v10393_v36 = vpop.f32.mrb[63].mxu0  ;;  %v10416_v8 = vadd.f32 %v7794_v27, %v10387_v18  ;;  %v7321_v6 = vpack.c.bf16 %v3757_v63, %v3749_v54  ;;  %7320 = vmatprep.subr.bf16.mxu0 %v7319_v1  ;;  %v3766_v28 = vmax.f32 %v10396_v58, 0.0  ;;  %v3765_v31 = vmax.f32 %v10382_v59, 0.0 }
 0x539   : > { %12056 = vst [vmem:[#allocation68_spill] sm:$0xff] %v10393_v36  ;;  %v10401_v42 = vpop.f32.mrb[62].mxu1  ;;  %12058 = vst [vmem:[#allocation45_spill] sm:$0xff] %v10408_v62  ;;  %v7329_v50 = vpack.c.bf16 %v3759_v47, %v3751_v52  ;;  %v10427_v27 = vadd.f32 %v7797_v15, %v10393_v36  ;;  %7328 = vmatprep.subr.bf16.mxu1 %v7327_v43  ;;  %v3768_v1 = vmax.f32 %v10408_v62, 0.0  ;;  %v3767_v63 = vmax.f32 %v10391_v44, 0.0 }
 0x53a   : > { %v10411_v29 = vpop.f32.mrb[63].mxu1  ;;  %12060 = vst [vmem:[#allocation39_spill] sm:$0xff] %v10416_v8  ;;  %v10421_v17 = vadd.f32 %v7890_v37, %v10401_v42  ;;  %v3773_v11 = vmax.f32 %v10416_v8, 0.0  ;;  %7322 = vmatpush1.bf16.msra.mxu0 %v7321_v6 }
 0x53b   : > { %12059 = vst [vmem:[#allocation69_spill] sm:$0xff] %v10411_v29  ;;  %12062 = vst [vmem:[#allocation40_spill] sm:$0xff] %v10427_v27  ;;  %v10431_v37 = vadd.f32 %v7893_v4, %v10411_v29  ;;  %v3774_v40 = vmax.f32 %v10427_v27, 0.0  ;;  %7330 = vmatpush1.bf16.msra.mxu1 %v7329_v50 }
 0x53c   : > { %12061 = vst [vmem:[#allocation43_spill] sm:$0xff] %v10421_v17  ;;  %v3775_v25 = vmax.f32 %v10421_v17, 0.0  ;;  %v7325_v47 = vpack.c.bf16 %v3773_v11, %v3765_v31  ;;  %v10466_v11 = vpop.permute.xlu1 %3789 }
 0x53d   : > { %12063 = vst [vmem:[#allocation44_spill] sm:$0xff] %v10431_v37  ;;  %v3776_v51 = vmax.f32 %v10431_v37, 0.0  ;;  %v7323_v43 = vpack.c.bf16 %v3774_v40, %v3766_v28 }
 0x53e   : > { %v7333_v54 = vpack.c.bf16 %v3775_v25, %v3767_v63 }
 0x53f   : > { %v7331_v4 = vpack.c.bf16 %v3776_v51, %v3768_v1  ;;  %7324 = vmatprep.subr.bf16.mxu0 %v7323_v43 }
 0x540   : > { %7326 = vmatpush1.bf16.msra.mxu0 %v7325_v47 }
 0x541   : > { %7332 = vmatprep.subr.bf16.mxu1 %v7331_v4 }
 0x542   : > { %7334 = vmatpush1.bf16.msra.mxu1 %v7333_v54 }
 0x543   : > { %7029 = vmatmul.mubr.msk.f32.vlgmr.msra.gmra.mrb[120].mxu0 %vm1955_vm2, %v10207_v55 }
 0x544   : > { %4062 = vmatprep.mubr.f32.mxu0 %v11931_v39 }
 0x545   : > { %7033 = vmatmul.mubr.msk.f32.vlgmr.msra.gmra.mrb[120].mxu1 %vm1955_vm2, %v10207_v55 }
 0x546   : > { %4151 = vmatprep.mubr.f32.mxu1 %v11931_v39 }
 0x547   : > { %7030 = vmatmul.mubr.msk.f32.gmra.mrb[122].mxu0 %vm1955_vm2, %v10215_v41 }
 0x548   : > { %4068 = vmatprep.mubr.f32.mxu0 %v11931_v39 }
 0x549   : > { %7034 = vmatmul.mubr.msk.f32.gmra.mrb[122].mxu1 %vm1955_vm2, %v10215_v41  ;;  %v10464_v41 = vpop.permute.xlu0 %3784 }
 0x54a   : > { %4157 = vmatprep.mubr.f32.mxu1 %v11931_v39 }
 0x54b   : > { %7031 = vmatmul.mubr.msk.f32.gmra.mrb[124].mxu0 %vm1955_vm2, %v10226_v9 }
 0x54c   : > { %4074 = vmatprep.mubr.f32.mxu0 %v11931_v39 }
 0x54d   : > { %7035 = vmatmul.mubr.msk.f32.gmra.mrb[124].mxu1 %vm1955_vm2, %v10226_v9  ;;  %v10476_v27 = vpop.permute.xlu0 %3794 }
 0x54e   : > { %4163 = vmatprep.mubr.f32.mxu1 %v11931_v39 }
 0x54f   : > { %7032 = vmatmul.mubr.msk.f32.gmra.mrb[126].mxu0 %vm1955_vm2, %v10237_v45 }
 0x550   : > { %4308 = vmatprep.mubr.f32.mxu0 %v11931_v39 }
 0x551   : > { %7036 = vmatmul.mubr.msk.f32.gmra.mrb[126].mxu1 %vm1955_vm2, %v10237_v45 }
 0x552   : > { %4397 = vmatprep.mubr.f32.mxu1 %v11931_v39 }
 0x5c6   : > { %v3880_v6 = vpop.f32.mrb[112].mxu0 }
 0x5c7   : > { %v3882_v55 = vpop.f32.mrb[113].mxu0  ;;  %v3881_v9 = vadd.f32 %v3880_v6, %v10464_v41  ;;  %v3969_v50 = vpop.f32.mrb[112].mxu1 }
 0x5c8   : > { %v3883_v23 = vadd.f32 %v3882_v55, %v10464_v41  ;;  %v3971_v52 = vpop.f32.mrb[113].mxu1  ;;  %v3970_v25 = vadd.f32 %v3969_v50, %v10464_v41 }
 0x5c9   : > { %v4175_v31 = vmax.f32 %v3881_v9, 0.0  ;;  %v3972_v1 = vadd.f32 %v3971_v52, %v10464_v41  ;;  %v10478_v9 = vpop.permute.xlu1 %3799 }
 0x5ca   : > { %v3886_v15 = vpop.f32.mrb[114].mxu0  ;;  %v4176_v43 = vmax.f32 %v3883_v23, 0.0  ;;  %v4177_v50 = vmax.f32 %v3970_v25, 0.0 }
 0x5cb   : > { %v3887_v28 = vadd.f32 %v3886_v15, %v10466_v11  ;;  %v3888_v45 = vpop.f32.mrb[115].mxu0  ;;  %v3975_v63 = vpop.f32.mrb[114].mxu1  ;;  %v4178_v52 = vmax.f32 %v3972_v1, 0.0 }
 0x5cc   : > { %v3889_v40 = vadd.f32 %v3888_v45, %v10466_v11  ;;  %v3976_v47 = vadd.f32 %v3975_v63, %v10466_v11  ;;  %v3977_v54 = vpop.f32.mrb[115].mxu1 }
 0x5cd   : > { %v4183_v51 = vmax.f32 %v3887_v28, 0.0  ;;  %v3978_v37 = vadd.f32 %v3977_v54, %v10466_v11 }
 0x5ce   : > { %v4184_v4 = vmax.f32 %v3889_v40, 0.0  ;;  %v3892_v6 = vpop.f32.mrb[116].mxu0  ;;  %v4185_v17 = vmax.f32 %v3976_v47, 0.0 }
 0x5cf   : > { %v7337_v55 = vpack.c.bf16 %v4183_v51, %v4175_v31  ;;  %v3894_v15 = vpop.f32.mrb[117].mxu0  ;;  %v4186_v28 = vmax.f32 %v3978_v37, 0.0  ;;  %v3893_v23 = vadd.f32 %v3892_v6, %v10476_v27  ;;  %v3981_v8 = vpop.f32.mrb[116].mxu1 }
 0x5d0   : > { %v7335_v45 = vpack.c.bf16 %v4184_v4, %v4176_v43  ;;  %v7345_v63 = vpack.c.bf16 %v4185_v17, %v4177_v50  ;;  %v3895_v40 = vadd.f32 %v3894_v15, %v10476_v27  ;;  %v3983_v62 = vpop.f32.mrb[117].mxu1  ;;  %v3982_v25 = vadd.f32 %v3981_v8, %v10476_v27 }
 0x5d1   : > { %v7343_v51 = vpack.c.bf16 %v4186_v28, %v4178_v52  ;;  %v4191_v1 = vmax.f32 %v3893_v23, 0.0  ;;  %v3984_v37 = vadd.f32 %v3983_v62, %v10476_v27 }
 0x5d2   : > { %v3898_v31 = vpop.f32.mrb[118].mxu0  ;;  %7336 = vmatprep.subr.bf16.mxu0 %v7335_v45  ;;  %v4192_v17 = vmax.f32 %v3895_v40, 0.0  ;;  %v10491_v40 = vld [vmem:[%s11737_s7 + $0x40] sm:$0xff] }
 0x5d3   : > { %v3899_v54 = vadd.f32 %v3898_v31, %v10478_v9  ;;  %v3900_v58 = vpop.f32.mrb[119].mxu0  ;;  %7338 = vmatpush1.bf16.msra.mxu0 %v7337_v55  ;;  %v3987_v4 = vpop.f32.mrb[118].mxu1  ;;  %7344 = vmatprep.subr.bf16.mxu1 %v7343_v51  ;;  %v4193_v55 = vmax.f32 %v3982_v25, 0.0  ;;  %v4194_v31 = vmax.f32 %v3984_v37, 0.0  ;;  %v10510_v51 = vld [vmem:[%s11737_s7 + $0x50] sm:$0xff] }
 0x5d4   : > { %v3901_v43 = vadd.f32 %v3900_v58, %v10478_v9  ;;  %v3988_v6 = vadd.f32 %v3987_v4, %v10478_v9  ;;  %v3989_v50 = vpop.f32.mrb[119].mxu1  ;;  %7346 = vmatpush1.bf16.msra.mxu1 %v7345_v63  ;;  %v10499_v63 = vld [vmem:[%s11737_s7 + $0x48] sm:$0xff] }
 0x5d5   : > { %v4199_v47 = vmax.f32 %v3899_v54, 0.0  ;;  %v3990_v52 = vadd.f32 %v3989_v50, %v10478_v9  ;;  %v10521_v54 = vld [vmem:[%s11737_s7 + $0x58] sm:$0xff] }
 0x5d6   : > { %v4200_v15 = vmax.f32 %v3901_v43, 0.0  ;;  %v4201_v28 = vmax.f32 %v3988_v6, 0.0 }
 0x5d7   : > { %v7341_v45 = vpack.c.bf16 %v4199_v47, %v4191_v1  ;;  %v4202_v58 = vmax.f32 %v3990_v52, 0.0 }
 0x5d8   : > { %v7339_v8 = vpack.c.bf16 %v4200_v15, %v4192_v17  ;;  %v7349_v23 = vpack.c.bf16 %v4201_v28, %v4193_v55 }
 0x5d9   : > { %v7347_v62 = vpack.c.bf16 %v4202_v58, %v4194_v31 }
 0x5da   : > { %7340 = vmatprep.subr.bf16.mxu0 %v7339_v8 }
 0x5db   : > { %7342 = vmatpush1.bf16.msra.mxu0 %v7341_v45  ;;  %7348 = vmatprep.subr.bf16.mxu1 %v7347_v62 }
 0x5dc   : > { %7350 = vmatpush1.bf16.msra.mxu1 %v7349_v23 }
 0x5de   : > { %7045 = vmatmul.mubr.msk.f32.vlgmr.msra.gmra.mrb[32].mxu0 %vm1955_vm2, %v10491_v40 }
 0x5df   : > { %4314 = vmatprep.mubr.f32.mxu0 %v11931_v39  ;;  %7049 = vmatmul.mubr.msk.f32.vlgmr.msra.gmra.mrb[32].mxu1 %vm1955_vm2, %v10491_v40 }
 0x5e0   : > { %4403 = vmatprep.mubr.f32.mxu1 %v11931_v39 }
 0x5e2   : > { %7046 = vmatmul.mubr.msk.f32.gmra.mrb[34].mxu0 %vm1955_vm2, %v10499_v63 }
 0x5e3   : > { %4320 = vmatprep.mubr.f32.mxu0 %v11931_v39  ;;  %7050 = vmatmul.mubr.msk.f32.gmra.mrb[34].mxu1 %vm1955_vm2, %v10499_v63 }
 0x5e4   : > { %4409 = vmatprep.mubr.f32.mxu1 %v11931_v39 }
 0x5e6   : > { %7047 = vmatmul.mubr.msk.f32.gmra.mrb[36].mxu0 %vm1955_vm2, %v10510_v51 }
 0x5e7   : > { %4326 = vmatprep.mubr.f32.mxu0 %v11931_v39  ;;  %7051 = vmatmul.mubr.msk.f32.gmra.mrb[36].mxu1 %vm1955_vm2, %v10510_v51 }
 0x5e8   : > { %4415 = vmatprep.mubr.f32.mxu1 %v11931_v39 }
 0x5ea   : > { %7048 = vmatmul.mubr.msk.f32.gmra.mrb[38].mxu0 %vm1955_vm2, %v10521_v54 }
 0x5eb   : > { %4486 = vmatprep.mubr.f32.mxu0 %v11931_v39  ;;  %7052 = vmatmul.mubr.msk.f32.gmra.mrb[38].mxu1 %vm1955_vm2, %v10521_v54 }
 0x5ec   : > { %4575 = vmatprep.mubr.f32.mxu1 %v11931_v39 }
 0x616   : > { %v4058_v25 = vpop.f32.mrb[120].mxu0 }
 0x617   : > { %v4060_v1 = vpop.f32.mrb[121].mxu0  ;;  %v4059_v47 = vadd.f32 %v4058_v25, %v10464_v41 }
 0x618   : > { %v4147_v43 = vpop.f32.mrb[120].mxu1  ;;  %v4061_v17 = vadd.f32 %v4060_v1, %v10464_v41 }
 0x619   : > { %v4149_v37 = vpop.f32.mrb[121].mxu1  ;;  %v4148_v4 = vadd.f32 %v4147_v43, %v10464_v41  ;;  %v4179_v31 = vmax.f32 %v4059_v47, 0.0 }
 0x61a   : > { %v4064_v6 = vpop.f32.mrb[122].mxu0  ;;  %v4150_v15 = vadd.f32 %v4149_v37, %v10464_v41  ;;  %v4180_v25 = vmax.f32 %v4061_v17, 0.0 }
 0x61b   : > { %v4065_v50 = vadd.f32 %v4064_v6, %v10466_v11  ;;  %v4066_v52 = vpop.f32.mrb[123].mxu0  ;;  %v4181_v62 = vmax.f32 %v4148_v4, 0.0 }
 0x61c   : > { %v4153_v45 = vpop.f32.mrb[122].mxu1  ;;  %v4067_v28 = vadd.f32 %v4066_v52, %v10466_v11  ;;  %v4182_v59 = vmax.f32 %v4150_v15, 0.0 }
 0x61d   : > { %v4154_v55 = vadd.f32 %v4153_v45, %v10466_v11  ;;  %v4155_v8 = vpop.f32.mrb[123].mxu1  ;;  %v4187_v58 = vmax.f32 %v4065_v50, 0.0 }
 0x61e   : > { %v4156_v23 = vadd.f32 %v4155_v8, %v10466_v11  ;;  %v4188_v1 = vmax.f32 %v4067_v28, 0.0  ;;  %v4070_v44 = vpop.f32.mrb[124].mxu0 }
 0x61f   : > { %v4189_v43 = vmax.f32 %v4154_v55, 0.0  ;;  %v7353_v41 = vpack.c.bf16 %v4187_v58, %v4179_v31  ;;  %v4072_v35 = vpop.f32.mrb[125].mxu0  ;;  %v4071_v52 = vadd.f32 %v4070_v44, %v10476_v27 }
 0x620   : > { %v4190_v37 = vmax.f32 %v4156_v23, 0.0  ;;  %v4159_v6 = vpop.f32.mrb[124].mxu1  ;;  %v7351_v29 = vpack.c.bf16 %v4188_v1, %v4180_v25  ;;  %v4073_v11 = vadd.f32 %v4072_v35, %v10476_v27 }
 0x621   : > { %v7361_v56 = vpack.c.bf16 %v4189_v43, %v4181_v62  ;;  %v4161_v45 = vpop.f32.mrb[125].mxu1  ;;  %v4160_v47 = vadd.f32 %v4159_v6, %v10476_v27  ;;  %v4195_v44 = vmax.f32 %v4071_v52, 0.0  ;;  %v12065_v6 = vld [vmem:[#allocation49_spill] sm:$0xff]  ;;  %v10585_v52 = vadd.f32 nan, %v10003_v20 }
 0x622   : > { %v7359_v36 = vpack.c.bf16 %v4190_v37, %v4182_v59  ;;  %v4076_v4 = vpop.f32.mrb[126].mxu0  ;;  %7352 = vmatprep.subr.bf16.mxu0 %v7351_v29  ;;  %v4162_v17 = vadd.f32 %v4161_v45, %v10476_v27  ;;  %v4196_v29 = vmax.f32 %v4073_v11, 0.0  ;;  %v3478_v37 = vadd.f32 %v10084_v46, %v10035_v48  ;;  %v12067_v11 = vld [vmem:[#allocation7_spill] sm:$0xff] }
 0x623   : > { %v4077_v15 = vadd.f32 %v4076_v4, %v10478_v9  ;;  %v4078_v55 = vpop.f32.mrb[127].mxu0  ;;  %7354 = vmatpush1.bf16.msra.mxu0 %v7353_v41  ;;  %v4197_v58 = vmax.f32 %v4160_v47, 0.0  ;;  %v3393_v45 = vadd.f32 %v10096_v21, %v10056_v7  ;;  %v12066_v47 = vld [vmem:[#allocation50_spill] sm:$0xff]  ;;  %v3395_v4 = vadd.f32 %v12067_v11, %v10056_v7 }
 0x624   : > { %v4165_v50 = vpop.f32.mrb[126].mxu1  ;;  %7360 = vmatprep.subr.bf16.mxu1 %v7359_v36  ;;  %v4079_v59 = vadd.f32 %v4078_v55, %v10478_v9  ;;  %v4198_v62 = vmax.f32 %v4162_v17, 0.0  ;;  %v12068_v17 = vld [vmem:[#allocation51_spill] sm:$0xff]  ;;  %v12070_v55 = vld [vmem:[#allocation52_spill] sm:$0xff]  ;;  %v3405_v11 = vadd.f32 %v10156_v32, %v10146_v34 }
 0x625   : > { %v4166_v28 = vadd.f32 %v4165_v50, %v10478_v9  ;;  %v4167_v8 = vpop.f32.mrb[127].mxu1  ;;  %7362 = vmatpush1.bf16.msra.mxu1 %v7361_v56  ;;  %v4203_v31 = vmax.f32 %v4077_v15, 0.0  ;;  %v3387_v56 = vadd.f32 %v10059_v0, %v10035_v48  ;;  %v10587_v0 = vpop.permute.xlu0 %1024  ;;  %v3679_v15 = vadd.f32 %v12068_v17, %v3478_v37  ;;  %v12069_v50 = vld [vmem:[#allocation6_spill] sm:$0xff] }
 0x626   : > { %v4168_v35 = vadd.f32 %v4167_v8, %v10478_v9  ;;  %v4204_v27 = vmax.f32 %v4079_v59, 0.0  ;;  %v3389_v9 = vadd.f32 %v10071_v14, %v10035_v48  ;;  %v3484_v21 = vadd.f32 %v12069_v50, %v10056_v7  ;;  %v12071_v59 = vld [vmem:[#allocation55_spill] sm:$0xff] }
 0x627   : > { %v4205_v23 = vmax.f32 %v4166_v28, 0.0  ;;  %v7357_v25 = vpack.c.bf16 %v4203_v31, %v4195_v44  ;;  %v3684_v28 = vadd.f32 %v12070_v55, %v3393_v45  ;;  %v3399_v8 = vadd.f32 %v12071_v59, %v10122_v24  ;;  %v12072_v44 = vld [vmem:[#allocation20_spill] sm:$0xff]  ;;  %v12079_v45 = vld [vmem:[#allocation18_spill] sm:$0xff] }
 0x628   : > { %v4206_v43 = vmax.f32 %v4168_v35, 0.0  ;;  %v7355_v1 = vpack.c.bf16 %v4204_v27, %v4196_v29  ;;  %v10605_v31 = vadd.f32 nan, %v10020_v26  ;;  %v10607_v35 = vpop.permute.xlu1 %1029  ;;  %v12073_v29 = vld [vmem:[#allocation53_spill] sm:$0xff]  ;;  %v12074_v27 = vld [vmem:[#allocation54_spill] sm:$0xff]  ;;  %v10623_v37 = vadd.f32 nan, %v10075_v38 }
 0x629   : > { %v7365_v36 = vpack.c.bf16 %v4205_v23, %v4197_v58  ;;  %v12076_v26 = vld [vmem:[#allocation58_spill] sm:$0xff]  ;;  %v3494_v38 = vadd.f32 %v10161_v33, %v10146_v34 }
 0x62a   : > { %v7363_v41 = vpack.c.bf16 %v4206_v43, %v4198_v62  ;;  %7356 = vmatprep.subr.bf16.mxu0 %v7355_v1  ;;  %v3685_v62 = vadd.f32 %v12074_v27, %v3395_v4  ;;  %v3711_v43 = vadd.f32 %v3679_v15, %v10585_v52  ;;  %v12082_v27 = vld [vmem:[#allocation62_spill] sm:$0xff] }
 0x62b   : > { %7358 = vmatpush1.bf16.msra.mxu0 %v7357_v25  ;;  %v10612_v25 = vpop.permute.xlu0 %4214 }
 0x62c   : > { %7364 = vmatprep.subr.bf16.mxu1 %v7363_v41  ;;  %v7706_v15 = vadd.f32 %v3711_v43, %v10587_v0  ;;  %v10638_v50 = vpop.permute.xlu1 %4219 }
 0x62d   : > { %7366 = vmatpush1.bf16.msra.mxu1 %v7365_v36  ;;  %v12075_v36 = vld [vmem:[#allocation56_spill] sm:$0xff] }
 0x62e   : > { %7053 = vmatmul.mubr.msk.f32.vlgmr.msra.gmra.mrb[64].mxu0 %vm1955_vm2, %v10491_v40  ;;  %v3687_v1 = vadd.f32 %v12075_v36, %v3484_v21 }
 0x62f   : > { %4492 = vmatprep.mubr.f32.mxu0 %v11931_v39 }
 0x630   : > { %7057 = vmatmul.mubr.msk.f32.vlgmr.msra.gmra.mrb[64].mxu1 %vm1955_vm2, %v10491_v40  ;;  %v3476_v40 = vadd.f32 %v10069_v30, %v10035_v48  ;;  %v3482_v30 = vadd.f32 %v10101_v19, %v10056_v7  ;;  %v3488_v19 = vadd.f32 %v12072_v44, %v10122_v24  ;;  %v12081_v44 = vld [vmem:[#allocation61_spill] sm:$0xff] }
 0x631   : > { %4581 = vmatprep.mubr.f32.mxu1 %v11931_v39 }
 0x632   : > { %7054 = vmatmul.mubr.msk.f32.gmra.mrb[66].mxu0 %vm1955_vm2, %v10499_v63  ;;  %v3678_v14 = vadd.f32 %v12066_v47, %v3476_v40  ;;  %v3686_v23 = vadd.f32 %v12073_v29, %v3482_v30  ;;  %v12077_v40 = vld [vmem:[#allocation14_spill] sm:$0xff]  ;;  %v3490_v47 = vadd.f32 %v12079_v45, %v10122_v24  ;;  %v3717_v30 = vadd.f32 %v3685_v62, %v10605_v31 }
 0x633   : > { %4498 = vmatprep.mubr.f32.mxu0 %v11931_v39  ;;  %v3700_v62 = vadd.f32 %v12082_v27, %v3405_v11 }
 0x634   : > { %7058 = vmatmul.mubr.msk.f32.gmra.mrb[66].mxu1 %vm1955_vm2, %v10499_v63  ;;  %v12064_v63 = vld [vmem:[#allocation48_spill] sm:$0xff]  ;;  %v3710_v58 = vadd.f32 %v3678_v14, %v10585_v52  ;;  %v3718_v14 = vadd.f32 %v3686_v23, %v10605_v31 }
 0x635   : > { %4587 = vmatprep.mubr.f32.mxu1 %v11931_v39 }
 0x636   : > { %7055 = vmatmul.mubr.msk.f32.gmra.mrb[68].mxu0 %vm1955_vm2, %v10510_v51  ;;  %v7703_v4 = vadd.f32 %v3710_v58, %v10587_v0  ;;  %v3407_v58 = vadd.f32 %v10163_v2, %v10146_v34  ;;  %v7707_v2 = vadd.f32 %v7706_v15, %v10612_v25 }
 0x637   : > { %4504 = vmatprep.mubr.f32.mxu0 %v11931_v39 }
 0x638   : > { %7059 = vmatmul.mubr.msk.f32.gmra.mrb[68].mxu1 %vm1955_vm2, %v10510_v51  ;;  %v3676_v51 = vadd.f32 %v12064_v63, %v3387_v56  ;;  %v3716_v56 = vadd.f32 %v3684_v28, %v10605_v31  ;;  %v3401_v63 = vadd.f32 %v12077_v40, %v10122_v24  ;;  %v7704_v43 = vadd.f32 %v7703_v4, %v10612_v25 }
 0x639   : > { %4593 = vmatprep.mubr.f32.mxu1 %v11931_v39  ;;  %v7616_v40 = vadd.f32 %v3717_v30, %v10607_v35 }
 0x63a   : > { %7056 = vmatmul.mubr.msk.f32.gmra.mrb[70].mxu0 %vm1955_vm2, %v10521_v54  ;;  %v3708_v46 = vadd.f32 %v3676_v51, %v10585_v52  ;;  %v7613_v59 = vadd.f32 %v3716_v56, %v10607_v35 }
 0x63b   : > { %4802 = vmatprep.mubr.f32.mxu0 %v11931_v39 }
 0x63c   : > { %7060 = vmatmul.mubr.msk.f32.gmra.mrb[70].mxu1 %vm1955_vm2, %v10521_v54  ;;  %v3677_v54 = vadd.f32 %v12065_v6, %v3389_v9  ;;  %v7607_v41 = vadd.f32 %v3708_v46, %v10587_v0  ;;  %v3692_v9 = vadd.f32 %v12076_v26, %v3399_v8  ;;  %v12078_v6 = vld [vmem:[#allocation59_spill] sm:$0xff]  ;;  %v3719_v46 = vadd.f32 %v3687_v1, %v10605_v31  ;;  %v10646_v8 = vpop.permute.xlu0 %1034 }
 0x63d   : > { %4891 = vmatprep.mubr.f32.mxu1 %v11931_v39  ;;  %v7709_v1 = vadd.f32 %v3718_v14, %v10607_v35  ;;  %v3496_v26 = vadd.f32 %v10172_v49, %v10146_v34  ;;  %v12086_v49 = vld [vmem:[#allocation64_spill] sm:$0xff] }
 0x63e   : > { %v3709_v20 = vadd.f32 %v3677_v54, %v10585_v52  ;;  %v3694_v54 = vadd.f32 %v12078_v6, %v3488_v19  ;;  %v7608_v17 = vadd.f32 %v7607_v41, %v10612_v25  ;;  %v3724_v21 = vadd.f32 %v3692_v9, %v10623_v37  ;;  %v12083_v41 = vld [vmem:[#allocation63_spill] sm:$0xff] }
 0x63f   : > { %v3695_v19 = vadd.f32 %v12081_v44, %v3490_v47  ;;  %v3702_v56 = vadd.f32 %v12083_v41, %v3494_v38  ;;  %v7614_v47 = vadd.f32 %v7613_v59, %v10638_v50  ;;  %v3701_v14 = vadd.f32 %v12086_v49, %v3407_v58  ;;  %v10686_v38 = vpop.permute.xlu1 %1039  ;;  %v12088_v44 = vld [vmem:[#allocation65_spill] sm:$0xff] }
 0x640   : > { %v7610_v51 = vadd.f32 %v3709_v20, %v10587_v0  ;;  %v12080_v20 = vld [vmem:[#allocation60_spill] sm:$0xff]  ;;  %v3726_v33 = vadd.f32 %v3694_v54, %v10623_v37  ;;  %v7619_v30 = vadd.f32 %v3724_v21, %v10646_v8  ;;  %v3703_v58 = vadd.f32 %v12088_v44, %v3496_v26 }
 0x641   : > { %v3693_v55 = vadd.f32 %v12080_v20, %v3401_v63  ;;  %v10669_v63 = vadd.f32 nan, %v10106_v22  ;;  %v7712_v22 = vadd.f32 %v3719_v46, %v10607_v35  ;;  %v7617_v46 = vadd.f32 %v7616_v40, %v10638_v50 }
 0x642   : > { %v7611_v32 = vadd.f32 %v7610_v51, %v10612_v25  ;;  %v7715_v21 = vadd.f32 %v3726_v33, %v10646_v8 }
 0x643   : > { %v3725_v51 = vadd.f32 %v3693_v55, %v10623_v37  ;;  %v3732_v15 = vadd.f32 %v3700_v62, %v10669_v63  ;;  %v7710_v55 = vadd.f32 %v7709_v1, %v10638_v50  ;;  %v3734_v59 = vadd.f32 %v3702_v56, %v10669_v63 }
 0x644   : > { %v3733_v56 = vadd.f32 %v3701_v14, %v10669_v63  ;;  %v3735_v44 = vadd.f32 %v3703_v58, %v10669_v63 }
 0x645   : > { %v7622_v1 = vadd.f32 %v3725_v51, %v10646_v8 }
 0x6b1   : > { %v10642_v28 = vpop.f32.mrb[32].mxu0 }
 0x6b2   : > { %v7609_v29 = vadd.f32 %v7608_v17, %v10642_v28  ;;  %v10653_v23 = vpop.f32.mrb[33].mxu0  ;;  %v10664_v9 = vpop.f32.mrb[32].mxu1  ;;  %v3727_v17 = vadd.f32 %v3695_v19, %v10623_v37 }
 0x6b3   : > { %v10658_v36 = vadd.f32 %v7611_v32, %v10653_v23  ;;  %v7705_v6 = vadd.f32 %v7704_v43, %v10664_v9  ;;  %v10673_v54 = vpop.f32.mrb[33].mxu1  ;;  %v10692_v32 = vpop.permute.xlu0 %4224 }
 0x6b4   : > { %12084 = vst [vmem:[#allocation46_spill] sm:$0xff] %v10673_v54  ;;  %v10680_v11 = vadd.f32 %v7707_v2, %v10673_v54  ;;  %v4669_v43 = vmax.f32 %v7609_v29, 0.0  ;;  %v7620_v40 = vadd.f32 %v7619_v30, %v10692_v32  ;;  %v7716_v14 = vadd.f32 %v7715_v21, %v10692_v32 }
 0x6b5   : > { %v10675_v45 = vpop.f32.mrb[34].mxu0  ;;  %v4671_v33 = vmax.f32 %v7705_v6, 0.0 }
 0x6b6   : > { %12085 = vst [vmem:[#allocation47_spill] sm:$0xff] %v10675_v45  ;;  %v10682_v4 = vpop.f32.mrb[35].mxu0  ;;  %v7615_v20 = vadd.f32 %v7614_v47, %v10675_v45  ;;  %v10696_v27 = vpop.f32.mrb[34].mxu1  ;;  %v7713_v47 = vadd.f32 %v7712_v22, %v10638_v50 }
 0x6b7   : > { %12087 = vst [vmem:[#allocation48_spill] sm:$0xff] %v10682_v4  ;;  %12089 = vst [vmem:[#allocation49_spill] sm:$0xff] %v10696_v27  ;;  %v7711_v62 = vadd.f32 %v7710_v55, %v10696_v27  ;;  %v10701_v41 = vpop.f32.mrb[35].mxu1  ;;  %v7618_v26 = vadd.f32 %v7617_v46, %v10682_v4  ;;  %v7718_v55 = vadd.f32 %v3727_v17, %v10646_v8 }
 0x6b8   : > { %v4677_v19 = vmax.f32 %v7615_v20, 0.0  ;;  %12090 = vst [vmem:[#allocation50_spill] sm:$0xff] %v10701_v41  ;;  %v7714_v27 = vadd.f32 %v7713_v47, %v10701_v41  ;;  %v7625_v46 = vadd.f32 %v3732_v15, %v10686_v38  ;;  %v7623_v4 = vadd.f32 %v7622_v1, %v10692_v32 }
 0x6b9   : > { %v10703_v2 = vpop.f32.mrb[36].mxu0  ;;  %v4679_v20 = vmax.f32 %v7711_v62, 0.0  ;;  %v7721_v17 = vadd.f32 %v3734_v59, %v10686_v38  ;;  %v10729_v62 = vpop.permute.xlu1 %4229  ;;  %v7719_v15 = vadd.f32 %v7718_v55, %v10692_v32  ;;  %v4678_v47 = vmax.f32 %v7618_v26, 0.0 }
 0x6ba   : > { %12091 = vst [vmem:[#allocation7_spill] sm:$0xff] %v10703_v2  ;;  %v10710_v49 = vpop.f32.mrb[37].mxu0  ;;  %v7369_v29 = vpack.c.bf16 %v4677_v19, %v4669_v43  ;;  %v10715_v51 = vpop.f32.mrb[36].mxu1  ;;  %v7621_v30 = vadd.f32 %v7620_v40, %v10703_v2  ;;  %v7626_v40 = vadd.f32 %v7625_v46, %v10729_v62  ;;  %v7724_v2 = vadd.f32 %v3735_v44, %v10686_v38 }
 0x6bb   : > { %12092 = vst [vmem:[#allocation51_spill] sm:$0xff] %v10710_v49  ;;  %12093 = vst [vmem:[#allocation6_spill] sm:$0xff] %v10715_v51  ;;  %v7377_v22 = vpack.c.bf16 %v4679_v20, %v4671_v33  ;;  %v10721_v6 = vpop.f32.mrb[37].mxu1  ;;  %v7717_v58 = vadd.f32 %v7716_v14, %v10715_v51  ;;  %v7624_v21 = vadd.f32 %v7623_v4, %v10710_v49  ;;  %v4680_v20 = vmax.f32 %v7714_v27, 0.0 }
 0x6bc   : > { %12094 = vst [vmem:[#allocation52_spill] sm:$0xff] %v10721_v6  ;;  %v7628_v33 = vadd.f32 %v3733_v56, %v10686_v38  ;;  %v7720_v59 = vadd.f32 %v7719_v15, %v10721_v6  ;;  %v7722_v14 = vadd.f32 %v7721_v17, %v10729_v62  ;;  %v4670_v4 = vmax.f32 %v10658_v36, 0.0 }
 0x6bd   : > { %v10723_v43 = vpop.f32.mrb[38].mxu0  ;;  %v4672_v26 = vmax.f32 %v10680_v11, 0.0  ;;  %v4685_v49 = vmax.f32 %v7621_v30, 0.0  ;;  %v4687_v15 = vmax.f32 %v7717_v58, 0.0  ;;  %v7725_v45 = vadd.f32 %v7724_v2, %v10729_v62  ;;  %v10785_v2 = vld [vmem:[%s11735_s5 + $0x78] sm:$0xff] }
 0x6be   : > { %v10727_v19 = vpop.f32.mrb[39].mxu0  ;;  %v10734_v1 = vpop.f32.mrb[38].mxu1  ;;  %v7627_v55 = vadd.f32 %v7626_v40, %v10723_v43  ;;  %v7367_v56 = vpack.c.bf16 %v4678_v47, %v4670_v4  ;;  %v7629_v27 = vadd.f32 %v7628_v33, %v10729_v62  ;;  %v4686_v40 = vmax.f32 %v7624_v21, 0.0  ;;  %v12095_v21 = vld [vmem:[#allocation22_spill] sm:$0xff] }
 0x6bf   : > { %v10739_v51 = vpop.f32.mrb[39].mxu1  ;;  %v7723_v46 = vadd.f32 %v7722_v14, %v10734_v1  ;;  %v7375_v17 = vpack.c.bf16 %v4680_v20, %v4672_v26  ;;  %v4688_v47 = vmax.f32 %v7720_v59, 0.0  ;;  %v12096_v59 = vld [vmem:[#allocation23_spill] sm:$0xff] }
 0x6c0   : > { %v4693_v41 = vmax.f32 %v7627_v55, 0.0  ;;  %7368 = vmatprep.subr.bf16.mxu0 %v7367_v56  ;;  %v7630_v36 = vadd.f32 %v7629_v27, %v10727_v19  ;;  %v7726_v11 = vadd.f32 %v7725_v45, %v10739_v51  ;;  %v10763_v45 = vld [vmem:[%s11735_s5 + $0x68] sm:$0xff]  ;;  %v12098_v56 = vld [vmem:[#allocation32_spill] sm:$0xff] }
 0x6c1   : > { %v4695_v6 = vmax.f32 %v7723_v46, 0.0  ;;  %7376 = vmatprep.subr.bf16.mxu1 %v7375_v17  ;;  %7370 = vmatpush1.bf16.msra.mxu0 %v7369_v29  ;;  %v3654_v29 = vadd.f32 %v10322_v3, %v10035_v48  ;;  %v12097_v55 = vld [vmem:[#allocation31_spill] sm:$0xff]  ;;  %v3571_v46 = vadd.f32 %v10333_v60, %v10056_v7  ;;  %v3660_v3 = vadd.f32 %v10351_v12, %v10056_v7  ;;  %v12100_v12 = vld [vmem:[#allocation37_spill] sm:$0xff] }
 0x6c2   : > { %v7373_v54 = vpack.c.bf16 %v4693_v41, %v4685_v49  ;;  %v4694_v30 = vmax.f32 %v7630_v36, 0.0  ;;  %7378 = vmatpush1.bf16.msra.mxu1 %v7377_v22  ;;  %v4696_v14 = vmax.f32 %v7726_v11, 0.0  ;;  %v10753_v41 = vld [vmem:[%s11735_s5 + $0x60] sm:$0xff]  ;;  %v3565_v49 = vadd.f32 %v10300_v10, %v10035_v48  ;;  %v12099_v17 = vld [vmem:[#allocation35_spill] sm:$0xff] }
 0x6c3   : > { %v7381_v44 = vpack.c.bf16 %v4695_v6, %v4687_v15  ;;  %v3567_v22 = vadd.f32 %v10310_v16, %v10035_v48  ;;  %v3656_v6 = vadd.f32 %v10331_v57, %v10035_v48  ;;  %v3682_v4 = vadd.f32 %v12096_v59, %v3654_v29 }
 0x6c4   : > { %v7371_v33 = vpack.c.bf16 %v4694_v30, %v4686_v40  ;;  %v7379_v58 = vpack.c.bf16 %v4696_v14, %v4688_v47  ;;  %v3680_v20 = vadd.f32 %v12095_v21, %v3565_v49  ;;  %v3573_v16 = vadd.f32 %v10340_v13, %v10056_v7  ;;  %v12101_v40 = vld [vmem:[#allocation41_spill] sm:$0xff]  ;;  %v12102_v30 = vld [vmem:[#allocation66_spill] sm:$0xff] }
 0x6c5   : > { %v3681_v26 = vadd.f32 %v12097_v55, %v3567_v22  ;;  %v3683_v10 = vadd.f32 %v12098_v56, %v3656_v6  ;;  %v3662_v48 = vadd.f32 %v10359_v5, %v10056_v7  ;;  %v3577_v57 = vadd.f32 %v10361_v53, %v10122_v24  ;;  %v12103_v7 = vld [vmem:[#allocation70_spill] sm:$0xff]  ;;  %v12106_v55 = vld [vmem:[#allocation71_spill] sm:$0xff] }
 0x6c6   : > { %7372 = vmatprep.subr.bf16.mxu0 %v7371_v33  ;;  %7380 = vmatprep.subr.bf16.mxu1 %v7379_v58  ;;  %v3712_v27 = vadd.f32 %v3680_v20, %v10585_v52  ;;  %v3714_v15 = vadd.f32 %v3682_v4, %v10585_v52  ;;  %v3688_v36 = vadd.f32 %v12099_v17, %v3571_v46  ;;  %v12104_v14 = vld [vmem:[#allocation42_spill] sm:$0xff]  ;;  %v12105_v58 = vld [vmem:[#allocation24_spill] sm:$0xff] }
 0x6c7   : > { %7374 = vmatpush1.bf16.msra.mxu0 %v7373_v54  ;;  %7382 = vmatpush1.bf16.msra.mxu1 %v7381_v44  ;;  %v10774_v54 = vld [vmem:[%s11735_s5 + $0x70] sm:$0xff]  ;;  %v3713_v60 = vadd.f32 %v3681_v26, %v10585_v52  ;;  %v3715_v44 = vadd.f32 %v3683_v10, %v10585_v52  ;;  %v3690_v11 = vadd.f32 %v12100_v12, %v3660_v3  ;;  %v12108_v10 = vld [vmem:[#allocation73_spill] sm:$0xff]  ;;  %v12109_v3 = vld [vmem:[#allocation74_spill] sm:$0xff] }
 0x6c8   : > { %v3689_v13 = vadd.f32 %v12101_v40, %v3573_v16  ;;  %v3691_v47 = vadd.f32 %v12102_v30, %v3662_v48  ;;  %v3696_v5 = vadd.f32 %v12103_v7, %v3577_v57  ;;  %v3666_v53 = vadd.f32 %v10377_v61, %v10122_v24  ;;  %v12107_v46 = vld [vmem:[#allocation72_spill] sm:$0xff]  ;;  %v12110_v57 = vld [vmem:[#allocation75_spill] sm:$0xff] }
 0x6c9   : > { %v3579_v33 = vadd.f32 %v12104_v14, %v10122_v24  ;;  %v3668_v49 = vadd.f32 %v12105_v58, %v10122_v24  ;;  %v3583_v52 = vadd.f32 %v10387_v18, %v10146_v34  ;;  %v7799_v29 = vadd.f32 %v3712_v27, %v10587_v0  ;;  %v12112_v58 = vld [vmem:[#allocation69_spill] sm:$0xff] }
 0x6ca   : > { %7069 = vmatmul.mubr.msk.f32.vlgmr.msra.gmra.mrb[128].mxu0 %vm1955_vm2, %v10753_v41  ;;  %7073 = vmatmul.mubr.msk.f32.vlgmr.msra.gmra.mrb[128].mxu1 %vm1955_vm2, %v10753_v41  ;;  %v3720_v22 = vadd.f32 %v3688_v36, %v10605_v31  ;;  %v3672_v6 = vadd.f32 %v10401_v42, %v10146_v34  ;;  %v7895_v21 = vadd.f32 %v3714_v15, %v10587_v0  ;;  %v12111_v36 = vld [vmem:[#allocation68_spill] sm:$0xff] }
 0x6cb   : > { %4808 = vmatprep.mubr.f32.mxu0 %v11931_v39  ;;  %4897 = vmatprep.mubr.f32.mxu1 %v11931_v39  ;;  %v7802_v61 = vadd.f32 %v3713_v60, %v10587_v0  ;;  %v3722_v20 = vadd.f32 %v3690_v11, %v10605_v31  ;;  %v7898_v59 = vadd.f32 %v3715_v44, %v10587_v0 }
 0x6cc   : > { %v3721_v24 = vadd.f32 %v3689_v13, %v10605_v31  ;;  %v3723_v4 = vadd.f32 %v3691_v47, %v10605_v31  ;;  %v3728_v18 = vadd.f32 %v3696_v5, %v10623_v37  ;;  %v3698_v26 = vadd.f32 %v12106_v55, %v3666_v53 }
 0x6cd   : > { %v3697_v56 = vadd.f32 %v12107_v46, %v3579_v33  ;;  %v3699_v42 = vadd.f32 %v12108_v10, %v3668_v49  ;;  %v3704_v16 = vadd.f32 %v12109_v3, %v3583_v52  ;;  %v7800_v48 = vadd.f32 %v7799_v29, %v10612_v25 }
 0x6ce   : > { %7070 = vmatmul.mubr.msk.f32.gmra.mrb[130].mxu0 %vm1955_vm2, %v10763_v45  ;;  %7074 = vmatmul.mubr.msk.f32.gmra.mrb[130].mxu1 %vm1955_vm2, %v10763_v45  ;;  %v3706_v27 = vadd.f32 %v12110_v57, %v3672_v6  ;;  %v7896_v60 = vadd.f32 %v7895_v21, %v10612_v25  ;;  %v7803_v31 = vadd.f32 %v7802_v61, %v10612_v25 }
 0x6cf   : > { %4814 = vmatprep.mubr.f32.mxu0 %v11931_v39  ;;  %4903 = vmatprep.mubr.f32.mxu1 %v11931_v39  ;;  %v7805_v17 = vadd.f32 %v3720_v22, %v10607_v35  ;;  %v3585_v44 = vadd.f32 %v12111_v36, %v10146_v34  ;;  %v7899_v13 = vadd.f32 %v7898_v59, %v10612_v25  ;;  %v12113_v59 = vld [vmem:[#allocation76_spill] sm:$0xff] }
 0x6d0   : > { %v7901_v30 = vadd.f32 %v3722_v20, %v10607_v35  ;;  %v3730_v47 = vadd.f32 %v3698_v26, %v10623_v37  ;;  %v7808_v14 = vadd.f32 %v3721_v24, %v10607_v35  ;;  %v3729_v33 = vadd.f32 %v3697_v56, %v10623_v37 }
 0x6d1   : > { %v3674_v49 = vadd.f32 %v12112_v58, %v10146_v34  ;;  %v7904_v29 = vadd.f32 %v3723_v4, %v10607_v35  ;;  %v3731_v22 = vadd.f32 %v3699_v42, %v10623_v37  ;;  %v7806_v21 = vadd.f32 %v7805_v17, %v10638_v50  ;;  %v12114_v42 = vld [vmem:[#allocation77_spill] sm:$0xff] }
 0x6d2   : > { %7071 = vmatmul.mubr.msk.f32.gmra.mrb[132].mxu0 %vm1955_vm2, %v10774_v54  ;;  %7075 = vmatmul.mubr.msk.f32.gmra.mrb[132].mxu1 %vm1955_vm2, %v10774_v54  ;;  %v3736_v61 = vadd.f32 %v3704_v16, %v10669_v63  ;;  %v3738_v20 = vadd.f32 %v3706_v27, %v10669_v63  ;;  %v3705_v24 = vadd.f32 %v12113_v59, %v3585_v44 }
 0x6d3   : > { %4820 = vmatprep.mubr.f32.mxu0 %v11931_v39  ;;  %4909 = vmatprep.mubr.f32.mxu1 %v11931_v39  ;;  %v7902_v34 = vadd.f32 %v7901_v30, %v10638_v50  ;;  %v7809_v37 = vadd.f32 %v7808_v14, %v10638_v50  ;;  %v7811_v56 = vadd.f32 %v3728_v18, %v10646_v8 }
 0x6d4   : > { %v7907_v10 = vadd.f32 %v3730_v47, %v10646_v8  ;;  %v3707_v3 = vadd.f32 %v12114_v42, %v3674_v49  ;;  %v7814_v57 = vadd.f32 %v3729_v33, %v10646_v8  ;;  %v7910_v36 = vadd.f32 %v3731_v22, %v10646_v8 }
 0x6d5   : > { %v3737_v18 = vadd.f32 %v3705_v24, %v10669_v63 }
 0x6d6   : > { %7072 = vmatmul.mubr.msk.f32.gmra.mrb[134].mxu0 %vm1955_vm2, %v10785_v2  ;;  %7076 = vmatmul.mubr.msk.f32.gmra.mrb[134].mxu1 %vm1955_vm2, %v10785_v2  ;;  %v7908_v33 = vadd.f32 %v7907_v10, %v10692_v32  ;;  %v3739_v59 = vadd.f32 %v3707_v3, %v10669_v63 }
 0x6d7   : > { %4980 = vmatprep.mubr.f32.mxu0 %v11931_v39  ;;  %5069 = vmatprep.mubr.f32.mxu1 %v11931_v39  ;;  %v7820_v42 = vadd.f32 %v3737_v18, %v10686_v38 }
 0x701   : > { %v10850_v15 = vpop.f32.mrb[64].mxu0 }
 0x702   : > { %v7801_v12 = vadd.f32 %v7800_v48, %v10850_v15  ;;  %v10860_v40 = vpop.f32.mrb[65].mxu0  ;;  %v7905_v48 = vadd.f32 %v7904_v29, %v10638_v50  ;;  %v7817_v29 = vadd.f32 %v3736_v61, %v10686_v38 }
 0x703   : > { %v10858_v11 = vpop.f32.mrb[64].mxu1  ;;  %v10867_v5 = vadd.f32 %v7803_v31, %v10860_v40 }
 0x704   : > { %v7897_v7 = vadd.f32 %v7896_v60, %v10858_v11  ;;  %v10869_v53 = vpop.f32.mrb[65].mxu1  ;;  %v4673_v27 = vmax.f32 %v7801_v12, 0.0  ;;  %v7812_v12 = vadd.f32 %v7811_v56, %v10692_v32  ;;  %v7818_v3 = vadd.f32 %v7817_v29, %v10729_v62 }
 0x705   : > { %v10876_v52 = vadd.f32 %v7899_v13, %v10869_v53  ;;  %v10880_v6 = vpop.f32.mrb[66].mxu0 }
 0x706   : > { %v10889_v26 = vpop.f32.mrb[67].mxu0  ;;  %v7807_v4 = vadd.f32 %v7806_v21, %v10880_v6  ;;  %v4675_v44 = vmax.f32 %v7897_v7, 0.0  ;;  %v7815_v21 = vadd.f32 %v7814_v57, %v10692_v32  ;;  %v7913_v7 = vadd.f32 %v3738_v20, %v10686_v38 }
 0x707   : > { %v10886_v55 = vpop.f32.mrb[66].mxu1  ;;  %v7810_v31 = vadd.f32 %v7809_v37, %v10889_v26 }
 0x708   : > { %v10893_v46 = vpop.f32.mrb[67].mxu1  ;;  %v7903_v16 = vadd.f32 %v7902_v34, %v10886_v55  ;;  %v4681_v60 = vmax.f32 %v7807_v4, 0.0  ;;  %v7911_v4 = vadd.f32 %v7910_v36, %v10692_v32  ;;  %v7914_v57 = vadd.f32 %v7913_v7, %v10729_v62 }
 0x709   : > { %v10902_v17 = vpop.f32.mrb[68].mxu0  ;;  %v7906_v30 = vadd.f32 %v7905_v48, %v10893_v46 }
 0x70a   : > { %v4683_v13 = vmax.f32 %v7903_v16, 0.0  ;;  %v10909_v14 = vpop.f32.mrb[69].mxu0  ;;  %v7385_v58 = vpack.c.bf16 %v4681_v60, %v4673_v27  ;;  %v7813_v24 = vadd.f32 %v7812_v12, %v10902_v17  ;;  %v4682_v16 = vmax.f32 %v7810_v31, 0.0 }
 0x70b   : > { %v10907_v47 = vpop.f32.mrb[68].mxu1  ;;  %v7816_v56 = vadd.f32 %v7815_v21, %v10909_v14  ;;  %v4684_v20 = vmax.f32 %v7906_v30, 0.0  ;;  %v4674_v27 = vmax.f32 %v10867_v5, 0.0  ;;  %v4676_v60 = vmax.f32 %v10876_v52, 0.0 }
 0x70c   : > { %v10913_v49 = vpop.f32.mrb[69].mxu1  ;;  %v7393_v22 = vpack.c.bf16 %v4683_v13, %v4675_v44  ;;  %v7909_v34 = vadd.f32 %v7908_v33, %v10907_v47  ;;  %v7916_v44 = vadd.f32 %v3739_v59, %v10686_v38  ;;  %v7821_v31 = vadd.f32 %v7820_v42, %v10729_v62 }
 0x70d   : > { %v10922_v37 = vpop.f32.mrb[70].mxu0  ;;  %v7912_v63 = vadd.f32 %v7911_v4, %v10913_v49  ;;  %v4689_v13 = vmax.f32 %v7813_v24, 0.0  ;;  %v7383_v12 = vpack.c.bf16 %v4682_v16, %v4674_v27  ;;  %v7391_v33 = vpack.c.bf16 %v4684_v20, %v4676_v60  ;;  %v10971_v20 = vpop.permute.xlu1 %4713 }
 0x70e   : > { %v10927_v61 = vpop.f32.mrb[71].mxu0  ;;  %v7819_v36 = vadd.f32 %v7818_v3, %v10922_v37  ;;  %v4691_v29 = vmax.f32 %v7909_v34, 0.0  ;;  %v7917_v5 = vadd.f32 %v7916_v44, %v10729_v62  ;;  %v4690_v52 = vmax.f32 %v7816_v56, 0.0 }
 0x70f   : > { %v10925_v10 = vpop.f32.mrb[70].mxu1  ;;  %v7822_v7 = vadd.f32 %v7821_v31, %v10927_v61  ;;  %7384 = vmatprep.subr.bf16.mxu0 %v7383_v12  ;;  %7392 = vmatprep.subr.bf16.mxu1 %v7391_v33 }
 0x710   : > { %v10932_v48 = vpop.f32.mrb[71].mxu1  ;;  %v7915_v18 = vadd.f32 %v7914_v57, %v10925_v10  ;;  %v4697_v30 = vmax.f32 %v7819_v36, 0.0  ;;  %7386 = vmatpush1.bf16.msra.mxu0 %v7385_v58  ;;  %7394 = vmatpush1.bf16.msra.mxu1 %v7393_v22  ;;  %v4692_v57 = vmax.f32 %v7912_v63, 0.0  ;;  %v10968_v22 = vpop.permute.xlu0 %4708 }
 0x711   : > { %v4698_v59 = vmax.f32 %v7822_v7, 0.0  ;;  %v7918_v42 = vadd.f32 %v7917_v5, %v10932_v48 }
 0x712   : > { %v4699_v21 = vmax.f32 %v7915_v18, 0.0  ;;  %v7389_v4 = vpack.c.bf16 %v4697_v30, %v4689_v13 }
 0x713   : > { %v7387_v24 = vpack.c.bf16 %v4698_v59, %v4690_v52  ;;  %v4700_v16 = vmax.f32 %v7918_v42, 0.0 }
 0x714   : > { %v7397_v3 = vpack.c.bf16 %v4699_v21, %v4691_v29 }
 0x715   : > { %7388 = vmatprep.subr.bf16.mxu0 %v7387_v24  ;;  %v7395_v34 = vpack.c.bf16 %v4700_v16, %v4692_v57  ;;  %v10980_v16 = vpop.permute.xlu0 %4718 }
 0x716   : > { %7390 = vmatpush1.bf16.msra.mxu0 %v7389_v4 }
 0x717   : > { %7396 = vmatprep.subr.bf16.mxu1 %v7395_v34 }
 0x718   : > { %7398 = vmatpush1.bf16.msra.mxu1 %v7397_v3 }
 0x719   : > { %7077 = vmatmul.mubr.msk.f32.vlgmr.msra.gmra.mrb[136].mxu0 %vm1955_vm2, %v10753_v41 }
 0x71a   : > { %4986 = vmatprep.mubr.f32.mxu0 %v11931_v39 }
 0x71b   : > { %7081 = vmatmul.mubr.msk.f32.vlgmr.msra.gmra.mrb[136].mxu1 %vm1955_vm2, %v10753_v41 }
 0x71c   : > { %5075 = vmatprep.mubr.f32.mxu1 %v11931_v39 }
 0x71d   : > { %7078 = vmatmul.mubr.msk.f32.gmra.mrb[138].mxu0 %vm1955_vm2, %v10763_v45 }
 0x71e   : > { %4992 = vmatprep.mubr.f32.mxu0 %v11931_v39 }
 0x71f   : > { %7082 = vmatmul.mubr.msk.f32.gmra.mrb[138].mxu1 %vm1955_vm2, %v10763_v45 }
 0x720   : > { %5081 = vmatprep.mubr.f32.mxu1 %v11931_v39 }
 0x721   : > { %7079 = vmatmul.mubr.msk.f32.gmra.mrb[140].mxu0 %vm1955_vm2, %v10774_v54 }
 0x722   : > { %4998 = vmatprep.mubr.f32.mxu0 %v11931_v39 }
 0x723   : > { %7083 = vmatmul.mubr.msk.f32.gmra.mrb[140].mxu1 %vm1955_vm2, %v10774_v54 }
 0x724   : > { %5087 = vmatprep.mubr.f32.mxu1 %v11931_v39 }
 0x725   : > { %7080 = vmatmul.mubr.msk.f32.gmra.mrb[142].mxu0 %vm1955_vm2, %v10785_v2 }
 0x726   : > { %5232 = vmatprep.mubr.f32.mxu0 %v11931_v39 }
 0x727   : > { %7084 = vmatmul.mubr.msk.f32.gmra.mrb[142].mxu1 %vm1955_vm2, %v10785_v2 }
 0x728   : > { %5321 = vmatprep.mubr.f32.mxu1 %v11931_v39 }
 0x79d   : > { %v4804_v41 = vpop.f32.mrb[128].mxu0  ;;  %v4893_v45 = vpop.f32.mrb[128].mxu1 }
 0x79e   : > { %v4806_v58 = vpop.f32.mrb[129].mxu0  ;;  %v4895_v56 = vpop.f32.mrb[129].mxu1  ;;  %v4805_v54 = vadd.f32 %v4804_v41, %v10968_v22  ;;  %v4894_v63 = vadd.f32 %v4893_v45, %v10968_v22 }
 0x79f   : > { %v4807_v27 = vadd.f32 %v4806_v58, %v10968_v22  ;;  %v4896_v36 = vadd.f32 %v4895_v56, %v10968_v22 }
 0x7a0   : > { %v5099_v12 = vmax.f32 %v4805_v54, 0.0  ;;  %v5101_v21 = vmax.f32 %v4894_v63, 0.0  ;;  %v10983_v54 = vpop.permute.xlu1 %4723 }
 0x7a1   : > { %v4810_v60 = vpop.f32.mrb[130].mxu0  ;;  %v4899_v44 = vpop.f32.mrb[130].mxu1  ;;  %v5100_v7 = vmax.f32 %v4807_v27, 0.0  ;;  %v5102_v3 = vmax.f32 %v4896_v36, 0.0 }
 0x7a2   : > { %v4811_v2 = vadd.f32 %v4810_v60, %v10971_v20  ;;  %v4812_v18 = vpop.f32.mrb[131].mxu0  ;;  %v4900_v31 = vadd.f32 %v4899_v44, %v10971_v20  ;;  %v4901_v30 = vpop.f32.mrb[131].mxu1 }
 0x7a3   : > { %v4813_v13 = vadd.f32 %v4812_v18, %v10971_v20  ;;  %v4902_v29 = vadd.f32 %v4901_v30, %v10971_v20 }
 0x7a4   : > { %v5107_v33 = vmax.f32 %v4811_v2, 0.0  ;;  %v5109_v4 = vmax.f32 %v4900_v31, 0.0 }
 0x7a5   : > { %v5108_v5 = vmax.f32 %v4813_v13, 0.0  ;;  %v4816_v52 = vpop.f32.mrb[132].mxu0  ;;  %v5110_v42 = vmax.f32 %v4902_v29, 0.0  ;;  %v4905_v24 = vpop.f32.mrb[132].mxu1 }
 0x7a6   : > { %v7401_v59 = vpack.c.bf16 %v5107_v33, %v5099_v12  ;;  %v4818_v57 = vpop.f32.mrb[133].mxu0  ;;  %v7409_v34 = vpack.c.bf16 %v5109_v4, %v5101_v21  ;;  %v4907_v45 = vpop.f32.mrb[133].mxu1  ;;  %v4817_v56 = vadd.f32 %v4816_v52, %v10980_v16  ;;  %v4906_v63 = vadd.f32 %v4905_v24, %v10980_v16 }
 0x7a7   : > { %v7399_v41 = vpack.c.bf16 %v5108_v5, %v5100_v7  ;;  %v7407_v58 = vpack.c.bf16 %v5110_v42, %v5102_v3  ;;  %v4819_v27 = vadd.f32 %v4818_v57, %v10980_v16  ;;  %v4908_v36 = vadd.f32 %v4907_v45, %v10980_v16  ;;  %v11016_v45 = vld [vmem:[%s11737_s7 + $0x70] sm:$0xff] }
 0x7a8   : > { %v5115_v12 = vmax.f32 %v4817_v56, 0.0  ;;  %v5117_v21 = vmax.f32 %v4906_v63, 0.0 }
 0x7a9   : > { %v4822_v60 = vpop.f32.mrb[134].mxu0  ;;  %7400 = vmatprep.subr.bf16.mxu0 %v7399_v41  ;;  %v4911_v44 = vpop.f32.mrb[134].mxu1  ;;  %7408 = vmatprep.subr.bf16.mxu1 %v7407_v58  ;;  %v5116_v7 = vmax.f32 %v4819_v27, 0.0  ;;  %v5118_v52 = vmax.f32 %v4908_v36, 0.0  ;;  %v11005_v41 = vld [vmem:[%s11737_s7 + $0x68] sm:$0xff]  ;;  %v11027_v58 = vld [vmem:[%s11737_s7 + $0x78] sm:$0xff] }
 0x7aa   : > { %v4823_v2 = vadd.f32 %v4822_v60, %v10983_v54  ;;  %v4824_v18 = vpop.f32.mrb[135].mxu0  ;;  %7402 = vmatpush1.bf16.msra.mxu0 %v7401_v59  ;;  %v4912_v31 = vadd.f32 %v4911_v44, %v10983_v54  ;;  %v4913_v30 = vpop.f32.mrb[135].mxu1  ;;  %7410 = vmatpush1.bf16.msra.mxu1 %v7409_v34  ;;  %v10995_v34 = vld [vmem:[%s11737_s7 + $0x60] sm:$0xff] }
 0x7ab   : > { %v4825_v13 = vadd.f32 %v4824_v18, %v10983_v54  ;;  %v4914_v29 = vadd.f32 %v4913_v30, %v10983_v54 }
 0x7ac   : > { %v5123_v33 = vmax.f32 %v4823_v2, 0.0  ;;  %v5125_v4 = vmax.f32 %v4912_v31, 0.0 }
 0x7ad   : > { %v5124_v5 = vmax.f32 %v4825_v13, 0.0  ;;  %v5126_v42 = vmax.f32 %v4914_v29, 0.0 }
 0x7ae   : > { %v7405_v3 = vpack.c.bf16 %v5123_v33, %v5115_v12  ;;  %v7413_v24 = vpack.c.bf16 %v5125_v4, %v5117_v21 }
 0x7af   : > { %v7403_v57 = vpack.c.bf16 %v5124_v5, %v5116_v7  ;;  %v7411_v59 = vpack.c.bf16 %v5126_v42, %v5118_v52 }
 0x7b1   : > { %7404 = vmatprep.subr.bf16.mxu0 %v7403_v57  ;;  %7412 = vmatprep.subr.bf16.mxu1 %v7411_v59 }
 0x7b2   : > { %7406 = vmatpush1.bf16.msra.mxu0 %v7405_v3  ;;  %7414 = vmatpush1.bf16.msra.mxu1 %v7413_v24 }
 0x7b5   : > { %7093 = vmatmul.mubr.msk.f32.vlgmr.msra.gmra.mrb[40].mxu0 %vm1955_vm2, %v10995_v34  ;;  %7097 = vmatmul.mubr.msk.f32.vlgmr.msra.gmra.mrb[40].mxu1 %vm1955_vm2, %v10995_v34 }
 0x7b6   : > { %5238 = vmatprep.mubr.f32.mxu0 %v11931_v39  ;;  %5327 = vmatprep.mubr.f32.mxu1 %v11931_v39 }
 0x7b9   : > { %7094 = vmatmul.mubr.msk.f32.gmra.mrb[42].mxu0 %vm1955_vm2, %v11005_v41  ;;  %7098 = vmatmul.mubr.msk.f32.gmra.mrb[42].mxu1 %vm1955_vm2, %v11005_v41 }
 0x7ba   : > { %5244 = vmatprep.mubr.f32.mxu0 %v11931_v39  ;;  %5333 = vmatprep.mubr.f32.mxu1 %v11931_v39 }
 0x7bd   : > { %7095 = vmatmul.mubr.msk.f32.gmra.mrb[44].mxu0 %vm1955_vm2, %v11016_v45  ;;  %7099 = vmatmul.mubr.msk.f32.gmra.mrb[44].mxu1 %vm1955_vm2, %v11016_v45 }
 0x7be   : > { %5250 = vmatprep.mubr.f32.mxu0 %v11931_v39  ;;  %5339 = vmatprep.mubr.f32.mxu1 %v11931_v39 }
 0x7c1   : > { %7096 = vmatmul.mubr.msk.f32.gmra.mrb[46].mxu0 %vm1955_vm2, %v11027_v58  ;;  %7100 = vmatmul.mubr.msk.f32.gmra.mrb[46].mxu1 %vm1955_vm2, %v11027_v58 }
 0x7c2   : > { %5410 = vmatprep.mubr.f32.mxu0 %v11931_v39  ;;  %5499 = vmatprep.mubr.f32.mxu1 %v11931_v39 }
 0x7ec   : > { %v4982_v56 = vpop.f32.mrb[136].mxu0 }
 0x7ed   : > { %v4984_v63 = vpop.f32.mrb[137].mxu0  ;;  %v4983_v27 = vadd.f32 %v4982_v56, %v10968_v22 }
 0x7ee   : > { %v5071_v60 = vpop.f32.mrb[136].mxu1  ;;  %v4985_v36 = vadd.f32 %v4984_v63, %v10968_v22 }
 0x7ef   : > { %v5073_v2 = vpop.f32.mrb[137].mxu1  ;;  %v5072_v13 = vadd.f32 %v5071_v60, %v10968_v22  ;;  %v5103_v12 = vmax.f32 %v4983_v27, 0.0 }
 0x7f0   : > { %v4988_v44 = vpop.f32.mrb[138].mxu0  ;;  %v5074_v33 = vadd.f32 %v5073_v2, %v10968_v22  ;;  %v5104_v7 = vmax.f32 %v4985_v36, 0.0 }
 0x7f1   : > { %v4989_v18 = vadd.f32 %v4988_v44, %v10971_v20  ;;  %v4990_v31 = vpop.f32.mrb[139].mxu0  ;;  %v5105_v59 = vmax.f32 %v5072_v13, 0.0 }
 0x7f2   : > { %v4991_v30 = vadd.f32 %v4990_v31, %v10971_v20  ;;  %v5077_v21 = vpop.f32.mrb[138].mxu1  ;;  %v5106_v60 = vmax.f32 %v5074_v33, 0.0 }
 0x7f3   : > { %v5111_v29 = vmax.f32 %v4989_v18, 0.0  ;;  %v5078_v4 = vadd.f32 %v5077_v21, %v10971_v20  ;;  %v5079_v52 = vpop.f32.mrb[139].mxu1 }
 0x7f4   : > { %v5112_v5 = vmax.f32 %v4991_v30, 0.0  ;;  %v4994_v3 = vpop.f32.mrb[140].mxu0  ;;  %v5080_v24 = vadd.f32 %v5079_v52, %v10971_v20 }
 0x7f5   : > { %v7417_v42 = vpack.c.bf16 %v5111_v29, %v5103_v12  ;;  %v4996_v57 = vpop.f32.mrb[141].mxu0  ;;  %v5113_v56 = vmax.f32 %v5078_v4, 0.0  ;;  %v4995_v27 = vadd.f32 %v4994_v3, %v10980_v16 }
 0x7f6   : > { %v7415_v63 = vpack.c.bf16 %v5112_v5, %v5104_v7  ;;  %v5114_v44 = vmax.f32 %v5080_v24, 0.0  ;;  %v5083_v22 = vpop.f32.mrb[140].mxu1  ;;  %v4997_v36 = vadd.f32 %v4996_v57, %v10980_v16 }
 0x7f7   : > { %v7425_v2 = vpack.c.bf16 %v5113_v56, %v5105_v59  ;;  %v5085_v18 = vpop.f32.mrb[141].mxu1  ;;  %v5084_v20 = vadd.f32 %v5083_v22, %v10980_v16  ;;  %v5119_v33 = vmax.f32 %v4995_v27, 0.0 }
 0x7f8   : > { %v5000_v31 = vpop.f32.mrb[142].mxu0  ;;  %7416 = vmatprep.subr.bf16.mxu0 %v7415_v63  ;;  %v7423_v30 = vpack.c.bf16 %v5114_v44, %v5106_v60  ;;  %v5086_v21 = vadd.f32 %v5085_v18, %v10980_v16  ;;  %v5120_v5 = vmax.f32 %v4997_v36, 0.0  ;;  %v12116_v36 = vld [vmem:[#allocation11_spill] sm:$0xff] }
 0x7f9   : > { %v5001_v12 = vadd.f32 %v5000_v31, %v10983_v54  ;;  %v5002_v29 = vpop.f32.mrb[143].mxu0  ;;  %7418 = vmatpush1.bf16.msra.mxu0 %v7417_v42  ;;  %v5121_v42 = vmax.f32 %v5084_v20, 0.0  ;;  %v12117_v31 = vld [vmem:[#allocation12_spill] sm:$0xff]  ;;  %v12120_v20 = vld [vmem:[#allocation13_spill] sm:$0xff] }
 0x7fa   : > { %v5003_v13 = vadd.f32 %v5002_v29, %v10983_v54  ;;  %v5089_v4 = vpop.f32.mrb[142].mxu1  ;;  %7424 = vmatprep.subr.bf16.mxu1 %v7423_v30  ;;  %v5122_v60 = vmax.f32 %v5086_v21, 0.0  ;;  %v12118_v30 = vld [vmem:[#allocation9_spill] sm:$0xff]  ;;  %v12119_v29 = vld [vmem:[#allocation47_spill] sm:$0xff] }
 0x7fb   : > { %v5127_v7 = vmax.f32 %v5001_v12, 0.0  ;;  %v5090_v52 = vadd.f32 %v5089_v4, %v10983_v54  ;;  %v5091_v24 = vpop.f32.mrb[143].mxu1  ;;  %7426 = vmatpush1.bf16.msra.mxu1 %v7425_v2  ;;  %v11084_v2 = vpop.permute.xlu0 %1044 }
 0x7fc   : > { %v5128_v3 = vmax.f32 %v5003_v13, 0.0  ;;  %v5092_v59 = vadd.f32 %v5091_v24, %v10983_v54  ;;  %v4311_v54 = vadd.f32 %v10642_v28, %v10612_v25  ;;  %v4317_v28 = vadd.f32 %v12119_v29, %v10638_v50  ;;  %v12125_v24 = vld [vmem:[#allocation6_spill] sm:$0xff] }
 0x7fd   : > { %v7421_v57 = vpack.c.bf16 %v5127_v7, %v5119_v33  ;;  %v5129_v56 = vmax.f32 %v5090_v52, 0.0  ;;  %v12123_v7 = vld [vmem:[#allocation50_spill] sm:$0xff]  ;;  %v12124_v52 = vld [vmem:[#allocation7_spill] sm:$0xff] }
 0x7fe   : > { %v7419_v63 = vpack.c.bf16 %v5128_v3, %v5120_v5  ;;  %v5130_v44 = vmax.f32 %v5092_v59, 0.0  ;;  %v4600_v18 = vadd.f32 %v12116_v36, %v4311_v54  ;;  %v4408_v4 = vadd.f32 %v12123_v7, %v10638_v50  ;;  %v12126_v59 = vld [vmem:[#allocation51_spill] sm:$0xff] }
 0x7ff   : > { %v7429_v27 = vpack.c.bf16 %v5129_v56, %v5121_v42  ;;  %v11099_v5 = vadd.f32 nan, %v10587_v0  ;;  %v4323_v3 = vadd.f32 %v12124_v52, %v10692_v32  ;;  %v4325_v42 = vadd.f32 %v12126_v59, %v10692_v32  ;;  %v12127_v0 = vld [vmem:[#allocation52_spill] sm:$0xff]  ;;  %v12130_v36 = vld [vmem:[#allocation15_spill] sm:$0xff] }
 0x800   : > { %7420 = vmatprep.subr.bf16.mxu0 %v7419_v63  ;;  %v7427_v16 = vpack.c.bf16 %v5130_v44, %v5122_v60  ;;  %v11108_v56 = vadd.f32 nan, %v10607_v35  ;;  %v11111_v63 = vadd.f32 nan, %v10686_v38  ;;  %v11114_v60 = vadd.f32 nan, %v10646_v8  ;;  %v12134_v7 = vld [vmem:[#allocation19_spill] sm:$0xff] }
 0x801   : > { %7422 = vmatpush1.bf16.msra.mxu0 %v7421_v57  ;;  %v4412_v57 = vadd.f32 %v12125_v24, %v10692_v32  ;;  %v4414_v44 = vadd.f32 %v12127_v0, %v10692_v32 }
 0x802   : > { %7428 = vmatprep.subr.bf16.mxu1 %v7427_v16  ;;  %v4632_v16 = vadd.f32 %v4600_v18, %v11099_v5 }
 0x803   : > { %7430 = vmatpush1.bf16.msra.mxu1 %v7429_v27  ;;  %v11118_v27 = vpop.permute.xlu1 %1049 }
 0x804   : > { %7101 = vmatmul.mubr.msk.f32.vlgmr.msra.gmra.mrb[72].mxu0 %vm1955_vm2, %v10995_v34 }
 0x805   : > { %5416 = vmatprep.mubr.f32.mxu0 %v11931_v39 }
 0x806   : > { %7105 = vmatmul.mubr.msk.f32.vlgmr.msra.gmra.mrb[72].mxu1 %vm1955_vm2, %v10995_v34  ;;  %v4400_v34 = vadd.f32 %v10664_v9, %v10612_v25  ;;  %v12121_v9 = vld [vmem:[#allocation49_spill] sm:$0xff] }
 0x807   : > { %5505 = vmatprep.mubr.f32.mxu1 %v11931_v39  ;;  %v4406_v33 = vadd.f32 %v12121_v9, %v10638_v50 }
 0x808   : > { %7102 = vmatmul.mubr.msk.f32.gmra.mrb[74].mxu0 %vm1955_vm2, %v11005_v41 }
 0x809   : > { %5422 = vmatprep.mubr.f32.mxu0 %v11931_v39 }
 0x80a   : > { %7106 = vmatmul.mubr.msk.f32.gmra.mrb[74].mxu1 %vm1955_vm2, %v11005_v41  ;;  %v4313_v41 = vadd.f32 %v10653_v23, %v10612_v25  ;;  %v12122_v23 = vld [vmem:[#allocation48_spill] sm:$0xff] }
 0x80b   : > { %5511 = vmatprep.mubr.f32.mxu1 %v11931_v39  ;;  %v4319_v21 = vadd.f32 %v12122_v23, %v10638_v50  ;;  %v12133_v23 = vld [vmem:[#allocation17_spill] sm:$0xff] }
 0x80c   : > { %7103 = vmatmul.mubr.msk.f32.gmra.mrb[76].mxu0 %vm1955_vm2, %v11016_v45  ;;  %v4601_v12 = vadd.f32 %v12118_v30, %v4313_v41  ;;  %v12128_v41 = vld [vmem:[#allocation10_spill] sm:$0xff]  ;;  %v12131_v30 = vld [vmem:[#allocation57_spill] sm:$0xff]  ;;  %v4618_v18 = vadd.f32 %v12133_v23, %v4412_v57 }
 0x80d   : > { %5428 = vmatprep.mubr.f32.mxu0 %v11931_v39  ;;  %v4608_v35 = vadd.f32 %v12128_v41, %v4317_v28  ;;  %v4611_v29 = vadd.f32 %v12131_v30, %v4408_v4  ;;  %v12135_v28 = vld [vmem:[#allocation21_spill] sm:$0xff] }
 0x80e   : > { %7107 = vmatmul.mubr.msk.f32.gmra.mrb[76].mxu1 %vm1955_vm2, %v11016_v45  ;;  %v12115_v45 = vld [vmem:[#allocation46_spill] sm:$0xff]  ;;  %v4619_v52 = vadd.f32 %v12135_v28, %v4414_v44  ;;  %v4650_v0 = vadd.f32 %v4618_v18, %v11114_v60 }
 0x80f   : > { %5517 = vmatprep.mubr.f32.mxu1 %v11931_v39  ;;  %v4402_v22 = vadd.f32 %v12115_v45, %v10612_v25  ;;  %v11124_v45 = vpop.permute.xlu0 %5138  ;;  %v4640_v4 = vadd.f32 %v4608_v35, %v11108_v56  ;;  %v12137_v35 = vld [vmem:[#allocation79_spill] sm:$0xff] }
 0x810   : > { %7104 = vmatmul.mubr.msk.f32.gmra.mrb[78].mxu0 %vm1955_vm2, %v11027_v58 }
 0x811   : > { %5726 = vmatprep.mubr.f32.mxu0 %v11931_v39  ;;  %v4603_v13 = vadd.f32 %v12120_v20, %v4402_v22  ;;  %v12129_v22 = vld [vmem:[#allocation8_spill] sm:$0xff] }
 0x812   : > { %7108 = vmatmul.mubr.msk.f32.gmra.mrb[78].mxu1 %vm1955_vm2, %v11027_v58  ;;  %v4602_v58 = vadd.f32 %v12117_v31, %v4400_v34  ;;  %v4633_v34 = vadd.f32 %v4601_v12, %v11099_v5  ;;  %v4610_v8 = vadd.f32 %v12129_v22, %v4406_v33  ;;  %v4609_v31 = vadd.f32 %v12130_v36, %v4319_v21  ;;  %v12132_v20 = vld [vmem:[#allocation16_spill] sm:$0xff] }
 0x813   : > { %5815 = vmatprep.mubr.f32.mxu1 %v11931_v39  ;;  %v4635_v38 = vadd.f32 %v4603_v13, %v11099_v5  ;;  %v4616_v9 = vadd.f32 %v12132_v20, %v4323_v3  ;;  %v4329_v12 = vadd.f32 %v10723_v43, %v10729_v62  ;;  %v4418_v13 = vadd.f32 %v10734_v1, %v10729_v62  ;;  %v11156_v41 = vpop.permute.xlu0 %1054 }
 0x814   : > { %v4634_v54 = vadd.f32 %v4602_v58, %v11099_v5  ;;  %v4617_v58 = vadd.f32 %v12134_v7, %v4325_v42  ;;  %v4331_v33 = vadd.f32 %v10727_v19, %v10729_v62  ;;  %v4420_v21 = vadd.f32 %v10739_v51, %v10729_v62  ;;  %v11150_v19 = vpop.permute.xlu1 %5143 }
 0x815   : > { %v7631_v3 = vadd.f32 %v4632_v16, %v11084_v2  ;;  %v7634_v57 = vadd.f32 %v4633_v34, %v11084_v2  ;;  %v4642_v43 = vadd.f32 %v4610_v8, %v11108_v56  ;;  %v4641_v59 = vadd.f32 %v4609_v31, %v11108_v56  ;;  %v12136_v16 = vld [vmem:[#allocation78_spill] sm:$0xff]  ;;  %v12138_v8 = vld [vmem:[#allocation80_spill] sm:$0xff]  ;;  %v12139_v31 = vld [vmem:[#allocation81_spill] sm:$0xff] }
 0x816   : > { %v7727_v24 = vadd.f32 %v4634_v54, %v11084_v2  ;;  %v4643_v1 = vadd.f32 %v4611_v29, %v11108_v56  ;;  %v7730_v42 = vadd.f32 %v4635_v38, %v11084_v2  ;;  %v4648_v51 = vadd.f32 %v4616_v9, %v11114_v60 }
 0x817   : > { %v4649_v44 = vadd.f32 %v4617_v58, %v11114_v60  ;;  %v4624_v54 = vadd.f32 %v12136_v16, %v4329_v12  ;;  %v4651_v34 = vadd.f32 %v4619_v52, %v11114_v60  ;;  %v4626_v22 = vadd.f32 %v12137_v35, %v4418_v13 }
 0x818   : > { %v4625_v36 = vadd.f32 %v12138_v8, %v4331_v33  ;;  %v4627_v38 = vadd.f32 %v12139_v31, %v4420_v21  ;;  %v7632_v30 = vadd.f32 %v7631_v3, %v11124_v45  ;;  %v7728_v29 = vadd.f32 %v7727_v24, %v11124_v45 }
 0x819   : > { %v7635_v20 = vadd.f32 %v7634_v57, %v11124_v45  ;;  %v7637_v9 = vadd.f32 %v4640_v4, %v11118_v27  ;;  %v7731_v18 = vadd.f32 %v7730_v42, %v11124_v45  ;;  %v7733_v7 = vadd.f32 %v4642_v43, %v11118_v27 }
 0x81a   : > { %v7640_v58 = vadd.f32 %v4641_v59, %v11118_v27  ;;  %v7736_v12 = vadd.f32 %v4643_v1, %v11118_v27  ;;  %v7643_v33 = vadd.f32 %v4648_v51, %v11156_v41  ;;  %v7739_v21 = vadd.f32 %v4650_v0, %v11156_v41  ;;  %v11181_v1 = vpop.permute.xlu1 %1059 }
 0x81b   : > { %v7646_v3 = vadd.f32 %v4649_v44, %v11156_v41  ;;  %v4656_v4 = vadd.f32 %v4624_v54, %v11111_v63  ;;  %v4658_v24 = vadd.f32 %v4626_v22, %v11111_v63  ;;  %v4657_v42 = vadd.f32 %v4625_v36, %v11111_v63  ;;  %v11188_v44 = vpop.permute.xlu0 %5148 }
 0x81c   : > { %v4659_v16 = vadd.f32 %v4627_v38, %v11111_v63  ;;  %v7638_v0 = vadd.f32 %v7637_v9, %v11150_v19  ;;  %v7734_v35 = vadd.f32 %v7733_v7, %v11150_v19  ;;  %v7641_v22 = vadd.f32 %v7640_v58, %v11150_v19 }
 0x81d   : > { %v7737_v8 = vadd.f32 %v7736_v12, %v11150_v19  ;;  %v7742_v31 = vadd.f32 %v4651_v34, %v11156_v41  ;;  %v7644_v38 = vadd.f32 %v7643_v33, %v11188_v44  ;;  %v7647_v9 = vadd.f32 %v7646_v3, %v11188_v44 }
 0x81e   : > { %v7649_v58 = vadd.f32 %v4656_v4, %v11181_v1  ;;  %v7745_v12 = vadd.f32 %v4658_v24, %v11181_v1  ;;  %v7748_v33 = vadd.f32 %v4659_v16, %v11181_v1  ;;  %v11219_v16 = vpop.permute.xlu1 %5153 }
 0x888   : > { %v5234_v23 = vpop.f32.mrb[40].mxu0  ;;  %v5323_v52 = vpop.f32.mrb[40].mxu1 }
 0x889   : > { %v11170_v28 = vadd.f32 %v7632_v30, %v5234_v23  ;;  %v5236_v13 = vpop.f32.mrb[41].mxu0  ;;  %v11177_v57 = vadd.f32 %v7728_v29, %v5323_v52  ;;  %v5325_v59 = vpop.f32.mrb[41].mxu1 }
 0x88a   : > { %v11179_v43 = vadd.f32 %v7635_v20, %v5236_v13  ;;  %v11185_v51 = vadd.f32 %v7731_v18, %v5325_v59  ;;  %v7740_v20 = vadd.f32 %v7739_v21, %v11188_v44  ;;  %v7652_v13 = vadd.f32 %v4657_v42, %v11181_v1 }
 0x88b   : > { %12140 = vst [vmem:[#allocation55_spill] sm:$0xff] %v11170_v28  ;;  %12141 = vst [vmem:[#allocation20_spill] sm:$0xff] %v11177_v57  ;;  %v5593_v4 = vmax.f32 %v11170_v28, 0.0 }
 0x88c   : > { %12142 = vst [vmem:[#allocation53_spill] sm:$0xff] %v11179_v43  ;;  %12143 = vst [vmem:[#allocation54_spill] sm:$0xff] %v11185_v51  ;;  %v5240_v54 = vpop.f32.mrb[42].mxu0  ;;  %v5329_v36 = vpop.f32.mrb[42].mxu1  ;;  %v5594_v21 = vmax.f32 %v11179_v43, 0.0  ;;  %v5596_v24 = vmax.f32 %v11185_v51, 0.0  ;;  %v7650_v51 = vadd.f32 %v7649_v58, %v11219_v16  ;;  %v7746_v43 = vadd.f32 %v7745_v12, %v11219_v16 }
 0x88d   : > { %v11194_v30 = vadd.f32 %v7638_v0, %v5240_v54  ;;  %v5242_v29 = vpop.f32.mrb[43].mxu0  ;;  %v11199_v23 = vadd.f32 %v7734_v35, %v5329_v36  ;;  %v5331_v7 = vpop.f32.mrb[43].mxu1  ;;  %v7743_v54 = vadd.f32 %v7742_v31, %v11188_v44  ;;  %v5595_v36 = vmax.f32 %v11177_v57, 0.0 }
 0x88e   : > { %v11201_v18 = vadd.f32 %v7641_v22, %v5242_v29  ;;  %v11206_v52 = vadd.f32 %v7737_v8, %v5331_v7  ;;  %v7653_v28 = vadd.f32 %v7652_v13, %v11219_v16 }
 0x88f   : > { %12144 = vst [vmem:[#allocation56_spill] sm:$0xff] %v11194_v30  ;;  %12145 = vst [vmem:[#allocation58_spill] sm:$0xff] %v11199_v23  ;;  %v5601_v34 = vmax.f32 %v11194_v30, 0.0  ;;  %v5603_v3 = vmax.f32 %v11199_v23, 0.0 }
 0x890   : > { %12146 = vst [vmem:[#allocation14_spill] sm:$0xff] %v11201_v18  ;;  %12147 = vst [vmem:[#allocation59_spill] sm:$0xff] %v11206_v52  ;;  %v5602_v59 = vmax.f32 %v11201_v18, 0.0  ;;  %v5246_v0 = vpop.f32.mrb[44].mxu0  ;;  %v5604_v35 = vmax.f32 %v11206_v52, 0.0  ;;  %v5335_v42 = vpop.f32.mrb[44].mxu1 }
 0x891   : > { %v11217_v22 = vadd.f32 %v7644_v38, %v5246_v0  ;;  %v5248_v8 = vpop.f32.mrb[45].mxu0  ;;  %v11222_v29 = vadd.f32 %v7740_v20, %v5335_v42  ;;  %v5337_v18 = vpop.f32.mrb[45].mxu1  ;;  %v7433_v23 = vpack.c.bf16 %v5601_v34, %v5593_v4  ;;  %v7441_v38 = vpack.c.bf16 %v5603_v3, %v5595_v36  ;;  %v11261_v42 = vld [vmem:[%s11735_s5 + $0x88] sm:$0xff]  ;;  %v11283_v36 = vld [vmem:[%s11735_s5 + $0x98] sm:$0xff] }
 0x892   : > { %v11224_v7 = vadd.f32 %v7647_v9, %v5248_v8  ;;  %v7431_v31 = vpack.c.bf16 %v5602_v59, %v5594_v21  ;;  %v11226_v30 = vadd.f32 %v7743_v54, %v5337_v18  ;;  %v7439_v52 = vpack.c.bf16 %v5604_v35, %v5596_v24  ;;  %v11251_v35 = vld [vmem:[%s11735_s5 + $0x80] sm:$0xff]  ;;  %v11272_v8 = vld [vmem:[%s11735_s5 + $0x90] sm:$0xff] }
 0x893   : > { %v7749_v21 = vadd.f32 %v7748_v33, %v11219_v16  ;;  %v5609_v59 = vmax.f32 %v11217_v22, 0.0 }
 0x894   : > { %v5252_v0 = vpop.f32.mrb[46].mxu0  ;;  %7432 = vmatprep.subr.bf16.mxu0 %v7431_v31  ;;  %v5341_v20 = vpop.f32.mrb[46].mxu1  ;;  %7440 = vmatprep.subr.bf16.mxu1 %v7439_v52  ;;  %v5610_v13 = vmax.f32 %v11224_v7, 0.0  ;;  %v4489_v31 = vadd.f32 %v10850_v15, %v10612_v25  ;;  %v12150_v15 = vld [vmem:[#allocation33_spill] sm:$0xff] }
 0x895   : > { %v11231_v57 = vadd.f32 %v7650_v51, %v5252_v0  ;;  %v5254_v9 = vpop.f32.mrb[47].mxu0  ;;  %7434 = vmatpush1.bf16.msra.mxu0 %v7433_v23  ;;  %v11234_v18 = vadd.f32 %v7746_v43, %v5341_v20  ;;  %v5343_v58 = vpop.f32.mrb[47].mxu1  ;;  %7442 = vmatpush1.bf16.msra.mxu1 %v7441_v38  ;;  %v5612_v23 = vmax.f32 %v11226_v30, 0.0  ;;  %v4491_v38 = vadd.f32 %v10860_v40, %v10612_v25  ;;  %v12148_v20 = vld [vmem:[#allocation28_spill] sm:$0xff] }
 0x896   : > { %v11236_v34 = vadd.f32 %v7653_v28, %v5254_v9  ;;  %v11239_v12 = vadd.f32 %v7749_v21, %v5343_v58  ;;  %v5611_v28 = vmax.f32 %v11222_v29, 0.0  ;;  %v4578_v0 = vadd.f32 %v10858_v11, %v10612_v25 }
 0x897   : > { %v5617_v3 = vmax.f32 %v11231_v57, 0.0  ;;  %v5619_v51 = vmax.f32 %v11234_v18, 0.0  ;;  %v4604_v9 = vadd.f32 %v12148_v20, %v4489_v31  ;;  %v4580_v21 = vadd.f32 %v10869_v53, %v10612_v25  ;;  %v12157_v31 = vld [vmem:[#allocation25_spill] sm:$0xff] }
 0x898   : > { %v5618_v52 = vmax.f32 %v11236_v34, 0.0  ;;  %v5620_v43 = vmax.f32 %v11239_v12, 0.0  ;;  %v4495_v58 = vadd.f32 %v10880_v6, %v10638_v50  ;;  %v4584_v40 = vadd.f32 %v10886_v55, %v10638_v50  ;;  %v12152_v55 = vld [vmem:[#allocation30_spill] sm:$0xff] }
 0x899   : > { %v7437_v54 = vpack.c.bf16 %v5617_v3, %v5609_v59  ;;  %v7445_v24 = vpack.c.bf16 %v5619_v51, %v5611_v28  ;;  %v12149_v3 = vld [vmem:[#allocation29_spill] sm:$0xff]  ;;  %v4497_v51 = vadd.f32 %v10889_v26, %v10638_v50  ;;  %v4586_v11 = vadd.f32 %v10893_v46, %v10638_v50  ;;  %v12153_v46 = vld [vmem:[#allocation26_spill] sm:$0xff] }
 0x89a   : > { %v7435_v33 = vpack.c.bf16 %v5618_v52, %v5610_v13  ;;  %v7443_v4 = vpack.c.bf16 %v5620_v43, %v5612_v23  ;;  %v4605_v13 = vadd.f32 %v12149_v3, %v4491_v38  ;;  %v4606_v52 = vadd.f32 %v12150_v15, %v4578_v0  ;;  %v12151_v23 = vld [vmem:[#allocation34_spill] sm:$0xff]  ;;  %v12160_v15 = vld [vmem:[#allocation39_spill] sm:$0xff] }
 0x89b   : > { %v4501_v59 = vadd.f32 %v10902_v17, %v10692_v32  ;;  %v4590_v25 = vadd.f32 %v10907_v47, %v10692_v32  ;;  %v4503_v53 = vadd.f32 %v10909_v14, %v10692_v32  ;;  %v4592_v6 = vadd.f32 %v10913_v49, %v10692_v32  ;;  %v12156_v32 = vld [vmem:[#allocation27_spill] sm:$0xff]  ;;  %v12158_v0 = vld [vmem:[#allocation38_spill] sm:$0xff] }
 0x89c   : > { %7436 = vmatprep.subr.bf16.mxu0 %v7435_v33  ;;  %7444 = vmatprep.subr.bf16.mxu1 %v7443_v4  ;;  %v4636_v26 = vadd.f32 %v4604_v9, %v11099_v5  ;;  %v4607_v43 = vadd.f32 %v12151_v23, %v4580_v21  ;;  %v4612_v28 = vadd.f32 %v12152_v55, %v4495_v58  ;;  %v12155_v4 = vld [vmem:[#allocation67_spill] sm:$0xff]  ;;  %v12159_v9 = vld [vmem:[#allocation45_spill] sm:$0xff] }
 0x89d   : > { %7438 = vmatpush1.bf16.msra.mxu0 %v7437_v54  ;;  %7446 = vmatpush1.bf16.msra.mxu1 %v7445_v24  ;;  %v4637_v50 = vadd.f32 %v4605_v13, %v11099_v5  ;;  %v4613_v33 = vadd.f32 %v12153_v46, %v4497_v51  ;;  %v4507_v17 = vadd.f32 %v10922_v37, %v10729_v62  ;;  %v12154_v54 = vld [vmem:[#allocation36_spill] sm:$0xff] }
 0x89e   : > { %v4638_v47 = vadd.f32 %v4606_v52, %v11099_v5  ;;  %v4614_v14 = vadd.f32 %v12154_v54, %v4584_v40  ;;  %v4615_v24 = vadd.f32 %v12155_v4, %v4586_v11  ;;  %v4620_v49 = vadd.f32 %v12156_v32, %v4501_v59 }
 0x89f   : > { %v4622_v38 = vadd.f32 %v12157_v31, %v4590_v25  ;;  %v4621_v20 = vadd.f32 %v12158_v0, %v4503_v53  ;;  %v4623_v21 = vadd.f32 %v12159_v9, %v4592_v6  ;;  %v4639_v58 = vadd.f32 %v4607_v43, %v11099_v5 }
 0x8a0   : > { %7117 = vmatmul.mubr.msk.f32.vlgmr.msra.gmra.mrb[144].mxu0 %vm1955_vm2, %v11251_v35  ;;  %7121 = vmatmul.mubr.msk.f32.vlgmr.msra.gmra.mrb[144].mxu1 %vm1955_vm2, %v11251_v35  ;;  %v4644_v3 = vadd.f32 %v4612_v28, %v11108_v56  ;;  %v4596_v37 = vadd.f32 %v10925_v10, %v10729_v62  ;;  %v7823_v13 = vadd.f32 %v4636_v26, %v11084_v2 }
 0x8a1   : > { %5732 = vmatprep.mubr.f32.mxu0 %v11931_v39  ;;  %5821 = vmatprep.mubr.f32.mxu1 %v11931_v39  ;;  %v4645_v51 = vadd.f32 %v4613_v33, %v11108_v56  ;;  %v4628_v52 = vadd.f32 %v12160_v15, %v4507_v17  ;;  %v4509_v40 = vadd.f32 %v10927_v61, %v10729_v62  ;;  %v12161_v61 = vld [vmem:[#allocation43_spill] sm:$0xff] }
 0x8a2   : > { %v7826_v11 = vadd.f32 %v4637_v50, %v11084_v2  ;;  %v4646_v59 = vadd.f32 %v4614_v14, %v11108_v56  ;;  %v4647_v5 = vadd.f32 %v4615_v24, %v11108_v56  ;;  %v4598_v25 = vadd.f32 %v10932_v48, %v10729_v62  ;;  %v12162_v48 = vld [vmem:[#allocation40_spill] sm:$0xff] }
 0x8a3   : > { %v7919_v10 = vadd.f32 %v4638_v47, %v11084_v2  ;;  %v4652_v53 = vadd.f32 %v4620_v49, %v11114_v60  ;;  %v4654_v6 = vadd.f32 %v4622_v38, %v11114_v60  ;;  %v4653_v26 = vadd.f32 %v4621_v20, %v11114_v60  ;;  %v12163_v47 = vld [vmem:[#allocation44_spill] sm:$0xff] }
 0x8a4   : > { %7118 = vmatmul.mubr.msk.f32.gmra.mrb[146].mxu0 %vm1955_vm2, %v11261_v42  ;;  %7122 = vmatmul.mubr.msk.f32.gmra.mrb[146].mxu1 %vm1955_vm2, %v11261_v42  ;;  %v4655_v23 = vadd.f32 %v4623_v21, %v11114_v60  ;;  %v4630_v43 = vadd.f32 %v12161_v61, %v4596_v37  ;;  %v7824_v55 = vadd.f32 %v7823_v13, %v11124_v45 }
 0x8a5   : > { %5738 = vmatprep.mubr.f32.mxu0 %v11931_v39  ;;  %5827 = vmatprep.mubr.f32.mxu1 %v11931_v39  ;;  %v7922_v28 = vadd.f32 %v4639_v58, %v11084_v2  ;;  %v7829_v56 = vadd.f32 %v4644_v3, %v11118_v27  ;;  %v4660_v62 = vadd.f32 %v4628_v52, %v11111_v63 }
 0x8a6   : > { %v4629_v50 = vadd.f32 %v12162_v48, %v4509_v40  ;;  %v7827_v33 = vadd.f32 %v7826_v11, %v11124_v45  ;;  %v7832_v17 = vadd.f32 %v4645_v51, %v11118_v27  ;;  %v4631_v54 = vadd.f32 %v12163_v47, %v4598_v25 }
 0x8a7   : > { %v7920_v14 = vadd.f32 %v7919_v10, %v11124_v45  ;;  %v7925_v2 = vadd.f32 %v4646_v59, %v11118_v27  ;;  %v7928_v32 = vadd.f32 %v4647_v5, %v11118_v27  ;;  %v7835_v49 = vadd.f32 %v4652_v53, %v11156_v41 }
 0x8a8   : > { %7119 = vmatmul.mubr.msk.f32.gmra.mrb[148].mxu0 %vm1955_vm2, %v11272_v8  ;;  %7123 = vmatmul.mubr.msk.f32.gmra.mrb[148].mxu1 %vm1955_vm2, %v11272_v8  ;;  %v7931_v31 = vadd.f32 %v4654_v6, %v11156_v41  ;;  %v7923_v0 = vadd.f32 %v7922_v28, %v11124_v45  ;;  %v7830_v20 = vadd.f32 %v7829_v56, %v11150_v19 }
 0x8a9   : > { %5744 = vmatprep.mubr.f32.mxu0 %v11931_v39  ;;  %5833 = vmatprep.mubr.f32.mxu1 %v11931_v39  ;;  %v7838_v9 = vadd.f32 %v4653_v26, %v11156_v41  ;;  %v7934_v21 = vadd.f32 %v4655_v23, %v11156_v41  ;;  %v4662_v58 = vadd.f32 %v4630_v43, %v11111_v63 }
 0x8aa   : > { %v4661_v3 = vadd.f32 %v4629_v50, %v11111_v63  ;;  %v7833_v51 = vadd.f32 %v7832_v17, %v11150_v19  ;;  %v4663_v15 = vadd.f32 %v4631_v54, %v11111_v63  ;;  %v7926_v40 = vadd.f32 %v7925_v2, %v11150_v19 }
 0x8ab   : > { %v7929_v59 = vadd.f32 %v7928_v32, %v11150_v19  ;;  %v7836_v5 = vadd.f32 %v7835_v49, %v11188_v44  ;;  %v7932_v25 = vadd.f32 %v7931_v31, %v11188_v44  ;;  %v7839_v63 = vadd.f32 %v7838_v9, %v11188_v44 }
 0x8ac   : > { %7120 = vmatmul.mubr.msk.f32.gmra.mrb[150].mxu0 %vm1955_vm2, %v11283_v36  ;;  %7124 = vmatmul.mubr.msk.f32.gmra.mrb[150].mxu1 %vm1955_vm2, %v11283_v36  ;;  %v7935_v6 = vadd.f32 %v7934_v21, %v11188_v44  ;;  %v7841_v26 = vadd.f32 %v4660_v62, %v11181_v1  ;;  %v7844_v28 = vadd.f32 %v4661_v3, %v11181_v1 }
 0x8ad   : > { %5904 = vmatprep.mubr.f32.mxu0 %v11931_v39  ;;  %5993 = vmatprep.mubr.f32.mxu1 %v11931_v39  ;;  %v7937_v44 = vadd.f32 %v4662_v58, %v11181_v1  ;;  %v7940_v47 = vadd.f32 %v4663_v15, %v11181_v1 }
 0x8ae   : > { %v7842_v32 = vadd.f32 %v7841_v26, %v11219_v16 }
 0x8d7   : > { %v5412_v46 = vpop.f32.mrb[72].mxu0 }
 0x8d8   : > { %v11361_v60 = vadd.f32 %v7824_v55, %v5412_v46  ;;  %v5414_v4 = vpop.f32.mrb[73].mxu0 }
 0x8d9   : > { %v11365_v24 = vadd.f32 %v7827_v33, %v5414_v4  ;;  %v5501_v38 = vpop.f32.mrb[72].mxu1 }
 0x8da   : > { %v11376_v37 = vadd.f32 %v7920_v14, %v5501_v38  ;;  %v5503_v27 = vpop.f32.mrb[73].mxu1  ;;  %v5597_v56 = vmax.f32 %v11361_v60, 0.0 }
 0x8db   : > { %v5418_v13 = vpop.f32.mrb[74].mxu0  ;;  %v11380_v52 = vadd.f32 %v7923_v0, %v5503_v27  ;;  %v5598_v23 = vmax.f32 %v11365_v24, 0.0  ;;  %v7938_v27 = vadd.f32 %v7937_v44, %v11219_v16  ;;  %v11463_v44 = vpop.permute.xlu1 %5637 }
 0x8dc   : > { %v11382_v45 = vadd.f32 %v7830_v20, %v5418_v13  ;;  %v5420_v11 = vpop.f32.mrb[75].mxu0  ;;  %v5599_v49 = vmax.f32 %v11376_v37, 0.0  ;;  %v7845_v20 = vadd.f32 %v7844_v28, %v11219_v16 }
 0x8dd   : > { %v11385_v41 = vadd.f32 %v7833_v51, %v5420_v11  ;;  %v5507_v53 = vpop.f32.mrb[74].mxu1  ;;  %v5600_v54 = vmax.f32 %v11380_v52, 0.0 }
 0x8de   : > { %v5605_v10 = vmax.f32 %v11382_v45, 0.0  ;;  %v11395_v61 = vadd.f32 %v7926_v40, %v5507_v53  ;;  %v5509_v19 = vpop.f32.mrb[75].mxu1  ;;  %v7941_v40 = vadd.f32 %v7940_v47, %v11219_v16 }
 0x8df   : > { %v5606_v43 = vmax.f32 %v11385_v41, 0.0  ;;  %v5424_v55 = vpop.f32.mrb[76].mxu0  ;;  %v11400_v48 = vadd.f32 %v7929_v59, %v5509_v19 }
 0x8e0   : > { %v11402_v50 = vadd.f32 %v7836_v5, %v5424_v55  ;;  %v5426_v46 = vpop.f32.mrb[77].mxu0  ;;  %v5607_v62 = vmax.f32 %v11395_v61, 0.0  ;;  %v7449_v14 = vpack.c.bf16 %v5605_v10, %v5597_v56  ;;  %v11460_v56 = vpop.permute.xlu0 %5632 }
 0x8e1   : > { %v11406_v33 = vadd.f32 %v7839_v63, %v5426_v46  ;;  %v7447_v17 = vpack.c.bf16 %v5606_v43, %v5598_v23  ;;  %v5608_v4 = vmax.f32 %v11400_v48, 0.0  ;;  %v5513_v2 = vpop.f32.mrb[76].mxu1 }
 0x8e2   : > { %v11413_v31 = vadd.f32 %v7932_v25, %v5513_v2  ;;  %v5515_v38 = vpop.f32.mrb[77].mxu1  ;;  %v7457_v3 = vpack.c.bf16 %v5607_v62, %v5599_v49  ;;  %v5613_v10 = vmax.f32 %v11402_v50, 0.0 }
 0x8e3   : > { %v5430_v0 = vpop.f32.mrb[78].mxu0  ;;  %7448 = vmatprep.subr.bf16.mxu0 %v7447_v17  ;;  %v11416_v9 = vadd.f32 %v7935_v6, %v5515_v38  ;;  %v7455_v21 = vpack.c.bf16 %v5608_v4, %v5600_v54  ;;  %v5614_v11 = vmax.f32 %v11406_v33, 0.0 }
 0x8e4   : > { %v11418_v1 = vadd.f32 %v7842_v32, %v5430_v0  ;;  %v5432_v58 = vpop.f32.mrb[79].mxu0  ;;  %7450 = vmatpush1.bf16.msra.mxu0 %v7449_v14  ;;  %v5615_v43 = vmax.f32 %v11413_v31, 0.0 }
 0x8e5   : > { %v11421_v13 = vadd.f32 %v7845_v20, %v5432_v58  ;;  %v5519_v15 = vpop.f32.mrb[78].mxu1  ;;  %7456 = vmatprep.subr.bf16.mxu1 %v7455_v21  ;;  %v5616_v26 = vmax.f32 %v11416_v9, 0.0 }
 0x8e6   : > { %v5621_v51 = vmax.f32 %v11418_v1, 0.0  ;;  %v11426_v59 = vadd.f32 %v7938_v27, %v5519_v15  ;;  %v5521_v25 = vpop.f32.mrb[79].mxu1  ;;  %7458 = vmatpush1.bf16.msra.mxu1 %v7457_v3 }
 0x8e7   : > { %v5622_v5 = vmax.f32 %v11421_v13, 0.0  ;;  %v11430_v53 = vadd.f32 %v7941_v40, %v5521_v25 }
 0x8e8   : > { %v5623_v63 = vmax.f32 %v11426_v59, 0.0  ;;  %v7453_v23 = vpack.c.bf16 %v5621_v51, %v5613_v10  ;;  %v11472_v10 = vpop.permute.xlu0 %5642 }
 0x8e9   : > { %v7451_v6 = vpack.c.bf16 %v5622_v5, %v5614_v11  ;;  %v5624_v16 = vmax.f32 %v11430_v53, 0.0 }
 0x8ea   : > { %v7461_v55 = vpack.c.bf16 %v5623_v63, %v5615_v43  ;;  %v11475_v43 = vpop.permute.xlu1 %5647 }
 0x8eb   : > { %7452 = vmatprep.subr.bf16.mxu0 %v7451_v6  ;;  %v7459_v19 = vpack.c.bf16 %v5624_v16, %v5616_v26 }
 0x8ec   : > { %7454 = vmatpush1.bf16.msra.mxu0 %v7453_v23 }
 0x8ed   : > { %7460 = vmatprep.subr.bf16.mxu1 %v7459_v19 }
 0x8ee   : > { %7462 = vmatpush1.bf16.msra.mxu1 %v7461_v55 }
 0x8ef   : > { %7125 = vmatmul.mubr.msk.f32.vlgmr.msra.gmra.mrb[152].mxu0 %vm1955_vm2, %v11251_v35 }
 0x8f0   : > { %5910 = vmatprep.mubr.f32.mxu0 %v11931_v39 }
 0x8f1   : > { %7129 = vmatmul.mubr.msk.f32.vlgmr.msra.gmra.mrb[152].mxu1 %vm1955_vm2, %v11251_v35 }
 0x8f2   : > { %5999 = vmatprep.mubr.f32.mxu1 %v11931_v39 }
 0x8f3   : > { %7126 = vmatmul.mubr.msk.f32.gmra.mrb[154].mxu0 %vm1955_vm2, %v11261_v42 }
 0x8f4   : > { %5916 = vmatprep.mubr.f32.mxu0 %v11931_v39 }
 0x8f5   : > { %7130 = vmatmul.mubr.msk.f32.gmra.mrb[154].mxu1 %vm1955_vm2, %v11261_v42 }
 0x8f6   : > { %6005 = vmatprep.mubr.f32.mxu1 %v11931_v39 }
 0x8f7   : > { %7127 = vmatmul.mubr.msk.f32.gmra.mrb[156].mxu0 %vm1955_vm2, %v11272_v8 }
 0x8f8   : > { %5922 = vmatprep.mubr.f32.mxu0 %v11931_v39 }
 0x8f9   : > { %7131 = vmatmul.mubr.msk.f32.gmra.mrb[156].mxu1 %vm1955_vm2, %v11272_v8 }
 0x8fa   : > { %6011 = vmatprep.mubr.f32.mxu1 %v11931_v39 }
 0x8fb   : > { %7128 = vmatmul.mubr.msk.f32.gmra.mrb[158].mxu0 %vm1955_vm2, %v11283_v36 }
 0x8fc   : > { %6156 = vmatprep.mubr.f32.mxu0 %v11931_v39 }
 0x8fd   : > { %7132 = vmatmul.mubr.msk.f32.gmra.mrb[158].mxu1 %vm1955_vm2, %v11283_v36 }
 0x8fe   : > { %6245 = vmatprep.mubr.f32.mxu1 %v11931_v39 }
 0x973   : > { %v5728_v35 = vpop.f32.mrb[144].mxu0  ;;  %v5817_v42 = vpop.f32.mrb[144].mxu1 }
 0x974   : > { %v5730_v28 = vpop.f32.mrb[145].mxu0  ;;  %v5819_v46 = vpop.f32.mrb[145].mxu1  ;;  %v5729_v8 = vadd.f32 %v5728_v35, %v11460_v56  ;;  %v5818_v62 = vadd.f32 %v5817_v42, %v11460_v56 }
 0x975   : > { %v5731_v17 = vadd.f32 %v5730_v28, %v11460_v56  ;;  %v5820_v54 = vadd.f32 %v5819_v46, %v11460_v56 }
 0x976   : > { %v6023_v38 = vmax.f32 %v5729_v8, 0.0  ;;  %v6025_v21 = vmax.f32 %v5818_v62, 0.0 }
 0x977   : > { %v5734_v47 = vpop.f32.mrb[146].mxu0  ;;  %v5823_v14 = vpop.f32.mrb[146].mxu1  ;;  %v6024_v58 = vmax.f32 %v5731_v17, 0.0  ;;  %v6026_v15 = vmax.f32 %v5820_v54, 0.0 }
 0x978   : > { %v5735_v36 = vadd.f32 %v5734_v47, %v11463_v44  ;;  %v5736_v4 = vpop.f32.mrb[147].mxu0  ;;  %v5824_v2 = vadd.f32 %v5823_v14, %v11463_v44  ;;  %v5825_v49 = vpop.f32.mrb[147].mxu1 }
 0x979   : > { %v5737_v32 = vadd.f32 %v5736_v4, %v11463_v44  ;;  %v5826_v20 = vadd.f32 %v5825_v49, %v11463_v44 }
 0x97a   : > { %v6031_v0 = vmax.f32 %v5735_v36, 0.0  ;;  %v6033_v3 = vmax.f32 %v5824_v2, 0.0 }
 0x97b   : > { %v6032_v27 = vmax.f32 %v5737_v32, 0.0  ;;  %v5740_v51 = vpop.f32.mrb[148].mxu0  ;;  %v6034_v11 = vmax.f32 %v5826_v20, 0.0  ;;  %v5829_v5 = vpop.f32.mrb[148].mxu1 }
 0x97c   : > { %v7465_v40 = vpack.c.bf16 %v6031_v0, %v6023_v38  ;;  %v5742_v25 = vpop.f32.mrb[149].mxu0  ;;  %v7473_v63 = vpack.c.bf16 %v6033_v3, %v6025_v21  ;;  %v5831_v26 = vpop.f32.mrb[149].mxu1  ;;  %v5741_v16 = vadd.f32 %v5740_v51, %v11472_v10  ;;  %v5830_v19 = vadd.f32 %v5829_v5, %v11472_v10  ;;  %v11497_v51 = vld [vmem:[%s11737_s7 + $0x88] sm:$0xff] }
 0x97d   : > { %v7463_v6 = vpack.c.bf16 %v6032_v27, %v6024_v58  ;;  %v7471_v23 = vpack.c.bf16 %v6034_v11, %v6026_v15  ;;  %v5743_v55 = vadd.f32 %v5742_v25, %v11472_v10  ;;  %v5832_v42 = vadd.f32 %v5831_v26, %v11472_v10  ;;  %v11487_v27 = vld [vmem:[%s11737_s7 + $0x80] sm:$0xff]  ;;  %v11508_v15 = vld [vmem:[%s11737_s7 + $0x90] sm:$0xff] }
 0x97e   : > { %v6039_v54 = vmax.f32 %v5741_v16, 0.0  ;;  %v6041_v4 = vmax.f32 %v5830_v19, 0.0 }
 0x97f   : > { %v5746_v35 = vpop.f32.mrb[150].mxu0  ;;  %7464 = vmatprep.subr.bf16.mxu0 %v7463_v6  ;;  %v5835_v46 = vpop.f32.mrb[150].mxu1  ;;  %7472 = vmatprep.subr.bf16.mxu1 %v7471_v23  ;;  %v6040_v2 = vmax.f32 %v5743_v55, 0.0  ;;  %v6042_v38 = vmax.f32 %v5832_v42, 0.0 }
 0x980   : > { %v5747_v28 = vadd.f32 %v5746_v35, %v11475_v43  ;;  %v5748_v8 = vpop.f32.mrb[151].mxu0  ;;  %7466 = vmatpush1.bf16.msra.mxu0 %v7465_v40  ;;  %v5836_v62 = vadd.f32 %v5835_v46, %v11475_v43  ;;  %v5837_v47 = vpop.f32.mrb[151].mxu1  ;;  %7474 = vmatpush1.bf16.msra.mxu1 %v7473_v63  ;;  %v11519_v40 = vld [vmem:[%s11737_s7 + $0x98] sm:$0xff] }
 0x981   : > { %v5749_v17 = vadd.f32 %v5748_v8, %v11475_v43  ;;  %v5838_v14 = vadd.f32 %v5837_v47, %v11475_v43 }
 0x982   : > { %v6047_v36 = vmax.f32 %v5747_v28, 0.0  ;;  %v6049_v32 = vmax.f32 %v5836_v62, 0.0 }
 0x983   : > { %v6048_v49 = vmax.f32 %v5749_v17, 0.0  ;;  %v6050_v20 = vmax.f32 %v5838_v14, 0.0 }
 0x984   : > { %v7469_v0 = vpack.c.bf16 %v6047_v36, %v6039_v54  ;;  %v7477_v21 = vpack.c.bf16 %v6049_v32, %v6041_v4 }
 0x985   : > { %v7467_v58 = vpack.c.bf16 %v6048_v49, %v6040_v2  ;;  %v7475_v3 = vpack.c.bf16 %v6050_v20, %v6042_v38 }
 0x987   : > { %7468 = vmatprep.subr.bf16.mxu0 %v7467_v58  ;;  %7476 = vmatprep.subr.bf16.mxu1 %v7475_v3 }
 0x988   : > { %7470 = vmatpush1.bf16.msra.mxu0 %v7469_v0  ;;  %7478 = vmatpush1.bf16.msra.mxu1 %v7477_v21 }
 0x98b   : > { %7141 = vmatmul.mubr.msk.f32.vlgmr.msra.gmra.mrb[160].mxu0 %vm1955_vm2, %v11487_v27  ;;  %7145 = vmatmul.mubr.msk.f32.vlgmr.msra.gmra.mrb[160].mxu1 %vm1955_vm2, %v11487_v27 }
 0x98c   : > { %6162 = vmatprep.mubr.f32.mxu0 %v11931_v39  ;;  %6251 = vmatprep.mubr.f32.mxu1 %v11931_v39 }
 0x98f   : > { %7142 = vmatmul.mubr.msk.f32.gmra.mrb[162].mxu0 %vm1955_vm2, %v11497_v51  ;;  %7146 = vmatmul.mubr.msk.f32.gmra.mrb[162].mxu1 %vm1955_vm2, %v11497_v51 }
 0x990   : > { %6168 = vmatprep.mubr.f32.mxu0 %v11931_v39  ;;  %6257 = vmatprep.mubr.f32.mxu1 %v11931_v39 }
 0x993   : > { %7143 = vmatmul.mubr.msk.f32.gmra.mrb[164].mxu0 %vm1955_vm2, %v11508_v15  ;;  %7147 = vmatmul.mubr.msk.f32.gmra.mrb[164].mxu1 %vm1955_vm2, %v11508_v15 }
 0x994   : > { %6174 = vmatprep.mubr.f32.mxu0 %v11931_v39  ;;  %6263 = vmatprep.mubr.f32.mxu1 %v11931_v39 }
 0x997   : > { %7144 = vmatmul.mubr.msk.f32.gmra.mrb[166].mxu0 %vm1955_vm2, %v11519_v40  ;;  %7148 = vmatmul.mubr.msk.f32.gmra.mrb[166].mxu1 %vm1955_vm2, %v11519_v40 }
 0x998   : > { %6334 = vmatprep.mubr.f32.mxu0 %v11931_v39  ;;  %6423 = vmatprep.mubr.f32.mxu1 %v11931_v39 }
 0x9c2   : > { %v5906_v11 = vpop.f32.mrb[152].mxu0 }
 0x9c3   : > { %v5908_v5 = vpop.f32.mrb[153].mxu0  ;;  %v5907_v25 = vadd.f32 %v5906_v11, %v11460_v56 }
 0x9c4   : > { %v5995_v63 = vpop.f32.mrb[152].mxu1  ;;  %v5909_v6 = vadd.f32 %v5908_v5, %v11460_v56 }
 0x9c5   : > { %v5997_v26 = vpop.f32.mrb[153].mxu1  ;;  %v5996_v55 = vadd.f32 %v5995_v63, %v11460_v56  ;;  %v6027_v42 = vmax.f32 %v5907_v25, 0.0 }
 0x9c6   : > { %v5912_v23 = vpop.f32.mrb[154].mxu0  ;;  %v5998_v28 = vadd.f32 %v5997_v26, %v11460_v56  ;;  %v6028_v62 = vmax.f32 %v5909_v6, 0.0 }
 0x9c7   : > { %v5913_v16 = vadd.f32 %v5912_v23, %v11463_v44  ;;  %v5914_v19 = vpop.f32.mrb[155].mxu0  ;;  %v6029_v32 = vmax.f32 %v5996_v55, 0.0 }
 0x9c8   : > { %v5915_v35 = vadd.f32 %v5914_v19, %v11463_v44  ;;  %v6001_v8 = vpop.f32.mrb[154].mxu1  ;;  %v6030_v0 = vmax.f32 %v5998_v28, 0.0 }
 0x9c9   : > { %v6035_v46 = vmax.f32 %v5913_v16, 0.0  ;;  %v6002_v17 = vadd.f32 %v6001_v8, %v11463_v44  ;;  %v6003_v54 = vpop.f32.mrb[155].mxu1 }
 0x9ca   : > { %v6036_v47 = vmax.f32 %v5915_v35, 0.0  ;;  %v5918_v36 = vpop.f32.mrb[156].mxu0  ;;  %v6004_v4 = vadd.f32 %v6003_v54, %v11463_v44 }
 0x9cb   : > { %v7481_v14 = vpack.c.bf16 %v6035_v46, %v6027_v42  ;;  %v5920_v2 = vpop.f32.mrb[157].mxu0  ;;  %v6037_v49 = vmax.f32 %v6002_v17, 0.0  ;;  %v5919_v21 = vadd.f32 %v5918_v36, %v11472_v10 }
 0x9cc   : > { %v7479_v38 = vpack.c.bf16 %v6036_v47, %v6028_v62  ;;  %v6038_v20 = vmax.f32 %v6004_v4, 0.0  ;;  %v6007_v56 = vpop.f32.mrb[156].mxu1  ;;  %v5921_v3 = vadd.f32 %v5920_v2, %v11472_v10 }
 0x9cd   : > { %v7489_v58 = vpack.c.bf16 %v6037_v49, %v6029_v32  ;;  %v6009_v11 = vpop.f32.mrb[157].mxu1  ;;  %v6008_v44 = vadd.f32 %v6007_v56, %v11472_v10  ;;  %v6043_v23 = vmax.f32 %v5919_v21, 0.0 }
 0x9ce   : > { %v5924_v5 = vpop.f32.mrb[158].mxu0  ;;  %7480 = vmatprep.subr.bf16.mxu0 %v7479_v38  ;;  %v7487_v25 = vpack.c.bf16 %v6038_v20, %v6030_v0  ;;  %v6010_v16 = vadd.f32 %v6009_v11, %v11472_v10  ;;  %v6044_v35 = vmax.f32 %v5921_v3, 0.0  ;;  %v12164_v20 = vld [vmem:[#allocation55_spill] sm:$0xff]  ;;  %v12166_v11 = vld [vmem:[#allocation53_spill] sm:$0xff] }
 0x9cf   : > { %v5925_v63 = vadd.f32 %v5924_v5, %v11475_v43  ;;  %v5926_v6 = vpop.f32.mrb[159].mxu0  ;;  %7482 = vmatpush1.bf16.msra.mxu0 %v7481_v14  ;;  %v6045_v17 = vmax.f32 %v6008_v44, 0.0 }
 0x9d0   : > { %v5927_v26 = vadd.f32 %v5926_v6, %v11475_v43  ;;  %v6013_v55 = vpop.f32.mrb[158].mxu1  ;;  %7488 = vmatprep.subr.bf16.mxu1 %v7487_v25  ;;  %v6046_v36 = vmax.f32 %v6010_v16, 0.0  ;;  %v12167_v6 = vld [vmem:[#allocation54_spill] sm:$0xff] }
 0x9d1   : > { %v6051_v19 = vmax.f32 %v5925_v63, 0.0  ;;  %v6014_v42 = vadd.f32 %v6013_v55, %v11475_v43  ;;  %v6015_v46 = vpop.f32.mrb[159].mxu1  ;;  %7490 = vmatpush1.bf16.msra.mxu1 %v7489_v58  ;;  %v12165_v58 = vld [vmem:[#allocation20_spill] sm:$0xff] }
 0x9d2   : > { %v6052_v28 = vmax.f32 %v5927_v26, 0.0  ;;  %v6016_v62 = vadd.f32 %v6015_v46, %v11475_v43  ;;  %v11566_v43 = vpop.permute.xlu0 %6062 }
 0x9d3   : > { %v7485_v8 = vpack.c.bf16 %v6051_v19, %v6043_v23  ;;  %v6053_v47 = vmax.f32 %v6014_v42, 0.0 }
 0x9d4   : > { %v7483_v54 = vpack.c.bf16 %v6052_v28, %v6044_v35  ;;  %v6054_v14 = vmax.f32 %v6016_v62, 0.0 }
 0x9d5   : > { %v7493_v4 = vpack.c.bf16 %v6053_v47, %v6045_v17  ;;  %v12168_v17 = vld [vmem:[#allocation56_spill] sm:$0xff] }
 0x9d6   : > { %7484 = vmatprep.subr.bf16.mxu0 %v7483_v54  ;;  %v7491_v10 = vpack.c.bf16 %v6054_v14, %v6046_v36 }
 0x9d7   : > { %7486 = vmatpush1.bf16.msra.mxu0 %v7485_v8 }
 0x9d8   : > { %7492 = vmatprep.subr.bf16.mxu1 %v7491_v10 }
 0x9d9   : > { %7494 = vmatpush1.bf16.msra.mxu1 %v7493_v4  ;;  %v12169_v4 = vld [vmem:[#allocation58_spill] sm:$0xff] }
 0x9da   : > { %7149 = vmatmul.mubr.msk.f32.vlgmr.msra.gmra.mrb[168].mxu0 %vm1955_vm2, %v11487_v27 }
 0x9db   : > { %6340 = vmatprep.mubr.f32.mxu0 %v11931_v39 }
 0x9dc   : > { %7153 = vmatmul.mubr.msk.f32.vlgmr.msra.gmra.mrb[168].mxu1 %vm1955_vm2, %v11487_v27  ;;  %v11568_v27 = vpop.permute.xlu1 %6067 }
 0x9dd   : > { %6429 = vmatprep.mubr.f32.mxu1 %v11931_v39 }
 0x9de   : > { %7150 = vmatmul.mubr.msk.f32.gmra.mrb[170].mxu0 %vm1955_vm2, %v11497_v51 }
 0x9df   : > { %6346 = vmatprep.mubr.f32.mxu0 %v11931_v39 }
 0x9e0   : > { %7154 = vmatmul.mubr.msk.f32.gmra.mrb[170].mxu1 %vm1955_vm2, %v11497_v51  ;;  %v11570_v51 = vpop.permute.xlu0 %6072  ;;  %v11577_v56 = vpop.permute.xlu1 %6077 }
 0x9e1   : > { %6435 = vmatprep.mubr.f32.mxu1 %v11931_v39 }
 0x9e2   : > { %7151 = vmatmul.mubr.msk.f32.gmra.mrb[172].mxu0 %vm1955_vm2, %v11508_v15 }
 0x9e3   : > { %6352 = vmatprep.mubr.f32.mxu0 %v11931_v39 }
 0x9e4   : > { %7155 = vmatmul.mubr.msk.f32.gmra.mrb[172].mxu1 %vm1955_vm2, %v11508_v15  ;;  %v11583_v19 = vpop.permute.xlu0 %6518 }
 0x9e5   : > { %6441 = vmatprep.mubr.f32.mxu1 %v11931_v39 }
 0x9e6   : > { %7152 = vmatmul.mubr.msk.f32.gmra.mrb[174].mxu0 %vm1955_vm2, %v11519_v40 }
 0x9e8   : > { %7156 = vmatmul.mubr.msk.f32.gmra.mrb[174].mxu1 %vm1955_vm2, %v11519_v40 }
 0xa5e   : > { %v6158_v2 = vpop.f32.mrb[160].mxu0  ;;  %v6247_v49 = vpop.f32.mrb[160].mxu1 }
 0xa5f   : > { %v6159_v32 = vadd.f32 %v6158_v2, %v11566_v43  ;;  %v6160_v38 = vpop.f32.mrb[161].mxu0  ;;  %v6248_v15 = vadd.f32 %v6247_v49, %v11566_v43  ;;  %v6249_v0 = vpop.f32.mrb[161].mxu1  ;;  %v12170_v2 = vld [vmem:[#allocation14_spill] sm:$0xff] }
 0xa60   : > { %v6161_v39 = vadd.f32 %v6160_v38, %v11566_v43  ;;  %v6250_v40 = vadd.f32 %v6249_v0, %v11566_v43 }
 0xa61   : > { %v6448_v21 = vadd.f32 %v12164_v20, %v6159_v32  ;;  %v6450_v3 = vadd.f32 %v12165_v58, %v6248_v15  ;;  %v11597_v58 = vpop.permute.xlu1 %6523 }
 0xa62   : > { %v6449_v5 = vadd.f32 %v12166_v11, %v6161_v39  ;;  %v6164_v25 = vpop.f32.mrb[162].mxu0  ;;  %v6451_v44 = vadd.f32 %v12167_v6, %v6250_v40  ;;  %v6253_v23 = vpop.f32.mrb[162].mxu1  ;;  %v12171_v39 = vld [vmem:[#allocation59_spill] sm:$0xff] }
 0xa63   : > { %v6480_v63 = vmax.f32 %v6448_v21, 0.0  ;;  %v6165_v26 = vadd.f32 %v6164_v25, %v11568_v27  ;;  %v6166_v16 = vpop.f32.mrb[163].mxu0  ;;  %v6482_v55 = vmax.f32 %v6450_v3, 0.0  ;;  %v6254_v42 = vadd.f32 %v6253_v23, %v11568_v27  ;;  %v6255_v46 = vpop.f32.mrb[163].mxu1 }
 0xa64   : > { %v6481_v35 = vmax.f32 %v6449_v5, 0.0  ;;  %v6167_v28 = vadd.f32 %v6166_v16, %v11568_v27  ;;  %v6483_v62 = vmax.f32 %v6451_v44, 0.0  ;;  %v6256_v54 = vadd.f32 %v6255_v46, %v11568_v27 }
 0xa65   : > { %v6536_v8 = vmul.f32 %v11583_v19, %v6480_v63  ;;  %v6456_v47 = vadd.f32 %v12168_v17, %v6165_v26  ;;  %v6538_v36 = vmul.f32 %v11583_v19, %v6482_v55  ;;  %v6458_v10 = vadd.f32 %v12169_v4, %v6254_v42 }
 0xa66   : > { %v6537_v14 = vmul.f32 %v11583_v19, %v6481_v35  ;;  %v6457_v32 = vadd.f32 %v12170_v2, %v6167_v28  ;;  %v6170_v49 = vpop.f32.mrb[164].mxu0  ;;  %v6539_v38 = vmul.f32 %v11583_v19, %v6483_v62  ;;  %v6459_v0 = vadd.f32 %v12171_v39, %v6256_v54  ;;  %v6259_v21 = vpop.f32.mrb[164].mxu1 }
 0xa67   : > { %v6488_v15 = vmax.f32 %v6456_v47, 0.0  ;;  %v6171_v20 = vadd.f32 %v6170_v49, %v11570_v51  ;;  %v6172_v40 = vpop.f32.mrb[165].mxu0  ;;  %v6490_v3 = vmax.f32 %v6458_v10, 0.0  ;;  %v6260_v5 = vadd.f32 %v6259_v21, %v11570_v51  ;;  %v6261_v63 = vpop.f32.mrb[165].mxu1 }
 0xa68   : > { %v6489_v11 = vmax.f32 %v6457_v32, 0.0  ;;  %v6173_v25 = vadd.f32 %v6172_v40, %v11570_v51  ;;  %v6491_v44 = vmax.f32 %v6459_v0, 0.0  ;;  %v6262_v23 = vadd.f32 %v6261_v63, %v11570_v51 }
 0xa69   : > { %v6544_v6 = vmul.f32 %v11597_v58, %v6488_v15  ;;  %v6464_v26 = vadd.f32 %v11217_v22, %v6171_v20  ;;  %v6546_v16 = vmul.f32 %v11597_v58, %v6490_v3  ;;  %v6466_v35 = vadd.f32 %v11222_v29, %v6260_v5  ;;  %v11610_v22 = vpop.permute.xlu0 %6528 }
 0xa6a   : > { %v6545_v55 = vmul.f32 %v11597_v58, %v6489_v11  ;;  %v6465_v42 = vadd.f32 %v11224_v7, %v6173_v25  ;;  %v6176_v28 = vpop.f32.mrb[166].mxu0  ;;  %v6547_v62 = vmul.f32 %v11597_v58, %v6491_v44  ;;  %v6467_v47 = vadd.f32 %v11226_v30, %v6262_v23  ;;  %v6265_v54 = vpop.f32.mrb[166].mxu1 }
 0xa6b   : > { %v6568_v46 = vadd.f32 %v6544_v6, %v6536_v8  ;;  %v6496_v17 = vmax.f32 %v6464_v26, 0.0  ;;  %v6178_v4 = vpop.f32.mrb[167].mxu0  ;;  %v6586_v10 = vadd.f32 %v6546_v16, %v6538_v36  ;;  %v6498_v32 = vmax.f32 %v6466_v35, 0.0  ;;  %v6267_v15 = vpop.f32.mrb[167].mxu1 }
 0xa6c   : > { %v6577_v2 = vadd.f32 %v6545_v55, %v6537_v14  ;;  %v6497_v49 = vmax.f32 %v6465_v42, 0.0  ;;  %v6595_v39 = vadd.f32 %v6547_v62, %v6539_v38  ;;  %v6499_v7 = vmax.f32 %v6467_v47, 0.0  ;;  %v11624_v26 = vpop.permute.xlu1 %6533 }
 0xa6d   : > { %v6552_v29 = vmul.f32 %v11610_v22, %v6496_v17  ;;  %v6177_v8 = vadd.f32 %v6176_v28, %v11577_v56  ;;  %v6554_v0 = vmul.f32 %v11610_v22, %v6498_v32  ;;  %v6266_v30 = vadd.f32 %v6265_v54, %v11577_v56 }
 0xa6e   : > { %v6553_v20 = vmul.f32 %v11610_v22, %v6497_v49  ;;  %v6179_v21 = vadd.f32 %v6178_v4, %v11577_v56  ;;  %v6555_v36 = vmul.f32 %v11610_v22, %v6499_v7  ;;  %v6268_v38 = vadd.f32 %v6267_v15, %v11577_v56 }
 0xa6f   : > { %v6569_v40 = vadd.f32 %v6568_v46, %v6552_v29  ;;  %v6472_v14 = vadd.f32 %v11231_v57, %v6177_v8  ;;  %v6587_v3 = vadd.f32 %v6586_v10, %v6554_v0  ;;  %v6474_v5 = vadd.f32 %v11234_v18, %v6266_v30 }
 0xa70   : > { %v6578_v11 = vadd.f32 %v6577_v2, %v6553_v20  ;;  %v6473_v25 = vadd.f32 %v11236_v34, %v6179_v21  ;;  %v6596_v63 = vadd.f32 %v6595_v39, %v6555_v36  ;;  %v6475_v44 = vadd.f32 %v11239_v12, %v6268_v38 }
 0xa71   : > { %v6504_v6 = vmax.f32 %v6472_v14, 0.0  ;;  %v6506_v23 = vmax.f32 %v6474_v5, 0.0  ;;  %v6646_v28 = vlaneseq  ;;  %v8222_v29 = vmov 1966171168  }
 0xa72   : > { %v6505_v16 = vmax.f32 %v6473_v25, 0.0  ;;  %v6507_v35 = vmax.f32 %v6475_v44, 0.0  ;;  %v6671_v7 = vunpack.c.l.s4 %v8222_v29 }
 0xa73   : > { %v6560_v55 = vmul.f32 %v11624_v26, %v6504_v6  ;;  %v6562_v57 = vmul.f32 %v11624_v26, %v6506_v23  ;;  %v6647_v4 = vshrl.u32 %v6646_v28, 7 }
 0xa74   : > { %v6561_v42 = vmul.f32 %v11624_v26, %v6505_v16  ;;  %v6563_v18 = vmul.f32 %v11624_v26, %v6507_v35 }
 0xa75   : > { %v6570_v46 = vadd.f32 %v6569_v40, %v6560_v55  ;;  %v6588_v34 = vadd.f32 %v6587_v3, %v6562_v57  ;;  %v6648_v20 = vsub.s32 0, %v6647_v4  ;;  %v6644_v40 = vpop.permute.xlu0 %6643 }
 0xa76   : > { %v6579_v62 = vadd.f32 %v6578_v11, %v6561_v42  ;;  %v6597_v47 = vadd.f32 %v6596_v63, %v6563_v18  ;;  %v6672_v11 = vunpack.c.0.s8 %v6671_v7 }
 0xa77   : > { %v6571_v17 = vrot.slane %v6570_v46, 4  ;;  %v6589_v12 = vrot.slane %v6588_v34, 4  ;;  %v11630_v63 = vrot.slane %v6644_v40, %v6648_v20 }
 0xa78   : > { %v6580_v54 = vrot.slane %v6579_v62, 4  ;;  %v6598_v2 = vrot.slane %v6597_v47, 4  ;;  %v11633_v57 = vsub.s32 %v6672_v11, %v6647_v4 }
 0xa79   : > { %v6572_v10 = vadd.f32 %v6571_v17, %v6570_v46  ;;  %v6590_v32 = vadd.f32 %v6589_v12, %v6588_v34 }
 0xa7a   : > { %v6581_v49 = vadd.f32 %v6580_v54, %v6579_v62  ;;  %v6599_v39 = vadd.f32 %v6598_v2, %v6597_v47 }
 0xa7b   : > { %v6573_v15 = vrot.slane %v6572_v10, 2  ;;  %v6591_v8 = vrot.slane %v6590_v32, 2 }
 0xa7c   : > { %v6582_v0 = vrot.slane %v6581_v49, 2  ;;  %v6600_v21 = vrot.slane %v6599_v39, 2 }
 0xa7d   : > { %v6574_v30 = vadd.f32 %v6573_v15, %v6572_v10  ;;  %v6592_v36 = vadd.f32 %v6591_v8, %v6590_v32 }
 0xa7e   : > { %v6583_v14 = vadd.f32 %v6582_v0, %v6581_v49  ;;  %v6601_v3 = vadd.f32 %v6600_v21, %v6599_v39 }
 0xa7f   : > { %v6575_v38 = vrot.slane %v6574_v30, 1  ;;  %v6593_v5 = vrot.slane %v6592_v36, 1 }
 0xa80   : > { %v6584_v25 = vrot.slane %v6583_v14, 1  ;;  %v6602_v44 = vrot.slane %v6601_v3, 1 }
 0xa81   : > { %v6576_v6 = vadd.f32 %v6575_v38, %v6574_v30  ;;  %v6594_v23 = vadd.f32 %v6593_v5, %v6592_v36 }
 0xa82   : > { %v6585_v16 = vadd.f32 %v6584_v25, %v6583_v14  ;;  %v6603_v35 = vadd.f32 %v6602_v44, %v6601_v3 }
 0xa83   : > { %v6650_v55 = vadd.f32 %v11630_v63, %v6576_v6  ;;  %v6652_v42 = vadd.f32 %v11630_v63, %v6594_v23 }
 0xa84   : > { %v6651_v28 = vadd.f32 %v11630_v63, %v6585_v16  ;;  %v6653_v46 = vadd.f32 %v11630_v63, %v6603_v35 }
 0xa86   : > { %v6666_v18 = vcombine.low %v6650_v55, %v6651_v28  ;;  %v6667_v34 = vcombine.low %v6652_v42, %v6653_v46 }
 0xa88   : > { %v11639_v62 = vrot.slane %v6666_v18, %v11633_v57  ;;  %v11642_v17 = vrot.slane %v6667_v34, %v11633_v57 }
 0xa8a   : > { %v6698_v47 = vcombine.low %v11639_v62, %v11642_v17 }
 0xaad   : > { %v6336_v12 = vpop.f32.mrb[168].mxu0 }
 0xaae   : > { %v6337_v54 = vadd.f32 %v6336_v12, %v11566_v43  ;;  %v6338_v4 = vpop.f32.mrb[169].mxu0 }
 0xaaf   : > { %v6339_v10 = vadd.f32 %v6338_v4, %v11566_v43  ;;  %v6425_v32 = vpop.f32.mrb[168].mxu1 }
 0xab0   : > { %v6452_v2 = vadd.f32 %v11361_v60, %v6337_v54  ;;  %v6426_v49 = vadd.f32 %v6425_v32, %v11566_v43  ;;  %v6427_v39 = vpop.f32.mrb[169].mxu1 }
 0xab1   : > { %v6453_v15 = vadd.f32 %v11365_v24, %v6339_v10  ;;  %v6342_v29 = vpop.f32.mrb[170].mxu0  ;;  %v6428_v8 = vadd.f32 %v6427_v39, %v11566_v43 }
 0xab2   : > { %v6484_v7 = vmax.f32 %v6452_v2, 0.0  ;;  %v6343_v0 = vadd.f32 %v6342_v29, %v11568_v27  ;;  %v6344_v20 = vpop.f32.mrb[171].mxu0  ;;  %v6454_v30 = vadd.f32 %v11376_v37, %v6426_v49 }
 0xab3   : > { %v6485_v21 = vmax.f32 %v6453_v15, 0.0  ;;  %v6345_v40 = vadd.f32 %v6344_v20, %v11568_v27  ;;  %v6455_v36 = vadd.f32 %v11380_v52, %v6428_v8  ;;  %v6431_v24 = vpop.f32.mrb[170].mxu1 }
 0xab4   : > { %v6540_v60 = vmul.f32 %v11583_v19, %v6484_v7  ;;  %v6460_v14 = vadd.f32 %v11382_v45, %v6343_v0  ;;  %v6486_v38 = vmax.f32 %v6454_v30, 0.0  ;;  %v6432_v43 = vadd.f32 %v6431_v24, %v11568_v27  ;;  %v6433_v5 = vpop.f32.mrb[171].mxu1 }
 0xab5   : > { %v6541_v3 = vmul.f32 %v11583_v19, %v6485_v21  ;;  %v6461_v11 = vadd.f32 %v11385_v41, %v6345_v40  ;;  %v6348_v25 = vpop.f32.mrb[172].mxu0  ;;  %v6487_v37 = vmax.f32 %v6455_v36, 0.0  ;;  %v6434_v44 = vadd.f32 %v6433_v5, %v11568_v27 }
 0xab6   : > { %v6492_v6 = vmax.f32 %v6460_v14, 0.0  ;;  %v6349_v23 = vadd.f32 %v6348_v25, %v11570_v51  ;;  %v6350_v16 = vpop.f32.mrb[173].mxu0  ;;  %v6542_v52 = vmul.f32 %v11583_v19, %v6486_v38  ;;  %v6462_v45 = vadd.f32 %v11395_v61, %v6432_v43 }
 0xab7   : > { %v6493_v55 = vmax.f32 %v6461_v11, 0.0  ;;  %v6351_v35 = vadd.f32 %v6350_v16, %v11570_v51  ;;  %v6543_v42 = vmul.f32 %v11583_v19, %v6487_v37  ;;  %v6463_v28 = vadd.f32 %v11400_v48, %v6434_v44  ;;  %v6437_v18 = vpop.f32.mrb[172].mxu1 }
 0xab8   : > { %v6548_v41 = vmul.f32 %v11597_v58, %v6492_v6  ;;  %v6468_v46 = vadd.f32 %v11402_v50, %v6349_v23  ;;  %v6494_v27 = vmax.f32 %v6462_v45, 0.0  ;;  %v6438_v12 = vadd.f32 %v6437_v18, %v11570_v51  ;;  %v6439_v61 = vpop.f32.mrb[173].mxu1 }
 0xab9   : > { %v6549_v34 = vmul.f32 %v11597_v58, %v6493_v55  ;;  %v6469_v54 = vadd.f32 %v11406_v33, %v6351_v35  ;;  %v6354_v4 = vpop.f32.mrb[174].mxu0  ;;  %v6495_v2 = vmax.f32 %v6463_v28, 0.0  ;;  %v6440_v19 = vadd.f32 %v6439_v61, %v11570_v51 }
 0xaba   : > { %v6604_v10 = vadd.f32 %v6548_v41, %v6540_v60  ;;  %v6500_v32 = vmax.f32 %v6468_v46, 0.0  ;;  %v6356_v49 = vpop.f32.mrb[175].mxu0  ;;  %v6550_v48 = vmul.f32 %v11597_v58, %v6494_v27  ;;  %v6470_v50 = vadd.f32 %v11413_v31, %v6438_v12 }
 0xabb   : > { %v6613_v15 = vadd.f32 %v6549_v34, %v6541_v3  ;;  %v6501_v39 = vmax.f32 %v6469_v54, 0.0  ;;  %v6551_v29 = vmul.f32 %v11597_v58, %v6495_v2  ;;  %v6471_v33 = vadd.f32 %v11416_v9, %v6440_v19  ;;  %v6443_v0 = vpop.f32.mrb[174].mxu1 }
 0xabc   : > { %v6556_v7 = vmul.f32 %v11610_v22, %v6500_v32  ;;  %v6355_v8 = vadd.f32 %v6354_v4, %v11577_v56  ;;  %v6622_v20 = vadd.f32 %v6550_v48, %v6542_v52  ;;  %v6502_v30 = vmax.f32 %v6470_v50, 0.0  ;;  %v6445_v40 = vpop.f32.mrb[175].mxu1 }
 0xabd   : > { %v6557_v51 = vmul.f32 %v11610_v22, %v6501_v39  ;;  %v6444_v21 = vadd.f32 %v6443_v0, %v11577_v56  ;;  %v6631_v60 = vadd.f32 %v6551_v29, %v6543_v42  ;;  %v6503_v31 = vmax.f32 %v6471_v33, 0.0 }
 0xabe   : > { %v6605_v36 = vadd.f32 %v6604_v10, %v6556_v7  ;;  %v6476_v14 = vadd.f32 %v11418_v1, %v6355_v8  ;;  %v6558_v58 = vmul.f32 %v11610_v22, %v6502_v30  ;;  %v6357_v38 = vadd.f32 %v6356_v49, %v11577_v56 }
 0xabf   : > { %v6614_v24 = vadd.f32 %v6613_v15, %v6557_v51  ;;  %v6478_v9 = vadd.f32 %v11426_v59, %v6444_v21  ;;  %v6559_v3 = vmul.f32 %v11610_v22, %v6503_v31  ;;  %v6446_v11 = vadd.f32 %v6445_v40, %v11577_v56 }
 0xac0   : > { %v6508_v43 = vmax.f32 %v6476_v14, 0.0  ;;  %v6623_v5 = vadd.f32 %v6622_v20, %v6558_v58  ;;  %v6477_v37 = vadd.f32 %v11421_v13, %v6357_v38 }
 0xac1   : > { %v6510_v25 = vmax.f32 %v6478_v9, 0.0  ;;  %v6632_v6 = vadd.f32 %v6631_v60, %v6559_v3  ;;  %v6479_v1 = vadd.f32 %v11430_v53, %v6446_v11  ;;  %v6706_v60 = vrot.slane %v6698_v47, %v11633_v57 }
 0xac2   : > { %v6564_v44 = vmul.f32 %v11624_v26, %v6508_v43  ;;  %v6509_v16 = vmax.f32 %v6477_v37, 0.0 }
 0xac3   : > { %v6566_v23 = vmul.f32 %v11624_v26, %v6510_v25  ;;  %v6511_v52 = vmax.f32 %v6479_v1, 0.0 }
 0xac4   : > { %v6606_v59 = vadd.f32 %v6605_v36, %v6564_v44  ;;  %v6565_v22 = vmul.f32 %v11624_v26, %v6509_v16 }
 0xac5   : > { %v6624_v45 = vadd.f32 %v6623_v5, %v6566_v23  ;;  %v6567_v56 = vmul.f32 %v11624_v26, %v6511_v52 }
 0xac6   : > { %v6607_v55 = vrot.slane %v6606_v59, 4  ;;  %v6615_v42 = vadd.f32 %v6614_v24, %v6565_v22 }
 0xac7   : > { %v6625_v35 = vrot.slane %v6624_v45, 4  ;;  %v6633_v13 = vadd.f32 %v6632_v6, %v6567_v56 }
 0xac8   : > { %v6608_v41 = vadd.f32 %v6607_v55, %v6606_v59  ;;  %v6616_v46 = vrot.slane %v6615_v42, 4 }
 0xac9   : > { %v6626_v28 = vadd.f32 %v6625_v35, %v6624_v45  ;;  %v6634_v27 = vrot.slane %v6633_v13, 4 }
 0xaca   : > { %v6609_v18 = vrot.slane %v6608_v41, 2  ;;  %v6617_v34 = vadd.f32 %v6616_v46, %v6615_v42 }
 0xacb   : > { %v6627_v53 = vrot.slane %v6626_v28, 2  ;;  %v6635_v54 = vadd.f32 %v6634_v27, %v6633_v13 }
 0xacc   : > { %v6610_v12 = vadd.f32 %v6609_v18, %v6608_v41  ;;  %v6618_v4 = vrot.slane %v6617_v34, 2 }
 0xacd   : > { %v6628_v61 = vadd.f32 %v6627_v53, %v6626_v28  ;;  %v6636_v2 = vrot.slane %v6635_v54, 2 }
 0xace   : > { %v6611_v10 = vrot.slane %v6610_v12, 1  ;;  %v6619_v19 = vadd.f32 %v6618_v4, %v6617_v34 }
 0xacf   : > { %v6629_v32 = vrot.slane %v6628_v61, 1  ;;  %v6637_v26 = vadd.f32 %v6636_v2, %v6635_v54 }
 0xad0   : > { %v6612_v49 = vadd.f32 %v6611_v10, %v6610_v12  ;;  %v6620_v15 = vrot.slane %v6619_v19, 1 }
 0xad1   : > { %v6630_v48 = vadd.f32 %v6629_v32, %v6628_v61  ;;  %v6638_v50 = vrot.slane %v6637_v26, 1 }
 0xad2   : > { %v6654_v39 = vadd.f32 %v11630_v63, %v6612_v49  ;;  %v6621_v29 = vadd.f32 %v6620_v15, %v6619_v19 }
 0xad3   : > { %v6656_v7 = vadd.f32 %v11630_v63, %v6630_v48  ;;  %v6639_v33 = vadd.f32 %v6638_v50, %v6637_v26 }
 0xad4   : > { %v6655_v8 = vadd.f32 %v11630_v63, %v6621_v29 }
 0xad5   : > { %v6657_v0 = vadd.f32 %v11630_v63, %v6639_v33 }
 0xad6   : > { %v6668_v20 = vcombine.low %v6654_v39, %v6655_v8 }
 0xad7   : > { %v6669_v30 = vcombine.low %v6656_v7, %v6657_v0 }
 0xad8   : > { %v6690_v51 = vrot.slane %v6668_v20, %v11633_v57 }
 0xad9   : > { %v6697_v21 = vrot.slane %v6669_v30, %v11633_v57 }
 0xadb   : > { %v6699_v40 = vcombine.low %v6690_v51, %v6697_v21 }
 0xadd   : > { %v6713_v36 = vrot.slane %v6699_v40, %v11633_v57 }
 0xadf   : > { %v6714_v31 = vcombine.low %v6706_v60, %v6713_v36 }
 0xae1   : > { %6716 = vst [vmem:[%s499_s10] sm:$0xff] %v6714_v31 }
 0xae2 PF: > { %s23_s25 = sadd.s32 1, %s8218_s25   ;;  %s12172_s28 = sld [smem:[#allocation4_spill]] }
 0xae3   : > { %p20_p12 = scmp.ge.s32.totalorder %s23_s25, 6   ;;  %s12173_s26 = sld [smem:[#allocation5_spill]] }
 0xae4   : > { %s12174_s19 = smov %s8198_s20  ;;  %s12175_s20 = smov %s8337_s12 }
 0xae5   : > { %s12176_s21 = smov %s8210_s23  ;;  %s12177_s22 = smov %s8214_s24 }
 0xae6   :  { %22 = sbr.rel (!%p20_p12) target bundleno = 7 (0x7), region = 141 }
 0xae8   : > { %s12178_s23 = smov %s12172_s28 }
 0xae9   : > { %s12179_s24 = smov %s12173_s26 }

</bundles_post_ra>
